<compile_context>
chip_gen: v6e
topology: v6e:2x2x1
jax: 0.10.0
libtpu: 0.0.40
codegen_flags: <defaults>
</compile_context>

<pallas_src>
import functools

import numpy as np

import jax
import jax.numpy as jnp
from jax.experimental import pallas as pl
from jax.experimental.pallas import tpu as pltpu


# (Cin, Cout, K) for the six conv stages, as in the PyTorch module.
_CONV_CFG = [(2, 4, 3), (4, 8, 5), (8, 16, 7), (16, 32, 9), (32, 64, 11), (64, 128, 13)]
_BN_EPS = 1e-5


def _round_up(v, m):
    return (v + m - 1) // m * m


def _stage_geometry(n):
    """Static per-stage geometry: input length L, padded length Lp, pad p."""
    geo = []
    L = n
    for (cin, cout, k) in _CONV_CFG:
        p = k // 2
        geo.append(dict(cin=cin, cout=cout, K=k, p=p, L=L, Lp=L + 2 * p, L_out=L // 2))
        L //= 2
    return geo


# ----------------------------------------------------------------------------
# Fused kernel:
#   6 x (conv + folded-BN + ReLU + maxpool)  +  fc1 + ReLU + fc2 + sigmoid
#
# Activation layout: batch-stacked, per-block zero-padded 2-D matrix held in a
# VMEM scratch `abuf` of shape (A_ROWS, 128): rows b*Lp_s + t hold batch b's
# padded activation at position t, channels on lanes [0, Cin).  All rows not
# explicitly written are zero (abuf is re-zeroed each stage), so conv padding
# is exact and no cross-batch contamination can reach a valid output row.
# ----------------------------------------------------------------------------
def _msna_fused_kernel(x_ref,
                       wf1, wf2, wf3, wf4, wf5, wf6,
                       bias_ref, w1p_ref, b1_ref, w2p_ref, b2p_ref,
                       o_ref, abuf, ybuf, *, bt, n):
    geo = _stage_geometry(n)
    w_refs = (wf1, wf2, wf3, wf4, wf5, wf6)

    # Load the batch-stacked, padded input into the activation scratch.
    abuf[...] = jnp.zeros_like(abuf)
    R1 = bt * geo[0]["Lp"]
    abuf[0:R1, 0:2] = x_ref[...]

    feat = None
    for s, g in enumerate(geo):
        cin, cout, K, p, L, Lp = g["cin"], g["cout"], g["K"], g["p"], g["L"], g["Lp"]
        R = bt * Lp
        L2 = L // 2
        wf = w_refs[s]                       # (K*Cin, Cout), BN scale folded in

        if cin >= 16:
            # im2col: ONE MXU matmul with contraction K*Cin (144 / 352 / 832).
            X = jnp.concatenate([abuf[k:k + R, 0:cin] for k in range(K)], axis=1)
            acc = jnp.dot(X, wf[...], preferred_element_type=jnp.float32)
        else:
            # Tiny early stages: keep the K-tap accumulate (MXU filler).
            acc = jnp.dot(abuf[0:R, 0:cin], wf[0:cin, :],
                          preferred_element_type=jnp.float32)
            for k in range(1, K):
                acc = acc + jnp.dot(abuf[k:k + R, 0:cin],
                                    wf[k * cin:(k + 1) * cin, :],
                                    preferred_element_type=jnp.float32)

        # Folded BatchNorm shift (incl. conv bias) + ReLU (before pooling, as in torch).
        y = jnp.maximum(acc + bias_ref[s:s + 1, 0:cout], 0.0)
        ybuf[0:R, 0:cout] = y

        if s + 1 < len(geo):
            # MaxPool(2,2) + re-pad/re-stack for the next stage:
            # strided even/odd sublane reads per batch block, max on the VPU,
            # store into the zeroed activation scratch at the padded offsets.
            p_nxt, Lp_nxt = geo[s + 1]["p"], geo[s + 1]["Lp"]
            abuf[...] = jnp.zeros_like(abuf)
            for b in range(bt):
                ev = ybuf[pl.ds(b * Lp, L2, 2), 0:cout]
                od = ybuf[pl.ds(b * Lp + 1, L2, 2), 0:cout]
                abuf[pl.ds(b * Lp_nxt + p_nxt, L2), 0:cout] = jnp.maximum(ev, od)
        else:
            # Final stage: pool and emit a lane-dense (bt, Lf*128) feature slab
            # (feature order (l, c); fc1 weight is host-permuted to match).
            rows = []
            for b in range(bt):
                ev = ybuf[pl.ds(b * Lp, L2, 2), 0:cout]
                od = ybuf[pl.ds(b * Lp + 1, L2, 2), 0:cout]
                pooled = jnp.maximum(ev, od)                       # (Lf, 128)
                rows.append(jnp.concatenate(
                    [pooled[l:l + 1, :] for l in range(L2)], axis=1))  # (1, Lf*128)
            feat = jnp.concatenate(rows, axis=0)                   # (bt, 2n)

    # fc head: one wide matmul each.
    h = jnp.maximum(
        jnp.dot(feat, w1p_ref[...], preferred_element_type=jnp.float32) + b1_ref[...],
        0.0)
    # TODO(synk): Dropout(p=0.2) is the identity in eval/inference mode; the
    # train-mode stochastic mask is not implemented here.
    z = jnp.dot(h, w2p_ref[...], preferred_element_type=jnp.float32) + b2p_ref[...]
    o_ref[...] = 1.0 / (1.0 + jnp.exp(-z))      # column 0 is the real output


def msna_cnn_forward(x_ncl, params, *, batch_tile=None):
    """x_ncl: (B, 2, n) float32 (torch NCL layout) -> (B, 1) sigmoid outputs."""
    B, cin0, n = x_ncl.shape
    assert cin0 == 2 and n % 64 == 0
    bt = B if batch_tile is None else batch_tile
    assert B % bt == 0
    if bt != B:
        # Keep block shapes (8,128)-friendly if the batch is split over grid steps.
        assert bt % 8 == 0 and (bt * (n + 2)) % 8 == 0
    geo = _stage_geometry(n)
    p1, Lp1 = geo[0]["p"], geo[0]["Lp"]

    # NCL -> NLC, zero-pad for the first conv, stack batch along sublanes.
    # (Tiny one-off XLA prep; everything else stays in-kernel.)
    x_nlc = jnp.transpose(x_ncl, (0, 2, 1))                      # (B, n, 2)
    x_pad = jnp.pad(x_nlc, ((0, 0), (p1, p1), (0, 0)))           # (B, Lp1, 2)
    x_stk = x_pad.reshape(B * Lp1, cin0)                         # (B*Lp1, 2)

    a_rows = _round_up(bt * Lp1 + 2 * p1, 8)     # activation scratch rows (stage 1 largest)
    y_rows = _round_up(bt * Lp1, 8)              # conv-output scratch rows

    const2 = lambda i: (0, 0)
    in_specs = [pl.BlockSpec((bt * Lp1, cin0), lambda i: (i, 0))]
    in_specs += [pl.BlockSpec(w.shape, const2) for w in params["conv_wflat"]]
    in_specs += [pl.BlockSpec(params["bias_all"].shape, const2),
                 pl.BlockSpec(params["w1p"].shape, const2),
                 pl.BlockSpec(params["b1"].shape, const2),
                 pl.BlockSpec(params["w2p"].shape, const2),
                 pl.BlockSpec(params["b2p"].shape, const2)]
    out_spec = pl.BlockSpec((bt, 128), lambda i: (i, 0))         # lane-dense output

    kern = functools.partial(_msna_fused_kernel, bt=bt, n=n)
    out_pad = pl.pallas_call(
        kern,
        out_shape=jax.ShapeDtypeStruct((B, 128), jnp.float32),
        grid_spec=pltpu.PrefetchScalarGridSpec(
            num_scalar_prefetch=0,
            grid=(B // bt,),
            in_specs=in_specs,
            out_specs=out_spec,
            scratch_shapes=[pltpu.VMEM((a_rows, 128), jnp.float32),
                            pltpu.VMEM((y_rows, 128), jnp.float32)]),
        compiler_params=pltpu.CompilerParams(
            dimension_semantics=("parallel",),
            vmem_limit_bytes=32 * 1024 * 1024),
    )(x_stk, *params["conv_wflat"], params["bias_all"],
      params["w1p"], params["b1"], params["w2p"], params["b2p"])
    return out_pad[:, :1]


# ----------------------------------------------------------------------------
# Parameter construction (deterministic, mirrors the torch __init__ shapes)
# ----------------------------------------------------------------------------
def init_params(key, n):
    assert n % 64 == 0
    Lf = n // 64
    keys = jax.random.split(key, 2 * len(_CONV_CFG) + 4)

    stages = []          # torch-layout params, used by the pure-JAX reference
    conv_wflat = []      # (K*Cin, Cout) with BN scale folded in, for the kernel
    bias_rows = []
    for i, (cin, cout, k) in enumerate(_CONV_CFG):
        bound = 1.0 / np.sqrt(cin * k)
        w = jax.random.uniform(keys[2 * i], (cout, cin, k), jnp.float32, -bound, bound)
        b = jax.random.uniform(keys[2 * i + 1], (cout,), jnp.float32, -bound, bound)
        # BatchNorm1d defaults: gamma=1, beta=0, running_mean=0, running_var=1.
        gamma = jnp.ones((cout,), jnp.float32)
        beta = jnp.zeros((cout,), jnp.float32)
        mean = jnp.zeros((cout,), jnp.float32)
        var = jnp.ones((cout,), jnp.float32)
        scale = gamma / jnp.sqrt(var + _BN_EPS)
        bias_fold = beta + (b - mean) * scale
        stages.append({"w_oik": w, "scale": scale, "bias": bias_fold})
        # Wflat[k*cin + ci, co] = w[co, ci, k] * scale[co]
        wflat = (jnp.transpose(w, (2, 1, 0)) * scale[None, None, :]).reshape(k * cin, cout)
        conv_wflat.append(wflat)
        bias_rows.append(jnp.pad(bias_fold, (0, 128 - cout)).reshape(1, 128))
    bias_all = jnp.concatenate(bias_rows, axis=0)                # (6, 128)

    kf1w, kf1b, kf2w, kf2b = keys[-4:]
    bound1 = 1.0 / np.sqrt(2 * n)
    fc1_w = jax.random.uniform(kf1w, (n, 2 * n), jnp.float32, -bound1, bound1)
    fc1_b = jax.random.uniform(kf1b, (n,), jnp.float32, -bound1, bound1)
    bound2 = 1.0 / np.sqrt(n)
    fc2_w = jax.random.uniform(kf2w, (1, n), jnp.float32, -bound2, bound2)
    fc2_b = jax.random.uniform(kf2b, (1,), jnp.float32, -bound2, bound2)

    # fc1 weight permuted for the kernel's (length-pos l, channel c) slab order:
    # slab index i = l*128 + c  <->  torch flatten index m = c*Lf + l.
    perm = np.array([c * Lf + l for l in range(Lf) for c in range(128)], np.int64)
    w1p = fc1_w[:, perm].T                                       # (2n, n)
    w2p = jnp.pad(fc2_w.T, ((0, 0), (0, 127)))                   # (n, 128), col 0 real
    b2p = jnp.pad(fc2_b.reshape(1, 1), ((0, 0), (0, 127)))       # (1, 128)

    return {
        "stages": stages,
        "conv_wflat": conv_wflat,
        "bias_all": bias_all,
        "w1p": w1p,
        "b1": fc1_b.reshape(1, n),
        "w2p": w2p,
        "b2p": b2p,
        "fc1_w": fc1_w, "fc1_b": fc1_b, "fc2_w": fc2_w, "fc2_b": fc2_b,
    }


# ----------------------------------------------------------------------------
# Pure-JAX reference (semantic spec of the torch module, eval mode)
# ----------------------------------------------------------------------------
def msna_cnn_reference(x_ncl, params):
    B = x_ncl.shape[0]
    h = x_ncl
    for st in params["stages"]:
        k = st["w_oik"].shape[-1]
        conv = jax.lax.conv_general_dilated(
            h, st["w_oik"], window_strides=(1,), padding=[(k // 2, k // 2)],
            dimension_numbers=("NCH", "OIH", "NCH"))
        y = conv * st["scale"].reshape(1, -1, 1) + st["bias"].reshape(1, -1, 1)
        y = jnp.maximum(y, 0.0)
        Bc, C, L = y.shape
        h = jnp.max(y.reshape(Bc, C, L // 2, 2), axis=-1)
    feat = h.reshape(B, -1)
    h1 = jnp.maximum(feat @ params["fc1_w"].T + params["fc1_b"], 0.0)
    z = h1 @ params["fc2_w"].T + params["fc2_b"]
    return 1.0 / (1.0 + jnp.exp(-z))


if __name__ == "__main__":
    n = 128                       # sequence length; must be divisible by 64
    B = 2
    key = jax.random.PRNGKey(0)
    kx, kp = jax.random.split(key)
    x = jax.random.normal(kx, (B, 2, n), dtype=jnp.float32)   # NCL, like torch
    params = init_params(kp, n)

    out = jax.block_until_ready(msna_cnn_forward(x, params))
    ref = jax.block_until_ready(msna_cnn_reference(x, params))

    assert out.shape == (B, 1)
    assert jnp.allclose(out, ref, atol=1e-3, rtol=1e-3), (out, ref)

    print("KERNEL_OK")
</pallas_src>

<mosaic_0001>
module attributes {stable_mosaic.version = 11 : i64} {
  func.func @_msna_fused_kernel(%arg0: i32, %arg1: memref<260x2xf32, #tpu.memory_space<vmem>>, %arg2: memref<6x4xf32, #tpu.memory_space<vmem>>, %arg3: memref<20x8xf32, #tpu.memory_space<vmem>>, %arg4: memref<56x16xf32, #tpu.memory_space<vmem>>, %arg5: memref<144x32xf32, #tpu.memory_space<vmem>>, %arg6: memref<352x64xf32, #tpu.memory_space<vmem>>, %arg7: memref<832x128xf32, #tpu.memory_space<vmem>>, %arg8: memref<6x128xf32, #tpu.memory_space<vmem>>, %arg9: memref<256x128xf32, #tpu.memory_space<vmem>>, %arg10: memref<1x128xf32, #tpu.memory_space<vmem>>, %arg11: memref<128x128xf32, #tpu.memory_space<vmem>>, %arg12: memref<1x128xf32, #tpu.memory_space<vmem>>, %arg13: memref<2x128xf32, #tpu.memory_space<vmem>>, %arg14: memref<264x128xf32, #tpu.memory_space<vmem>>, %arg15: memref<264x128xf32, #tpu.memory_space<vmem>>) attributes {dimension_semantics = [#tpu.dimension_semantics<parallel>], iteration_bounds = array<i64: 1>, scalar_prefetch = 0 : i64, scratch_operands = 2 : i64, tpu.core_type = #tpu.core_type<tc>, window_params = [{transform_indices = @transform_0, window_bounds = array<i64: 260, 2>}, {pipeline_mode = #tpu.pipeline_mode<synchronous>, transform_indices = @transform_1, window_bounds = array<i64: 6, 4>}, {pipeline_mode = #tpu.pipeline_mode<synchronous>, transform_indices = @transform_2, window_bounds = array<i64: 20, 8>}, {pipeline_mode = #tpu.pipeline_mode<synchronous>, transform_indices = @transform_3, window_bounds = array<i64: 56, 16>}, {pipeline_mode = #tpu.pipeline_mode<synchronous>, transform_indices = @transform_4, window_bounds = array<i64: 144, 32>}, {pipeline_mode = #tpu.pipeline_mode<synchronous>, transform_indices = @transform_5, window_bounds = array<i64: 352, 64>}, {pipeline_mode = #tpu.pipeline_mode<synchronous>, transform_indices = @transform_6, window_bounds = array<i64: 832, 128>}, {pipeline_mode = #tpu.pipeline_mode<synchronous>, transform_indices = @transform_7, window_bounds = array<i64: 6, 128>}, {pipeline_mode = #tpu.pipeline_mode<synchronous>, transform_indices = @transform_8, window_bounds = array<i64: 256, 128>}, {pipeline_mode = #tpu.pipeline_mode<synchronous>, transform_indices = @transform_9, window_bounds = array<i64: 1, 128>}, {pipeline_mode = #tpu.pipeline_mode<synchronous>, transform_indices = @transform_10, window_bounds = array<i64: 128, 128>}, {pipeline_mode = #tpu.pipeline_mode<synchronous>, transform_indices = @transform_11, window_bounds = array<i64: 1, 128>}, {transform_indices = @transform_12, window_bounds = array<i64: 2, 128>}]} {
    %cst = arith.constant 0.000000e+00 : f32
    %0 = vector.broadcast %cst : f32 to vector<264x128xf32>
    %c0 = arith.constant 0 : index
    %c0_0 = arith.constant 0 : index
    %1 = vector.load %arg14[%c0, %c0_0] : memref<264x128xf32, #tpu.memory_space<vmem>>, vector<264x128xf32>
    tpu.vector_store %arg14[%c0, %c0_0], %0 {strides = array<i32>} : memref<264x128xf32, #tpu.memory_space<vmem>>, vector<264x128xf32>,
    %c0_1 = arith.constant 0 : index
    %c0_2 = arith.constant 0 : index
    %2 = vector.load %arg1[%c0_1, %c0_2] : memref<260x2xf32, #tpu.memory_space<vmem>>, vector<260x2xf32>
    %c0_3 = arith.constant 0 : index
    %c0_4 = arith.constant 0 : index
    %3 = vector.load %arg14[%c0_3, %c0_4] : memref<264x128xf32, #tpu.memory_space<vmem>>, vector<260x2xf32>
    tpu.vector_store %arg14[%c0_3, %c0_4], %2 {strides = array<i32>} : memref<264x128xf32, #tpu.memory_space<vmem>>, vector<260x2xf32>,
    %c0_5 = arith.constant 0 : index
    %c0_6 = arith.constant 0 : index
    %4 = vector.load %arg14[%c0_5, %c0_6] : memref<264x128xf32, #tpu.memory_space<vmem>>, vector<260x2xf32>
    %c0_7 = arith.constant 0 : index
    %c0_8 = arith.constant 0 : index
    %5 = vector.load %arg2[%c0_7, %c0_8] : memref<6x4xf32, #tpu.memory_space<vmem>>, vector<2x4xf32>
    %cst_9 = arith.constant dense<0.000000e+00> : vector<260x4xf32>
    %6 = tpu.matmul %4, %5, %cst_9 {dimension_numbers = #tpu.dot_dimension_numbers<[1], [0], [0], [1], [0, 0, 1, 1], [], []>} : vector<260x2xf32>, vector<2x4xf32>, vector<260x4xf32> -> vector<260x4xf32>
    %c1 = arith.constant 1 : index
    %c0_10 = arith.constant 0 : index
    %7 = vector.load %arg14[%c1, %c0_10] : memref<264x128xf32, #tpu.memory_space<vmem>>, vector<260x2xf32>
    %c2 = arith.constant 2 : index
    %c0_11 = arith.constant 0 : index
    %8 = vector.load %arg2[%c2, %c0_11] : memref<6x4xf32, #tpu.memory_space<vmem>>, vector<2x4xf32>
    %cst_12 = arith.constant dense<0.000000e+00> : vector<260x4xf32>
    %9 = tpu.matmul %7, %8, %cst_12 {dimension_numbers = #tpu.dot_dimension_numbers<[1], [0], [0], [1], [0, 0, 1, 1], [], []>} : vector<260x2xf32>, vector<2x4xf32>, vector<260x4xf32> -> vector<260x4xf32>
    %10 = arith.addf %6, %9 : vector<260x4xf32>
    %c2_13 = arith.constant 2 : index
    %c0_14 = arith.constant 0 : index
    %11 = vector.load %arg14[%c2_13, %c0_14] : memref<264x128xf32, #tpu.memory_space<vmem>>, vector<260x2xf32>
    %c4 = arith.constant 4 : index
    %c0_15 = arith.constant 0 : index
    %12 = vector.load %arg2[%c4, %c0_15] : memref<6x4xf32, #tpu.memory_space<vmem>>, vector<2x4xf32>
    %cst_16 = arith.constant dense<0.000000e+00> : vector<260x4xf32>
    %13 = tpu.matmul %11, %12, %cst_16 {dimension_numbers = #tpu.dot_dimension_numbers<[1], [0], [0], [1], [0, 0, 1, 1], [], []>} : vector<260x2xf32>, vector<2x4xf32>, vector<260x4xf32> -> vector<260x4xf32>
    %14 = arith.addf %10, %13 : vector<260x4xf32>
    %c0_17 = arith.constant 0 : index
    %c0_18 = arith.constant 0 : index
    %15 = vector.load %arg8[%c0_17, %c0_18] : memref<6x128xf32, #tpu.memory_space<vmem>>, vector<1x4xf32>
    %16 = vector.broadcast %15 : vector<1x4xf32> to vector<260x4xf32>
    %17 = arith.addf %14, %16 : vector<260x4xf32>
    %cst_19 = arith.constant 0.000000e+00 : f32
    %18 = vector.broadcast %cst_19 : f32 to vector<260x4xf32>
    %19 = arith.maximumf %17, %18 : vector<260x4xf32>
    %c0_20 = arith.constant 0 : index
    %c0_21 = arith.constant 0 : index
    %20 = vector.load %arg15[%c0_20, %c0_21] : memref<264x128xf32, #tpu.memory_space<vmem>>, vector<260x4xf32>
    tpu.vector_store %arg15[%c0_20, %c0_21], %19 {strides = array<i32>} : memref<264x128xf32, #tpu.memory_space<vmem>>, vector<260x4xf32>,
    %cst_22 = arith.constant 0.000000e+00 : f32
    %21 = vector.broadcast %cst_22 : f32 to vector<264x128xf32>
    %c0_23 = arith.constant 0 : index
    %c0_24 = arith.constant 0 : index
    %22 = vector.load %arg14[%c0_23, %c0_24] : memref<264x128xf32, #tpu.memory_space<vmem>>, vector<264x128xf32>
    tpu.vector_store %arg14[%c0_23, %c0_24], %21 {strides = array<i32>} : memref<264x128xf32, #tpu.memory_space<vmem>>, vector<264x128xf32>,
    %c0_25 = arith.constant 0 : index
    %c0_26 = arith.constant 0 : index
    %23 = tpu.strided_load %arg15[%c0_25, %c0_26] {strides = array<i32: 2, 1>} : memref<264x128xf32, #tpu.memory_space<vmem>>, vector<64x4xf32>
    %c1_27 = arith.constant 1 : index
    %c0_28 = arith.constant 0 : index
    %24 = tpu.strided_load %arg15[%c1_27, %c0_28] {strides = array<i32: 2, 1>} : memref<264x128xf32, #tpu.memory_space<vmem>>, vector<64x4xf32>
    %25 = arith.maximumf %23, %24 : vector<64x4xf32>
    %c2_29 = arith.constant 2 : index
    %c0_30 = arith.constant 0 : index
    %26 = vector.load %arg14[%c2_29, %c0_30] : memref<264x128xf32, #tpu.memory_space<vmem>>, vector<64x4xf32>
    tpu.vector_store %arg14[%c2_29, %c0_30], %25 {strides = array<i32>} : memref<264x128xf32, #tpu.memory_space<vmem>>, vector<64x4xf32>,
    %c130 = arith.constant 130 : index
    %c0_31 = arith.constant 0 : index
    %27 = tpu.strided_load %arg15[%c130, %c0_31] {strides = array<i32: 2, 1>} : memref<264x128xf32, #tpu.memory_space<vmem>>, vector<64x4xf32>
    %c131 = arith.constant 131 : index
    %c0_32 = arith.constant 0 : index
    %28 = tpu.strided_load %arg15[%c131, %c0_32] {strides = array<i32: 2, 1>} : memref<264x128xf32, #tpu.memory_space<vmem>>, vector<64x4xf32>
    %29 = arith.maximumf %27, %28 : vector<64x4xf32>
    %c70 = arith.constant 70 : index
    %c0_33 = arith.constant 0 : index
    %30 = vector.load %arg14[%c70, %c0_33] : memref<264x128xf32, #tpu.memory_space<vmem>>, vector<64x4xf32>
    tpu.vector_store %arg14[%c70, %c0_33], %29 {strides = array<i32>} : memref<264x128xf32, #tpu.memory_space<vmem>>, vector<64x4xf32>,
    %c0_34 = arith.constant 0 : index
    %c0_35 = arith.constant 0 : index
    %31 = vector.load %arg14[%c0_34, %c0_35] : memref<264x128xf32, #tpu.memory_space<vmem>>, vector<136x4xf32>
    %c0_36 = arith.constant 0 : index
    %c0_37 = arith.constant 0 : index
    %32 = vector.load %arg3[%c0_36, %c0_37] : memref<20x8xf32, #tpu.memory_space<vmem>>, vector<4x8xf32>
    %cst_38 = arith.constant dense<0.000000e+00> : vector<136x8xf32>
    %33 = tpu.matmul %31, %32, %cst_38 {dimension_numbers = #tpu.dot_dimension_numbers<[1], [0], [0], [1], [0, 0, 1, 1], [], []>} : vector<136x4xf32>, vector<4x8xf32>, vector<136x8xf32> -> vector<136x8xf32>
    %c1_39 = arith.constant 1 : index
    %c0_40 = arith.constant 0 : index
    %34 = vector.load %arg14[%c1_39, %c0_40] : memref<264x128xf32, #tpu.memory_space<vmem>>, vector<136x4xf32>
    %c4_41 = arith.constant 4 : index
    %c0_42 = arith.constant 0 : index
    %35 = vector.load %arg3[%c4_41, %c0_42] : memref<20x8xf32, #tpu.memory_space<vmem>>, vector<4x8xf32>
    %cst_43 = arith.constant dense<0.000000e+00> : vector<136x8xf32>
    %36 = tpu.matmul %34, %35, %cst_43 {dimension_numbers = #tpu.dot_dimension_numbers<[1], [0], [0], [1], [0, 0, 1, 1], [], []>} : vector<136x4xf32>, vector<4x8xf32>, vector<136x8xf32> -> vector<136x8xf32>
    %37 = arith.addf %33, %36 : vector<136x8xf32>
    %c2_44 = arith.constant 2 : index
    %c0_45 = arith.constant 0 : index
    %38 = vector.load %arg14[%c2_44, %c0_45] : memref<264x128xf32, #tpu.memory_space<vmem>>, vector<136x4xf32>
    %c8 = arith.constant 8 : index
    %c0_46 = arith.constant 0 : index
    %39 = vector.load %arg3[%c8, %c0_46] : memref<20x8xf32, #tpu.memory_space<vmem>>, vector<4x8xf32>
    %cst_47 = arith.constant dense<0.000000e+00> : vector<136x8xf32>
    %40 = tpu.matmul %38, %39, %cst_47 {dimension_numbers = #tpu.dot_dimension_numbers<[1], [0], [0], [1], [0, 0, 1, 1], [], []>} : vector<136x4xf32>, vector<4x8xf32>, vector<136x8xf32> -> vector<136x8xf32>
    %41 = arith.addf %37, %40 : vector<136x8xf32>
    %c3 = arith.constant 3 : index
    %c0_48 = arith.constant 0 : index
    %42 = vector.load %arg14[%c3, %c0_48] : memref<264x128xf32, #tpu.memory_space<vmem>>, vector<136x4xf32>
    %c12 = arith.constant 12 : index
    %c0_49 = arith.constant 0 : index
    %43 = vector.load %arg3[%c12, %c0_49] : memref<20x8xf32, #tpu.memory_space<vmem>>, vector<4x8xf32>
    %cst_50 = arith.constant dense<0.000000e+00> : vector<136x8xf32>
    %44 = tpu.matmul %42, %43, %cst_50 {dimension_numbers = #tpu.dot_dimension_numbers<[1], [0], [0], [1], [0, 0, 1, 1], [], []>} : vector<136x4xf32>, vector<4x8xf32>, vector<136x8xf32> -> vector<136x8xf32>
    %45 = arith.addf %41, %44 : vector<136x8xf32>
    %c4_51 = arith.constant 4 : index
    %c0_52 = arith.constant 0 : index
    %46 = vector.load %arg14[%c4_51, %c0_52] : memref<264x128xf32, #tpu.memory_space<vmem>>, vector<136x4xf32>
    %c16 = arith.constant 16 : index
    %c0_53 = arith.constant 0 : index
    %47 = vector.load %arg3[%c16, %c0_53] : memref<20x8xf32, #tpu.memory_space<vmem>>, vector<4x8xf32>
    %cst_54 = arith.constant dense<0.000000e+00> : vector<136x8xf32>
    %48 = tpu.matmul %46, %47, %cst_54 {dimension_numbers = #tpu.dot_dimension_numbers<[1], [0], [0], [1], [0, 0, 1, 1], [], []>} : vector<136x4xf32>, vector<4x8xf32>, vector<136x8xf32> -> vector<136x8xf32>
    %49 = arith.addf %45, %48 : vector<136x8xf32>
    %c1_55 = arith.constant 1 : index
    %c0_56 = arith.constant 0 : index
    %50 = vector.load %arg8[%c1_55, %c0_56] : memref<6x128xf32, #tpu.memory_space<vmem>>, vector<1x8xf32>
    %51 = vector.broadcast %50 : vector<1x8xf32> to vector<136x8xf32>
    %52 = arith.addf %49, %51 : vector<136x8xf32>
    %cst_57 = arith.constant 0.000000e+00 : f32
    %53 = vector.broadcast %cst_57 : f32 to vector<136x8xf32>
    %54 = arith.maximumf %52, %53 : vector<136x8xf32>
    %c0_58 = arith.constant 0 : index
    %c0_59 = arith.constant 0 : index
    %55 = vector.load %arg15[%c0_58, %c0_59] : memref<264x128xf32, #tpu.memory_space<vmem>>, vector<136x8xf32>
    tpu.vector_store %arg15[%c0_58, %c0_59], %54 {strides = array<i32>} : memref<264x128xf32, #tpu.memory_space<vmem>>, vector<136x8xf32>,
    %cst_60 = arith.constant 0.000000e+00 : f32
    %56 = vector.broadcast %cst_60 : f32 to vector<264x128xf32>
    %c0_61 = arith.constant 0 : index
    %c0_62 = arith.constant 0 : index
    %57 = vector.load %arg14[%c0_61, %c0_62] : memref<264x128xf32, #tpu.memory_space<vmem>>, vector<264x128xf32>
    tpu.vector_store %arg14[%c0_61, %c0_62], %56 {strides = array<i32>} : memref<264x128xf32, #tpu.memory_space<vmem>>, vector<264x128xf32>,
    %c0_63 = arith.constant 0 : index
    %c0_64 = arith.constant 0 : index
    %58 = tpu.strided_load %arg15[%c0_63, %c0_64] {strides = array<i32: 2, 1>} : memref<264x128xf32, #tpu.memory_space<vmem>>, vector<32x8xf32>
    %c1_65 = arith.constant 1 : index
    %c0_66 = arith.constant 0 : index
    %59 = tpu.strided_load %arg15[%c1_65, %c0_66] {strides = array<i32: 2, 1>} : memref<264x128xf32, #tpu.memory_space<vmem>>, vector<32x8xf32>
    %60 = arith.maximumf %58, %59 : vector<32x8xf32>
    %c3_67 = arith.constant 3 : index
    %c0_68 = arith.constant 0 : index
    %61 = vector.load %arg14[%c3_67, %c0_68] : memref<264x128xf32, #tpu.memory_space<vmem>>, vector<32x8xf32>
    tpu.vector_store %arg14[%c3_67, %c0_68], %60 {strides = array<i32>} : memref<264x128xf32, #tpu.memory_space<vmem>>, vector<32x8xf32>,
    %c68 = arith.constant 68 : index
    %c0_69 = arith.constant 0 : index
    %62 = tpu.strided_load %arg15[%c68, %c0_69] {strides = array<i32: 2, 1>} : memref<264x128xf32, #tpu.memory_space<vmem>>, vector<32x8xf32>
    %c69 = arith.constant 69 : index
    %c0_70 = arith.constant 0 : index
    %63 = tpu.strided_load %arg15[%c69, %c0_70] {strides = array<i32: 2, 1>} : memref<264x128xf32, #tpu.memory_space<vmem>>, vector<32x8xf32>
    %64 = arith.maximumf %62, %63 : vector<32x8xf32>
    %c41 = arith.constant 41 : index
    %c0_71 = arith.constant 0 : index
    %65 = vector.load %arg14[%c41, %c0_71] : memref<264x128xf32, #tpu.memory_space<vmem>>, vector<32x8xf32>
    tpu.vector_store %arg14[%c41, %c0_71], %64 {strides = array<i32>} : memref<264x128xf32, #tpu.memory_space<vmem>>, vector<32x8xf32>,
    %c0_72 = arith.constant 0 : index
    %c0_73 = arith.constant 0 : index
    %66 = vector.load %arg14[%c0_72, %c0_73] : memref<264x128xf32, #tpu.memory_space<vmem>>, vector<76x8xf32>
    %c0_74 = arith.constant 0 : index
    %c0_75 = arith.constant 0 : index
    %67 = vector.load %arg4[%c0_74, %c0_75] : memref<56x16xf32, #tpu.memory_space<vmem>>, vector<8x16xf32>
    %cst_76 = arith.constant dense<0.000000e+00> : vector<76x16xf32>
    %68 = tpu.matmul %66, %67, %cst_76 {dimension_numbers = #tpu.dot_dimension_numbers<[1], [0], [0], [1], [0, 0, 1, 1], [], []>} : vector<76x8xf32>, vector<8x16xf32>, vector<76x16xf32> -> vector<76x16xf32>
    %c1_77 = arith.constant 1 : index
    %c0_78 = arith.constant 0 : index
    %69 = vector.load %arg14[%c1_77, %c0_78] : memref<264x128xf32, #tpu.memory_space<vmem>>, vector<76x8xf32>
    %c8_79 = arith.constant 8 : index
    %c0_80 = arith.constant 0 : index
    %70 = vector.load %arg4[%c8_79, %c0_80] : memref<56x16xf32, #tpu.memory_space<vmem>>, vector<8x16xf32>
    %cst_81 = arith.constant dense<0.000000e+00> : vector<76x16xf32>
    %71 = tpu.matmul %69, %70, %cst_81 {dimension_numbers = #tpu.dot_dimension_numbers<[1], [0], [0], [1], [0, 0, 1, 1], [], []>} : vector<76x8xf32>, vector<8x16xf32>, vector<76x16xf32> -> vector<76x16xf32>
    %72 = arith.addf %68, %71 : vector<76x16xf32>
    %c2_82 = arith.constant 2 : index
    %c0_83 = arith.constant 0 : index
    %73 = vector.load %arg14[%c2_82, %c0_83] : memref<264x128xf32, #tpu.memory_space<vmem>>, vector<76x8xf32>
    %c16_84 = arith.constant 16 : index
    %c0_85 = arith.constant 0 : index
    %74 = vector.load %arg4[%c16_84, %c0_85] : memref<56x16xf32, #tpu.memory_space<vmem>>, vector<8x16xf32>
    %cst_86 = arith.constant dense<0.000000e+00> : vector<76x16xf32>
    %75 = tpu.matmul %73, %74, %cst_86 {dimension_numbers = #tpu.dot_dimension_numbers<[1], [0], [0], [1], [0, 0, 1, 1], [], []>} : vector<76x8xf32>, vector<8x16xf32>, vector<76x16xf32> -> vector<76x16xf32>
    %76 = arith.addf %72, %75 : vector<76x16xf32>
    %c3_87 = arith.constant 3 : index
    %c0_88 = arith.constant 0 : index
    %77 = vector.load %arg14[%c3_87, %c0_88] : memref<264x128xf32, #tpu.memory_space<vmem>>, vector<76x8xf32>
    %c24 = arith.constant 24 : index
    %c0_89 = arith.constant 0 : index
    %78 = vector.load %arg4[%c24, %c0_89] : memref<56x16xf32, #tpu.memory_space<vmem>>, vector<8x16xf32>
    %cst_90 = arith.constant dense<0.000000e+00> : vector<76x16xf32>
    %79 = tpu.matmul %77, %78, %cst_90 {dimension_numbers = #tpu.dot_dimension_numbers<[1], [0], [0], [1], [0, 0, 1, 1], [], []>} : vector<76x8xf32>, vector<8x16xf32>, vector<76x16xf32> -> vector<76x16xf32>
    %80 = arith.addf %76, %79 : vector<76x16xf32>
    %c4_91 = arith.constant 4 : index
    %c0_92 = arith.constant 0 : index
    %81 = vector.load %arg14[%c4_91, %c0_92] : memref<264x128xf32, #tpu.memory_space<vmem>>, vector<76x8xf32>
    %c32 = arith.constant 32 : index
    %c0_93 = arith.constant 0 : index
    %82 = vector.load %arg4[%c32, %c0_93] : memref<56x16xf32, #tpu.memory_space<vmem>>, vector<8x16xf32>
    %cst_94 = arith.constant dense<0.000000e+00> : vector<76x16xf32>
    %83 = tpu.matmul %81, %82, %cst_94 {dimension_numbers = #tpu.dot_dimension_numbers<[1], [0], [0], [1], [0, 0, 1, 1], [], []>} : vector<76x8xf32>, vector<8x16xf32>, vector<76x16xf32> -> vector<76x16xf32>
    %84 = arith.addf %80, %83 : vector<76x16xf32>
    %c5 = arith.constant 5 : index
    %c0_95 = arith.constant 0 : index
    %85 = vector.load %arg14[%c5, %c0_95] : memref<264x128xf32, #tpu.memory_space<vmem>>, vector<76x8xf32>
    %c40 = arith.constant 40 : index
    %c0_96 = arith.constant 0 : index
    %86 = vector.load %arg4[%c40, %c0_96] : memref<56x16xf32, #tpu.memory_space<vmem>>, vector<8x16xf32>
    %cst_97 = arith.constant dense<0.000000e+00> : vector<76x16xf32>
    %87 = tpu.matmul %85, %86, %cst_97 {dimension_numbers = #tpu.dot_dimension_numbers<[1], [0], [0], [1], [0, 0, 1, 1], [], []>} : vector<76x8xf32>, vector<8x16xf32>, vector<76x16xf32> -> vector<76x16xf32>
    %88 = arith.addf %84, %87 : vector<76x16xf32>
    %c6 = arith.constant 6 : index
    %c0_98 = arith.constant 0 : index
    %89 = vector.load %arg14[%c6, %c0_98] : memref<264x128xf32, #tpu.memory_space<vmem>>, vector<76x8xf32>
    %c48 = arith.constant 48 : index
    %c0_99 = arith.constant 0 : index
    %90 = vector.load %arg4[%c48, %c0_99] : memref<56x16xf32, #tpu.memory_space<vmem>>, vector<8x16xf32>
    %cst_100 = arith.constant dense<0.000000e+00> : vector<76x16xf32>
    %91 = tpu.matmul %89, %90, %cst_100 {dimension_numbers = #tpu.dot_dimension_numbers<[1], [0], [0], [1], [0, 0, 1, 1], [], []>} : vector<76x8xf32>, vector<8x16xf32>, vector<76x16xf32> -> vector<76x16xf32>
    %92 = arith.addf %88, %91 : vector<76x16xf32>
    %c2_101 = arith.constant 2 : index
    %c0_102 = arith.constant 0 : index
    %93 = vector.load %arg8[%c2_101, %c0_102] : memref<6x128xf32, #tpu.memory_space<vmem>>, vector<1x16xf32>
    %94 = vector.broadcast %93 : vector<1x16xf32> to vector<76x16xf32>
    %95 = arith.addf %92, %94 : vector<76x16xf32>
    %cst_103 = arith.constant 0.000000e+00 : f32
    %96 = vector.broadcast %cst_103 : f32 to vector<76x16xf32>
    %97 = arith.maximumf %95, %96 : vector<76x16xf32>
    %c0_104 = arith.constant 0 : index
    %c0_105 = arith.constant 0 : index
    %98 = vector.load %arg15[%c0_104, %c0_105] : memref<264x128xf32, #tpu.memory_space<vmem>>, vector<76x16xf32>
    tpu.vector_store %arg15[%c0_104, %c0_105], %97 {strides = array<i32>} : memref<264x128xf32, #tpu.memory_space<vmem>>, vector<76x16xf32>,
    %cst_106 = arith.constant 0.000000e+00 : f32
    %99 = vector.broadcast %cst_106 : f32 to vector<264x128xf32>
    %c0_107 = arith.constant 0 : index
    %c0_108 = arith.constant 0 : index
    %100 = vector.load %arg14[%c0_107, %c0_108] : memref<264x128xf32, #tpu.memory_space<vmem>>, vector<264x128xf32>
    tpu.vector_store %arg14[%c0_107, %c0_108], %99 {strides = array<i32>} : memref<264x128xf32, #tpu.memory_space<vmem>>, vector<264x128xf32>,
    %c0_109 = arith.constant 0 : index
    %c0_110 = arith.constant 0 : index
    %101 = tpu.strided_load %arg15[%c0_109, %c0_110] {strides = array<i32: 2, 1>} : memref<264x128xf32, #tpu.memory_space<vmem>>, vector<16x16xf32>
    %c1_111 = arith.constant 1 : index
    %c0_112 = arith.constant 0 : index
    %102 = tpu.strided_load %arg15[%c1_111, %c0_112] {strides = array<i32: 2, 1>} : memref<264x128xf32, #tpu.memory_space<vmem>>, vector<16x16xf32>
    %103 = arith.maximumf %101, %102 : vector<16x16xf32>
    %c4_113 = arith.constant 4 : index
    %c0_114 = arith.constant 0 : index
    %104 = vector.load %arg14[%c4_113, %c0_114] : memref<264x128xf32, #tpu.memory_space<vmem>>, vector<16x16xf32>
    tpu.vector_store %arg14[%c4_113, %c0_114], %103 {strides = array<i32>} : memref<264x128xf32, #tpu.memory_space<vmem>>, vector<16x16xf32>,
    %c38 = arith.constant 38 : index
    %c0_115 = arith.constant 0 : index
    %105 = tpu.strided_load %arg15[%c38, %c0_115] {strides = array<i32: 2, 1>} : memref<264x128xf32, #tpu.memory_space<vmem>>, vector<16x16xf32>
    %c39 = arith.constant 39 : index
    %c0_116 = arith.constant 0 : index
    %106 = tpu.strided_load %arg15[%c39, %c0_116] {strides = array<i32: 2, 1>} : memref<264x128xf32, #tpu.memory_space<vmem>>, vector<16x16xf32>
    %107 = arith.maximumf %105, %106 : vector<16x16xf32>
    %c28 = arith.constant 28 : index
    %c0_117 = arith.constant 0 : index
    %108 = vector.load %arg14[%c28, %c0_117] : memref<264x128xf32, #tpu.memory_space<vmem>>, vector<16x16xf32>
    tpu.vector_store %arg14[%c28, %c0_117], %107 {strides = array<i32>} : memref<264x128xf32, #tpu.memory_space<vmem>>, vector<16x16xf32>,
    %c0_118 = arith.constant 0 : index
    %c0_119 = arith.constant 0 : index
    %109 = vector.load %arg14[%c0_118, %c0_119] : memref<264x128xf32, #tpu.memory_space<vmem>>, vector<48x16xf32>
    %c1_120 = arith.constant 1 : index
    %c0_121 = arith.constant 0 : index
    %110 = vector.load %arg14[%c1_120, %c0_121] : memref<264x128xf32, #tpu.memory_space<vmem>>, vector<48x16xf32>
    %c2_122 = arith.constant 2 : index
    %c0_123 = arith.constant 0 : index
    %111 = vector.load %arg14[%c2_122, %c0_123] : memref<264x128xf32, #tpu.memory_space<vmem>>, vector<48x16xf32>
    %c3_124 = arith.constant 3 : index
    %c0_125 = arith.constant 0 : index
    %112 = vector.load %arg14[%c3_124, %c0_125] : memref<264x128xf32, #tpu.memory_space<vmem>>, vector<48x16xf32>
    %c4_126 = arith.constant 4 : index
    %c0_127 = arith.constant 0 : index
    %113 = vector.load %arg14[%c4_126, %c0_127] : memref<264x128xf32, #tpu.memory_space<vmem>>, vector<48x16xf32>
    %c5_128 = arith.constant 5 : index
    %c0_129 = arith.constant 0 : index
    %114 = vector.load %arg14[%c5_128, %c0_129] : memref<264x128xf32, #tpu.memory_space<vmem>>, vector<48x16xf32>
    %c6_130 = arith.constant 6 : index
    %c0_131 = arith.constant 0 : index
    %115 = vector.load %arg14[%c6_130, %c0_131] : memref<264x128xf32, #tpu.memory_space<vmem>>, vector<48x16xf32>
    %c7 = arith.constant 7 : index
    %c0_132 = arith.constant 0 : index
    %116 = vector.load %arg14[%c7, %c0_132] : memref<264x128xf32, #tpu.memory_space<vmem>>, vector<48x16xf32>
    %c8_133 = arith.constant 8 : index
    %c0_134 = arith.constant 0 : index
    %117 = vector.load %arg14[%c8_133, %c0_134] : memref<264x128xf32, #tpu.memory_space<vmem>>, vector<48x16xf32>
    %118 = tpu.concatenate %109, %110, %111, %112, %113, %114, %115, %116, %117 in 1 : vector<48x16xf32>, vector<48x16xf32>, vector<48x16xf32>, vector<48x16xf32>, vector<48x16xf32>, vector<48x16xf32>, vector<48x16xf32>, vector<48x16xf32>, vector<48x16xf32> -> vector<48x144xf32>
    %c0_135 = arith.constant 0 : index
    %c0_136 = arith.constant 0 : index
    %119 = vector.load %arg5[%c0_135, %c0_136] : memref<144x32xf32, #tpu.memory_space<vmem>>, vector<144x32xf32>
    %cst_137 = arith.constant dense<0.000000e+00> : vector<48x32xf32>
    %120 = tpu.matmul %118, %119, %cst_137 {dimension_numbers = #tpu.dot_dimension_numbers<[1], [0], [0], [1], [0, 0, 1, 1], [], []>} : vector<48x144xf32>, vector<144x32xf32>, vector<48x32xf32> -> vector<48x32xf32>
    %c3_138 = arith.constant 3 : index
    %c0_139 = arith.constant 0 : index
    %121 = vector.load %arg8[%c3_138, %c0_139] : memref<6x128xf32, #tpu.memory_space<vmem>>, vector<1x32xf32>
    %122 = vector.broadcast %121 : vector<1x32xf32> to vector<48x32xf32>
    %123 = arith.addf %120, %122 : vector<48x32xf32>
    %cst_140 = arith.constant 0.000000e+00 : f32
    %124 = vector.broadcast %cst_140 : f32 to vector<48x32xf32>
    %125 = arith.maximumf %123, %124 : vector<48x32xf32>
    %c0_141 = arith.constant 0 : index
    %c0_142 = arith.constant 0 : index
    %126 = vector.load %arg15[%c0_141, %c0_142] : memref<264x128xf32, #tpu.memory_space<vmem>>, vector<48x32xf32>
    tpu.vector_store %arg15[%c0_141, %c0_142], %125 {strides = array<i32>} : memref<264x128xf32, #tpu.memory_space<vmem>>, vector<48x32xf32>,
    %cst_143 = arith.constant 0.000000e+00 : f32
    %127 = vector.broadcast %cst_143 : f32 to vector<264x128xf32>
    %c0_144 = arith.constant 0 : index
    %c0_145 = arith.constant 0 : index
    %128 = vector.load %arg14[%c0_144, %c0_145] : memref<264x128xf32, #tpu.memory_space<vmem>>, vector<264x128xf32>
    tpu.vector_store %arg14[%c0_144, %c0_145], %127 {strides = array<i32>} : memref<264x128xf32, #tpu.memory_space<vmem>>, vector<264x128xf32>,
    %c0_146 = arith.constant 0 : index
    %c0_147 = arith.constant 0 : index
    %129 = tpu.strided_load %arg15[%c0_146, %c0_147] {strides = array<i32: 2, 1>} : memref<264x128xf32, #tpu.memory_space<vmem>>, vector<8x32xf32>
    %c1_148 = arith.constant 1 : index
    %c0_149 = arith.constant 0 : index
    %130 = tpu.strided_load %arg15[%c1_148, %c0_149] {strides = array<i32: 2, 1>} : memref<264x128xf32, #tpu.memory_space<vmem>>, vector<8x32xf32>
    %131 = arith.maximumf %129, %130 : vector<8x32xf32>
    %c5_150 = arith.constant 5 : index
    %c0_151 = arith.constant 0 : index
    %132 = vector.load %arg14[%c5_150, %c0_151] : memref<264x128xf32, #tpu.memory_space<vmem>>, vector<8x32xf32>
    tpu.vector_store %arg14[%c5_150, %c0_151], %131 {strides = array<i32>} : memref<264x128xf32, #tpu.memory_space<vmem>>, vector<8x32xf32>,
    %c24_152 = arith.constant 24 : index
    %c0_153 = arith.constant 0 : index
    %133 = tpu.strided_load %arg15[%c24_152, %c0_153] {strides = array<i32: 2, 1>} : memref<264x128xf32, #tpu.memory_space<vmem>>, vector<8x32xf32>
    %c25 = arith.constant 25 : index
    %c0_154 = arith.constant 0 : index
    %134 = tpu.strided_load %arg15[%c25, %c0_154] {strides = array<i32: 2, 1>} : memref<264x128xf32, #tpu.memory_space<vmem>>, vector<8x32xf32>
    %135 = arith.maximumf %133, %134 : vector<8x32xf32>
    %c23 = arith.constant 23 : index
    %c0_155 = arith.constant 0 : index
    %136 = vector.load %arg14[%c23, %c0_155] : memref<264x128xf32, #tpu.memory_space<vmem>>, vector<8x32xf32>
    tpu.vector_store %arg14[%c23, %c0_155], %135 {strides = array<i32>} : memref<264x128xf32, #tpu.memory_space<vmem>>, vector<8x32xf32>,
    %c0_156 = arith.constant 0 : index
    %c0_157 = arith.constant 0 : index
    %137 = vector.load %arg14[%c0_156, %c0_157] : memref<264x128xf32, #tpu.memory_space<vmem>>, vector<36x32xf32>
    %c1_158 = arith.constant 1 : index
    %c0_159 = arith.constant 0 : index
    %138 = vector.load %arg14[%c1_158, %c0_159] : memref<264x128xf32, #tpu.memory_space<vmem>>, vector<36x32xf32>
    %c2_160 = arith.constant 2 : index
    %c0_161 = arith.constant 0 : index
    %139 = vector.load %arg14[%c2_160, %c0_161] : memref<264x128xf32, #tpu.memory_space<vmem>>, vector<36x32xf32>
    %c3_162 = arith.constant 3 : index
    %c0_163 = arith.constant 0 : index
    %140 = vector.load %arg14[%c3_162, %c0_163] : memref<264x128xf32, #tpu.memory_space<vmem>>, vector<36x32xf32>
    %c4_164 = arith.constant 4 : index
    %c0_165 = arith.constant 0 : index
    %141 = vector.load %arg14[%c4_164, %c0_165] : memref<264x128xf32, #tpu.memory_space<vmem>>, vector<36x32xf32>
    %c5_166 = arith.constant 5 : index
    %c0_167 = arith.constant 0 : index
    %142 = vector.load %arg14[%c5_166, %c0_167] : memref<264x128xf32, #tpu.memory_space<vmem>>, vector<36x32xf32>
    %c6_168 = arith.constant 6 : index
    %c0_169 = arith.constant 0 : index
    %143 = vector.load %arg14[%c6_168, %c0_169] : memref<264x128xf32, #tpu.memory_space<vmem>>, vector<36x32xf32>
    %c7_170 = arith.constant 7 : index
    %c0_171 = arith.constant 0 : index
    %144 = vector.load %arg14[%c7_170, %c0_171] : memref<264x128xf32, #tpu.memory_space<vmem>>, vector<36x32xf32>
    %c8_172 = arith.constant 8 : index
    %c0_173 = arith.constant 0 : index
    %145 = vector.load %arg14[%c8_172, %c0_173] : memref<264x128xf32, #tpu.memory_space<vmem>>, vector<36x32xf32>
    %c9 = arith.constant 9 : index
    %c0_174 = arith.constant 0 : index
    %146 = vector.load %arg14[%c9, %c0_174] : memref<264x128xf32, #tpu.memory_space<vmem>>, vector<36x32xf32>
    %c10 = arith.constant 10 : index
    %c0_175 = arith.constant 0 : index
    %147 = vector.load %arg14[%c10, %c0_175] : memref<264x128xf32, #tpu.memory_space<vmem>>, vector<36x32xf32>
    %148 = tpu.concatenate %137, %138, %139, %140, %141, %142, %143, %144, %145, %146, %147 in 1 : vector<36x32xf32>, vector<36x32xf32>, vector<36x32xf32>, vector<36x32xf32>, vector<36x32xf32>, vector<36x32xf32>, vector<36x32xf32>, vector<36x32xf32>, vector<36x32xf32>, vector<36x32xf32>, vector<36x32xf32> -> vector<36x352xf32>
    %c0_176 = arith.constant 0 : index
    %c0_177 = arith.constant 0 : index
    %149 = vector.load %arg6[%c0_176, %c0_177] : memref<352x64xf32, #tpu.memory_space<vmem>>, vector<352x64xf32>
    %cst_178 = arith.constant dense<0.000000e+00> : vector<36x64xf32>
    %150 = tpu.matmul %148, %149, %cst_178 {dimension_numbers = #tpu.dot_dimension_numbers<[1], [0], [0], [1], [0, 0, 1, 1], [], []>} : vector<36x352xf32>, vector<352x64xf32>, vector<36x64xf32> -> vector<36x64xf32>
    %c4_179 = arith.constant 4 : index
    %c0_180 = arith.constant 0 : index
    %151 = vector.load %arg8[%c4_179, %c0_180] : memref<6x128xf32, #tpu.memory_space<vmem>>, vector<1x64xf32>
    %152 = vector.broadcast %151 : vector<1x64xf32> to vector<36x64xf32>
    %153 = arith.addf %150, %152 : vector<36x64xf32>
    %cst_181 = arith.constant 0.000000e+00 : f32
    %154 = vector.broadcast %cst_181 : f32 to vector<36x64xf32>
    %155 = arith.maximumf %153, %154 : vector<36x64xf32>
    %c0_182 = arith.constant 0 : index
    %c0_183 = arith.constant 0 : index
    %156 = vector.load %arg15[%c0_182, %c0_183] : memref<264x128xf32, #tpu.memory_space<vmem>>, vector<36x64xf32>
    tpu.vector_store %arg15[%c0_182, %c0_183], %155 {strides = array<i32>} : memref<264x128xf32, #tpu.memory_space<vmem>>, vector<36x64xf32>,
    %cst_184 = arith.constant 0.000000e+00 : f32
    %157 = vector.broadcast %cst_184 : f32 to vector<264x128xf32>
    %c0_185 = arith.constant 0 : index
    %c0_186 = arith.constant 0 : index
    %158 = vector.load %arg14[%c0_185, %c0_186] : memref<264x128xf32, #tpu.memory_space<vmem>>, vector<264x128xf32>
    tpu.vector_store %arg14[%c0_185, %c0_186], %157 {strides = array<i32>} : memref<264x128xf32, #tpu.memory_space<vmem>>, vector<264x128xf32>,
    %c0_187 = arith.constant 0 : index
    %c0_188 = arith.constant 0 : index
    %159 = tpu.strided_load %arg15[%c0_187, %c0_188] {strides = array<i32: 2, 1>} : memref<264x128xf32, #tpu.memory_space<vmem>>, vector<4x64xf32>
    %c1_189 = arith.constant 1 : index
    %c0_190 = arith.constant 0 : index
    %160 = tpu.strided_load %arg15[%c1_189, %c0_190] {strides = array<i32: 2, 1>} : memref<264x128xf32, #tpu.memory_space<vmem>>, vector<4x64xf32>
    %161 = arith.maximumf %159, %160 : vector<4x64xf32>
    %c6_191 = arith.constant 6 : index
    %c0_192 = arith.constant 0 : index
    %162 = vector.load %arg14[%c6_191, %c0_192] : memref<264x128xf32, #tpu.memory_space<vmem>>, vector<4x64xf32>
    tpu.vector_store %arg14[%c6_191, %c0_192], %161 {strides = array<i32>} : memref<264x128xf32, #tpu.memory_space<vmem>>, vector<4x64xf32>,
    %c18 = arith.constant 18 : index
    %c0_193 = arith.constant 0 : index
    %163 = tpu.strided_load %arg15[%c18, %c0_193] {strides = array<i32: 2, 1>} : memref<264x128xf32, #tpu.memory_space<vmem>>, vector<4x64xf32>
    %c19 = arith.constant 19 : index
    %c0_194 = arith.constant 0 : index
    %164 = tpu.strided_load %arg15[%c19, %c0_194] {strides = array<i32: 2, 1>} : memref<264x128xf32, #tpu.memory_space<vmem>>, vector<4x64xf32>
    %165 = arith.maximumf %163, %164 : vector<4x64xf32>
    %c22 = arith.constant 22 : index
    %c0_195 = arith.constant 0 : index
    %166 = vector.load %arg14[%c22, %c0_195] : memref<264x128xf32, #tpu.memory_space<vmem>>, vector<4x64xf32>
    tpu.vector_store %arg14[%c22, %c0_195], %165 {strides = array<i32>} : memref<264x128xf32, #tpu.memory_space<vmem>>, vector<4x64xf32>,
    %c0_196 = arith.constant 0 : index
    %c0_197 = arith.constant 0 : index
    %167 = vector.load %arg14[%c0_196, %c0_197] : memref<264x128xf32, #tpu.memory_space<vmem>>, vector<32x64xf32>
    %c1_198 = arith.constant 1 : index
    %c0_199 = arith.constant 0 : index
    %168 = vector.load %arg14[%c1_198, %c0_199] : memref<264x128xf32, #tpu.memory_space<vmem>>, vector<32x64xf32>
    %c2_200 = arith.constant 2 : index
    %c0_201 = arith.constant 0 : index
    %169 = vector.load %arg14[%c2_200, %c0_201] : memref<264x128xf32, #tpu.memory_space<vmem>>, vector<32x64xf32>
    %c3_202 = arith.constant 3 : index
    %c0_203 = arith.constant 0 : index
    %170 = vector.load %arg14[%c3_202, %c0_203] : memref<264x128xf32, #tpu.memory_space<vmem>>, vector<32x64xf32>
    %c4_204 = arith.constant 4 : index
    %c0_205 = arith.constant 0 : index
    %171 = vector.load %arg14[%c4_204, %c0_205] : memref<264x128xf32, #tpu.memory_space<vmem>>, vector<32x64xf32>
    %c5_206 = arith.constant 5 : index
    %c0_207 = arith.constant 0 : index
    %172 = vector.load %arg14[%c5_206, %c0_207] : memref<264x128xf32, #tpu.memory_space<vmem>>, vector<32x64xf32>
    %c6_208 = arith.constant 6 : index
    %c0_209 = arith.constant 0 : index
    %173 = vector.load %arg14[%c6_208, %c0_209] : memref<264x128xf32, #tpu.memory_space<vmem>>, vector<32x64xf32>
    %c7_210 = arith.constant 7 : index
    %c0_211 = arith.constant 0 : index
    %174 = vector.load %arg14[%c7_210, %c0_211] : memref<264x128xf32, #tpu.memory_space<vmem>>, vector<32x64xf32>
    %c8_212 = arith.constant 8 : index
    %c0_213 = arith.constant 0 : index
    %175 = vector.load %arg14[%c8_212, %c0_213] : memref<264x128xf32, #tpu.memory_space<vmem>>, vector<32x64xf32>
    %c9_214 = arith.constant 9 : index
    %c0_215 = arith.constant 0 : index
    %176 = vector.load %arg14[%c9_214, %c0_215] : memref<264x128xf32, #tpu.memory_space<vmem>>, vector<32x64xf32>
    %c10_216 = arith.constant 10 : index
    %c0_217 = arith.constant 0 : index
    %177 = vector.load %arg14[%c10_216, %c0_217] : memref<264x128xf32, #tpu.memory_space<vmem>>, vector<32x64xf32>
    %c11 = arith.constant 11 : index
    %c0_218 = arith.constant 0 : index
    %178 = vector.load %arg14[%c11, %c0_218] : memref<264x128xf32, #tpu.memory_space<vmem>>, vector<32x64xf32>
    %c12_219 = arith.constant 12 : index
    %c0_220 = arith.constant 0 : index
    %179 = vector.load %arg14[%c12_219, %c0_220] : memref<264x128xf32, #tpu.memory_space<vmem>>, vector<32x64xf32>
    %180 = tpu.concatenate %167, %168, %169, %170, %171, %172, %173, %174, %175, %176, %177, %178, %179 in 1 : vector<32x64xf32>, vector<32x64xf32>, vector<32x64xf32>, vector<32x64xf32>, vector<32x64xf32>, vector<32x64xf32>, vector<32x64xf32>, vector<32x64xf32>, vector<32x64xf32>, vector<32x64xf32>, vector<32x64xf32>, vector<32x64xf32>, vector<32x64xf32> -> vector<32x832xf32>
    %c0_221 = arith.constant 0 : index
    %c0_222 = arith.constant 0 : index
    %181 = vector.load %arg7[%c0_221, %c0_222] : memref<832x128xf32, #tpu.memory_space<vmem>>, vector<832x128xf32>
    %cst_223 = arith.constant dense<0.000000e+00> : vector<32x128xf32>
    %182 = tpu.matmul %180, %181, %cst_223 {dimension_numbers = #tpu.dot_dimension_numbers<[1], [0], [0], [1], [0, 0, 1, 1], [], []>} : vector<32x832xf32>, vector<832x128xf32>, vector<32x128xf32> -> vector<32x128xf32>
    %c5_224 = arith.constant 5 : index
    %c0_225 = arith.constant 0 : index
    %183 = vector.load %arg8[%c5_224, %c0_225] : memref<6x128xf32, #tpu.memory_space<vmem>>, vector<1x128xf32>
    %184 = vector.broadcast %183 : vector<1x128xf32> to vector<32x128xf32>
    %185 = arith.addf %182, %184 : vector<32x128xf32>
    %cst_226 = arith.constant 0.000000e+00 : f32
    %186 = vector.broadcast %cst_226 : f32 to vector<32x128xf32>
    %187 = arith.maximumf %185, %186 : vector<32x128xf32>
    %c0_227 = arith.constant 0 : index
    %c0_228 = arith.constant 0 : index
    %188 = vector.load %arg15[%c0_227, %c0_228] : memref<264x128xf32, #tpu.memory_space<vmem>>, vector<32x128xf32>
    tpu.vector_store %arg15[%c0_227, %c0_228], %187 {strides = array<i32>} : memref<264x128xf32, #tpu.memory_space<vmem>>, vector<32x128xf32>,
    %c0_229 = arith.constant 0 : index
    %c0_230 = arith.constant 0 : index
    %189 = tpu.strided_load %arg15[%c0_229, %c0_230] {strides = array<i32: 2, 1>} : memref<264x128xf32, #tpu.memory_space<vmem>>, vector<2x128xf32>
    %c1_231 = arith.constant 1 : index
    %c0_232 = arith.constant 0 : index
    %190 = tpu.strided_load %arg15[%c1_231, %c0_232] {strides = array<i32: 2, 1>} : memref<264x128xf32, #tpu.memory_space<vmem>>, vector<2x128xf32>
    %191 = arith.maximumf %189, %190 : vector<2x128xf32>
    %192 = vector.extract_strided_slice %191 {offsets = [0, 0], sizes = [1, 128], strides = [1, 1]} : vector<2x128xf32> to vector<1x128xf32>
    %193 = vector.extract_strided_slice %191 {offsets = [1, 0], sizes = [1, 128], strides = [1, 1]} : vector<2x128xf32> to vector<1x128xf32>
    %194 = tpu.concatenate %192, %193 in 1 : vector<1x128xf32>, vector<1x128xf32> -> vector<1x256xf32>
    %c16_233 = arith.constant 16 : index
    %c0_234 = arith.constant 0 : index
    %195 = tpu.strided_load %arg15[%c16_233, %c0_234] {strides = array<i32: 2, 1>} : memref<264x128xf32, #tpu.memory_space<vmem>>, vector<2x128xf32>
    %c17 = arith.constant 17 : index
    %c0_235 = arith.constant 0 : index
    %196 = tpu.strided_load %arg15[%c17, %c0_235] {strides = array<i32: 2, 1>} : memref<264x128xf32, #tpu.memory_space<vmem>>, vector<2x128xf32>
    %197 = arith.maximumf %195, %196 : vector<2x128xf32>
    %198 = vector.extract_strided_slice %197 {offsets = [0, 0], sizes = [1, 128], strides = [1, 1]} : vector<2x128xf32> to vector<1x128xf32>
    %199 = vector.extract_strided_slice %197 {offsets = [1, 0], sizes = [1, 128], strides = [1, 1]} : vector<2x128xf32> to vector<1x128xf32>
    %200 = tpu.concatenate %198, %199 in 1 : vector<1x128xf32>, vector<1x128xf32> -> vector<1x256xf32>
    %201 = tpu.concatenate %194, %200 in 0 : vector<1x256xf32>, vector<1x256xf32> -> vector<2x256xf32>
    %c0_236 = arith.constant 0 : index
    %c0_237 = arith.constant 0 : index
    %202 = vector.load %arg9[%c0_236, %c0_237] : memref<256x128xf32, #tpu.memory_space<vmem>>, vector<256x128xf32>
    %cst_238 = arith.constant dense<0.000000e+00> : vector<2x128xf32>
    %203 = tpu.matmul %201, %202, %cst_238 {dimension_numbers = #tpu.dot_dimension_numbers<[1], [0], [0], [1], [0, 0, 1, 1], [], []>} : vector<2x256xf32>, vector<256x128xf32>, vector<2x128xf32> -> vector<2x128xf32>
    %c0_239 = arith.constant 0 : index
    %c0_240 = arith.constant 0 : index
    %204 = vector.load %arg10[%c0_239, %c0_240] : memref<1x128xf32, #tpu.memory_space<vmem>>, vector<1x128xf32>
    %205 = vector.broadcast %204 : vector<1x128xf32> to vector<2x128xf32>
    %206 = arith.addf %203, %205 : vector<2x128xf32>
    %cst_241 = arith.constant 0.000000e+00 : f32
    %207 = vector.broadcast %cst_241 : f32 to vector<2x128xf32>
    %208 = arith.maximumf %206, %207 : vector<2x128xf32>
    %c0_242 = arith.constant 0 : index
    %c0_243 = arith.constant 0 : index
    %209 = vector.load %arg11[%c0_242, %c0_243] : memref<128x128xf32, #tpu.memory_space<vmem>>, vector<128x128xf32>
    %cst_244 = arith.constant dense<0.000000e+00> : vector<2x128xf32>
    %210 = tpu.matmul %208, %209, %cst_244 {dimension_numbers = #tpu.dot_dimension_numbers<[1], [0], [0], [1], [0, 0, 1, 1], [], []>} : vector<2x128xf32>, vector<128x128xf32>, vector<2x128xf32> -> vector<2x128xf32>
    %c0_245 = arith.constant 0 : index
    %c0_246 = arith.constant 0 : index
    %211 = vector.load %arg12[%c0_245, %c0_246] : memref<1x128xf32, #tpu.memory_space<vmem>>, vector<1x128xf32>
    %212 = vector.broadcast %211 : vector<1x128xf32> to vector<2x128xf32>
    %213 = arith.addf %210, %212 : vector<2x128xf32>
    %cst_247 = arith.constant 0.000000e+00 : f32
    %214 = vector.broadcast %cst_247 : f32 to vector<2x128xf32>
    %215 = arith.subf %214, %213 : vector<2x128xf32>
    %216 = math.exp %215 : vector<2x128xf32>
    %cst_248 = arith.constant 1.000000e+00 : f32
    %217 = vector.broadcast %cst_248 : f32 to vector<2x128xf32>
    %218 = arith.addf %217, %216 : vector<2x128xf32>
    %cst_249 = arith.constant 1.000000e+00 : f32
    %219 = vector.broadcast %cst_249 : f32 to vector<2x128xf32>
    %220 = arith.divf %219, %218 : vector<2x128xf32>
    %c0_250 = arith.constant 0 : index
    %c0_251 = arith.constant 0 : index
    %221 = vector.load %arg13[%c0_250, %c0_251] : memref<2x128xf32, #tpu.memory_space<vmem>>, vector<2x128xf32>
    tpu.vector_store %arg13[%c0_250, %c0_251], %220 {strides = array<i32>} : memref<2x128xf32, #tpu.memory_space<vmem>>, vector<2x128xf32>,
    return
  }
  func.func @transform_0(%arg0: i32) -> (i32, i32) {
    %c0_i32 = arith.constant 0 : i32
    %c0_i32_0 = arith.constant 0 : i32
    return %arg0, %c0_i32 : i32, i32
  }
  func.func @transform_1(%arg0: i32) -> (i32, i32) {
    %c0_i32 = arith.constant 0 : i32
    %c0_i32_0 = arith.constant 0 : i32
    %c0_i32_1 = arith.constant 0 : i32
    return %c0_i32, %c0_i32_0 : i32, i32
  }
  func.func @transform_2(%arg0: i32) -> (i32, i32) {
    %c0_i32 = arith.constant 0 : i32
    %c0_i32_0 = arith.constant 0 : i32
    %c0_i32_1 = arith.constant 0 : i32
    return %c0_i32, %c0_i32_0 : i32, i32
  }
  func.func @transform_3(%arg0: i32) -> (i32, i32) {
    %c0_i32 = arith.constant 0 : i32
    %c0_i32_0 = arith.constant 0 : i32
    %c0_i32_1 = arith.constant 0 : i32
    return %c0_i32, %c0_i32_0 : i32, i32
  }
  func.func @transform_4(%arg0: i32) -> (i32, i32) {
    %c0_i32 = arith.constant 0 : i32
    %c0_i32_0 = arith.constant 0 : i32
    %c0_i32_1 = arith.constant 0 : i32
    return %c0_i32, %c0_i32_0 : i32, i32
  }
  func.func @transform_5(%arg0: i32) -> (i32, i32) {
    %c0_i32 = arith.constant 0 : i32
    %c0_i32_0 = arith.constant 0 : i32
    %c0_i32_1 = arith.constant 0 : i32
    return %c0_i32, %c0_i32_0 : i32, i32
  }
  func.func @transform_6(%arg0: i32) -> (i32, i32) {
    %c0_i32 = arith.constant 0 : i32
    %c0_i32_0 = arith.constant 0 : i32
    %c0_i32_1 = arith.constant 0 : i32
    return %c0_i32, %c0_i32_0 : i32, i32
  }
  func.func @transform_7(%arg0: i32) -> (i32, i32) {
    %c0_i32 = arith.constant 0 : i32
    %c0_i32_0 = arith.constant 0 : i32
    %c0_i32_1 = arith.constant 0 : i32
    return %c0_i32, %c0_i32_0 : i32, i32
  }
  func.func @transform_8(%arg0: i32) -> (i32, i32) {
    %c0_i32 = arith.constant 0 : i32
    %c0_i32_0 = arith.constant 0 : i32
    %c0_i32_1 = arith.constant 0 : i32
    return %c0_i32, %c0_i32_0 : i32, i32
  }
  func.func @transform_9(%arg0: i32) -> (i32, i32) {
    %c0_i32 = arith.constant 0 : i32
    %c0_i32_0 = arith.constant 0 : i32
    %c0_i32_1 = arith.constant 0 : i32
    return %c0_i32, %c0_i32_0 : i32, i32
  }
  func.func @transform_10(%arg0: i32) -> (i32, i32) {
    %c0_i32 = arith.constant 0 : i32
    %c0_i32_0 = arith.constant 0 : i32
    %c0_i32_1 = arith.constant 0 : i32
    return %c0_i32, %c0_i32_0 : i32, i32
  }
  func.func @transform_11(%arg0: i32) -> (i32, i32) {
    %c0_i32 = arith.constant 0 : i32
    %c0_i32_0 = arith.constant 0 : i32
    %c0_i32_1 = arith.constant 0 : i32
    return %c0_i32, %c0_i32_0 : i32, i32
  }
  func.func @transform_12(%arg0: i32) -> (i32, i32) {
    %c0_i32 = arith.constant 0 : i32
    %c0_i32_0 = arith.constant 0 : i32
    return %arg0, %c0_i32 : i32, i32
  }
}

</mosaic_0001>

<bundles_post_ra>
// kernel: tpu_custom_call.1
= control target key start
LH: loop header
LB: loop body
LE: loop exit
PB: predicated region body
PF: predicated region fallthrough
CT: control target
= control target key end

     0   :  { %17 = vsyncpa [#allocation5], 0  ;;  %s10755_s0 = inlined_call_operand.vmem [shape: f32[260,2], index: 0, kind: input, shape index: {}]   ;;  %s10756_s1 = inlined_call_operand.vmem [shape: f32[6,4], index: 1, kind: input, shape index: {}]   ;;  %s10757_s2 = inlined_call_operand.vmem [shape: f32[20,8], index: 2, kind: input, shape index: {}]   ;;  %s10758_s3 = inlined_call_operand.vmem [shape: f32[56,16], index: 3, kind: input, shape index: {}]   ;;  %s10759_s4 = inlined_call_operand.vmem [shape: f32[144,32], index: 4, kind: input, shape index: {}]   ;;  %s10760_s5 = inlined_call_operand.vmem [shape: f32[352,64], index: 5, kind: input, shape index: {}]   ;;  %s10761_s6 = inlined_call_operand.vmem [shape: f32[832,128], index: 6, kind: input, shape index: {}]   ;;  %s10762_s7 = inlined_call_operand.vmem [shape: f32[6,128], index: 7, kind: input, shape index: {}]   ;;  %s10763_s8 = inlined_call_operand.vmem [shape: f32[256,128], index: 8, kind: input, shape index: {}]   ;;  %s10764_s9 = inlined_call_operand.vmem [shape: f32[1,128], index: 9, kind: input, shape index: {}]   ;;  %s10765_s10 = inlined_call_operand.hbm [shape: f32[128,128], index: 10, kind: input, shape index: {}]   ;;  %s10766_s11 = inlined_call_operand.vmem [shape: f32[1,128], index: 11, kind: input, shape index: {}]   ;;  %s10767_s12 = inlined_call_operand.hbm [shape: f32[2,128], index: 12, kind: output, shape index: {}]  }
   0x1   :  { %18 = vsyncpa [#allocation6], 0  ;;  %s7692_s21 = smov [#allocation4]  }
   0x2   :  { %s44_s22 = sshll.u32 %s7692_s21, 4  ;;  %s45_s22 = int_to_ptr.vmem [resolvable:$true] %s44_s22 }
   0x3   :  { %s7656_s23 = scalar_lea.vmem %s45_s22, 2048  ;;  %p7661_p1 = scmp.lt.s32.totalorder %s45_s22, %s45_s22 }
   0x4   :  { %p7657_p0 = scmp.ne.s32.totalorder %s45_s22, %s7656_s23  ;;  %p7662_p2 = scmp.lt.s32.totalorder %s7656_s23, %s7656_s23 }
   0x6   :  { %p7663_p3 = por %p7662_p2, %p7661_p1 }
   0x8   :  { %p7664_p4 = pnand %p7663_p3, %p7657_p0 }
   0xa   :  { %7667 = shalt.err (!%p7664_p4)
}
   0xb   :  { %s7693_s24 = smov 128   ;;  %s7694_s25 = smov 8  }
   0xc   :  { %50 = dma.hbm_to_vmem [thread:$0]  %s10765_s10, 2048, %s45_s22, [#allocation5], %s7693_s24, %s7693_s24, %s7694_s25  }
   0xd   :  { %7688 = dma.done.wait [#allocation5], 2048  }
   0xe   :  { %7689 = vsyncadd [#allocation5], 4294965248  ;;  %v7695_v0 = vmov 0.0   ;;  %vm7696_vm0 = vmmov 0   ;;  %vm324_vm1 = vcmask 1041408   ;;  %vm122_vm2 = vcmask 15360  }
   0xf   :  { %6671 = vmatprep.subr.mxu0 %v7695_v0  ;;  %56 = vst [vmem:[#allocation2] sm:$0xff] %v7695_v0  ;;  %57 = vst [vmem:[#allocation2 + $0x8] sm:$0xff] %v7695_v0  ;;  %7454 = vmatprep.subr.mxu1 %v7695_v0  ;;  %vm155_vm3 = vcmask 11264   ;;  %v224_v1 = vld [vmem:[%s10756_s1 + $0x2] sm:$0x3]  ;;  %v90_v3 = vld [vmem:[%s10755_s0 + $0x8] sm:$0xff] }
  0x10   :  { %58 = vst [vmem:[#allocation2 + $0x10] sm:$0xff] %v7695_v0  ;;  %59 = vst [vmem:[#allocation2 + $0x18] sm:$0xff] %v7695_v0  ;;  %6673 = vmatprep.mubr.msk.f32.mxu0 %vm7696_vm0, %v7695_v0  ;;  %6769 = vmatprep.mubr.msk.f32.mxu1 %vm7696_vm0, %v7695_v0  ;;  %v89_v2 = vld [vmem:[%s10755_s0] sm:$0xff]  ;;  %v91_v5 = vld [vmem:[%s10755_s0 + $0x10] sm:$0xff]  ;;  %vm1610_vm4 = vcmask 1043456   ;;  %vm1360_vm5 = vcmask 31744  }
  0x11   :  { %60 = vst [vmem:[#allocation2 + $0x20] sm:$0xff] %v7695_v0  ;;  %61 = vst [vmem:[#allocation2 + $0x28] sm:$0xff] %v7695_v0  ;;  %6672 = vmatpush3.msk.msra.mxu0 %vm324_vm1, %v224_v1  ;;  %7455 = vmatpush3.msk.msra.mxu1 %vm324_vm1, %v224_v1  ;;  %v121_v4 = vld [vmem:[%s10755_s0 + $0x100] sm:$0xf]  ;;  %v92_v6 = vld [vmem:[%s10755_s0 + $0x18] sm:$0xff]  ;;  %vm1393_vm6 = vcmask 27648  }
  0x12   :  { %62 = vst [vmem:[#allocation2 + $0x30] sm:$0xff] %v7695_v0  ;;  %63 = vst [vmem:[#allocation2 + $0x38] sm:$0xff] %v7695_v0  ;;  %6873 = vmatprep.subr.mxu0 %v7695_v0  ;;  %6772 = vmatprep.subr.mxu1 %v7695_v0  ;;  %v93_v7 = vld [vmem:[%s10755_s0 + $0x20] sm:$0xff]  ;;  %v94_v8 = vld [vmem:[%s10755_s0 + $0x28] sm:$0xff]  ;;  %vm2724_vm7 = vcmask 64512   ;;  %vm3982_vm8 = vcmask 130048  }
  0x13   :  { %64 = vst [vmem:[#allocation2 + $0x40] sm:$0xff] %v7695_v0  ;;  %65 = vst [vmem:[#allocation2 + $0x48] sm:$0xff] %v7695_v0  ;;  %v95_v9 = vld [vmem:[%s10755_s0 + $0x30] sm:$0xff]  ;;  %v96_v10 = vld [vmem:[%s10755_s0 + $0x38] sm:$0xff]  ;;  %vm3992_vm9 = vcmask 125952   ;;  %s7698_s14 = smov 16  }
  0x14   :  { %66 = vst [vmem:[#allocation2 + $0x50] sm:$0xff] %v7695_v0  ;;  %67 = vst [vmem:[#allocation2 + $0x58] sm:$0xff] %v7695_v0  ;;  %v97_v11 = vld [vmem:[%s10755_s0 + $0x40] sm:$0xff]  ;;  %v98_v12 = vld [vmem:[%s10755_s0 + $0x48] sm:$0xff]  ;;  %s7699_s19 = smov 64   ;;  %s7700_s20 = smov 32  }
  0x15   :  { %68 = vst [vmem:[#allocation2 + $0x60] sm:$0xff] %v7695_v0  ;;  %69 = vst [vmem:[#allocation2 + $0x68] sm:$0xff] %v7695_v0  ;;  %v99_v13 = vld [vmem:[%s10755_s0 + $0x50] sm:$0xff]  ;;  %v923_v14 = vld [vmem:[%s10756_s1 + $0x4] sm:$0x3]  ;;  %s7701_s23 = smov 96  }
  0x16   :  { %70 = vst [vmem:[#allocation2 + $0x70] sm:$0xff] %v7695_v0  ;;  %71 = vst [vmem:[#allocation2 + $0x78] sm:$0xff] %v7695_v0  ;;  %v100_v15 = vld [vmem:[%s10755_s0 + $0x58] sm:$0xff]  ;;  %v101_v16 = vld [vmem:[%s10755_s0 + $0x60] sm:$0xff]  ;;  %s7702_s24 = smov 80   ;;  %vm4270_vm10 = vcmask 261120  }
  0x17   :  { %72 = vst [vmem:[#allocation2 + $0x80] sm:$0xff] %v7695_v0  ;;  %73 = vst [vmem:[#allocation2 + $0x88] sm:$0xff] %v7695_v0  ;;  %v102_v17 = vld [vmem:[%s10755_s0 + $0x68] sm:$0xff]  ;;  %v103_v18 = vld [vmem:[%s10755_s0 + $0x70] sm:$0xff]  ;;  %vm4277_vm11 = vcmask 392192   ;;  %vm4284_vm12 = vcmask 523264  }
  0x18   :  { %74 = vst [vmem:[#allocation2 + $0x90] sm:$0xff] %v7695_v0  ;;  %75 = vst [vmem:[#allocation2 + $0x98] sm:$0xff] %v7695_v0  ;;  %v104_v19 = vld [vmem:[%s10755_s0 + $0x78] sm:$0xff]  ;;  %v105_v20 = vld [vmem:[%s10755_s0 + $0x80] sm:$0xff]  ;;  %vm4291_vm13 = vcmask 654336   ;;  %vm4298_vm14 = vcmask 785408  }
  0x19   :  { %76 = vst [vmem:[#allocation2 + $0xa0] sm:$0xff] %v7695_v0  ;;  %77 = vst [vmem:[#allocation2 + $0xa8] sm:$0xff] %v7695_v0  ;;  %v106_v21 = vld [vmem:[%s10755_s0 + $0x88] sm:$0xff]  ;;  %v107_v22 = vld [vmem:[%s10755_s0 + $0x90] sm:$0xff]  ;;  %vm4305_vm15 = vcmask 916480  }
  0x1a   :  { %78 = vst [vmem:[#allocation2 + $0xb0] sm:$0xff] %v7695_v0  ;;  %79 = vst [vmem:[#allocation2 + $0xb8] sm:$0xff] %v7695_v0  ;;  %v108_v23 = vld [vmem:[%s10755_s0 + $0x98] sm:$0xff]  ;;  %v190_v25 = vld [vmem:[%s10756_s1] sm:$0x3] }
  0x1b   :  { %80 = vst [vmem:[#allocation2 + $0xc0] sm:$0xff] %v7695_v0  ;;  %81 = vst [vmem:[#allocation2 + $0xc8] sm:$0xff] %v7695_v0  ;;  %v109_v27 = vld [vmem:[%s10755_s0 + $0xa0] sm:$0xff]  ;;  %v110_v28 = vld [vmem:[%s10755_s0 + $0xa8] sm:$0xff] }
  0x1c   :  { %82 = vst [vmem:[#allocation2 + $0xd0] sm:$0xff] %v7695_v0  ;;  %83 = vst [vmem:[#allocation2 + $0xd8] sm:$0xff] %v7695_v0 }
  0x1d   :  { %84 = vst [vmem:[#allocation2 + $0xe0] sm:$0xff] %v7695_v0  ;;  %85 = vst [vmem:[#allocation2 + $0xe8] sm:$0xff] %v7695_v0 }
  0x1e   :  { %86 = vst [vmem:[#allocation2 + $0xf0] sm:$0xff] %v7695_v0  ;;  %87 = vst [vmem:[#allocation2 + $0xf8] sm:$0xff] %v7695_v0 }
  0x1f   :  { %88 = vst [vmem:[#allocation2 + $0x100] sm:$0xff] %v7695_v0  ;;  %123 = vst.msk [vmem:[#allocation2] sm:$0xff] %vm122_vm2, %v89_v2 }
  0x20   :  { %124 = vst.msk [vmem:[#allocation2 + $0x8] sm:$0xff] %vm122_vm2, %v90_v3  ;;  %125 = vst.msk [vmem:[#allocation2 + $0x10] sm:$0xff] %vm122_vm2, %v91_v5 }
  0x21   :  { %156 = vst.msk [vmem:[#allocation2 + $0x100] sm:$0xf] %vm155_vm3, %v121_v4 }
  0x22   :  { %126 = vst.msk [vmem:[#allocation2 + $0x18] sm:$0xff] %vm122_vm2, %v92_v6  ;;  %127 = vst.msk [vmem:[#allocation2 + $0x20] sm:$0xff] %vm122_vm2, %v93_v7 }
  0x23   :  { %128 = vst.msk [vmem:[#allocation2 + $0x28] sm:$0xff] %vm122_vm2, %v94_v8  ;;  %129 = vst.msk [vmem:[#allocation2 + $0x30] sm:$0xff] %vm122_vm2, %v95_v9 }
  0x24   :  { %130 = vst.msk [vmem:[#allocation2 + $0x38] sm:$0xff] %vm122_vm2, %v96_v10  ;;  %131 = vst.msk [vmem:[#allocation2 + $0x40] sm:$0xff] %vm122_vm2, %v97_v11 }
  0x25   :  { %132 = vst.msk [vmem:[#allocation2 + $0x48] sm:$0xff] %vm122_vm2, %v98_v12  ;;  %133 = vst.msk [vmem:[#allocation2 + $0x50] sm:$0xff] %vm122_vm2, %v99_v13  ;;  %v111_v12 = vld [vmem:[%s10755_s0 + $0xb0] sm:$0xff] }
  0x26   :  { %134 = vst.msk [vmem:[#allocation2 + $0x58] sm:$0xff] %vm122_vm2, %v100_v15  ;;  %135 = vst.msk [vmem:[#allocation2 + $0x60] sm:$0xff] %vm122_vm2, %v101_v16  ;;  %v157_v30 = vld [vmem:[#allocation2] sm:$0xff]  ;;  %v112_v15 = vld [vmem:[%s10755_s0 + $0xb8] sm:$0xff] }
  0x27   :  { %136 = vst.msk [vmem:[#allocation2 + $0x68] sm:$0xff] %vm122_vm2, %v102_v17  ;;  %137 = vst.msk [vmem:[#allocation2 + $0x70] sm:$0xff] %vm122_vm2, %v103_v18  ;;  %v191_v24 = vld [vmem:[#allocation2 + $0x1] sm:$0xff]  ;;  %v192_v29 = vld [vmem:[#allocation2 + $0x9] sm:$0xff] }
  0x28   :  { %138 = vst.msk [vmem:[#allocation2 + $0x78] sm:$0xff] %vm122_vm2, %v104_v19  ;;  %139 = vst.msk [vmem:[#allocation2 + $0x80] sm:$0xff] %vm122_vm2, %v105_v20  ;;  %6674 = vmatmul.mubr.msk.f32.vlgmr.msra.gmra.mxu0 %vm122_vm2, %v191_v24  ;;  %v223_v26 = vld [vmem:[#allocation2 + $0x101] sm:$0xf]  ;;  %v158_v32 = vld [vmem:[#allocation2 + $0x8] sm:$0xff] }
  0x29   :  { %140 = vst.msk [vmem:[#allocation2 + $0x88] sm:$0xff] %vm122_vm2, %v106_v21  ;;  %141 = vst.msk [vmem:[#allocation2 + $0x90] sm:$0xff] %vm122_vm2, %v107_v22  ;;  %6770 = vmatmul.mubr.msk.f32.vlgmr.msra.gmra.mxu1 %vm122_vm2, %v223_v26  ;;  %6874 = vmatpush3.msk.msra.mxu0 %vm324_vm1, %v923_v14  ;;  %v193_v31 = vld [vmem:[#allocation2 + $0x11] sm:$0xff]  ;;  %v194_v37 = vld [vmem:[#allocation2 + $0x19] sm:$0xff] }
  0x2a   :  { %142 = vst.msk [vmem:[#allocation2 + $0x98] sm:$0xff] %vm122_vm2, %v108_v23  ;;  %143 = vst.msk [vmem:[#allocation2 + $0xa0] sm:$0xff] %vm122_vm2, %v109_v27  ;;  %6676 = vmatprep.mubr.msk.f32.mxu0 %vm7696_vm0, %v7695_v0  ;;  %6773 = vmatpush3.msk.msra.mxu1 %vm324_vm1, %v190_v25  ;;  %v159_v41 = vld [vmem:[#allocation2 + $0x10] sm:$0xff]  ;;  %v195_v51 = vld [vmem:[#allocation2 + $0x21] sm:$0xff]  ;;  %vm4972_vm1 = vcmask 519168  }
  0x2b   :  { %144 = vst.msk [vmem:[#allocation2 + $0xa8] sm:$0xff] %vm122_vm2, %v110_v28  ;;  %6774 = vmatprep.mubr.msk.f32.mxu1 %vm7696_vm0, %v7695_v0  ;;  %6974 = vmatprep.subr.mxu1 %v7695_v0  ;;  %v160_v55 = vld [vmem:[#allocation2 + $0x18] sm:$0xff]  ;;  %v196_v2 = vld [vmem:[#allocation2 + $0x29] sm:$0xff]  ;;  %v161_v6 = vld [vmem:[#allocation2 + $0x20] sm:$0xff] }
  0x2c   :  { %6677 = vmatmul.mubr.msk.f32.gmra.mxu0 %vm122_vm2, %v192_v29  ;;  %7080 = vmatprep.subr.mxu0 %v7695_v0  ;;  %v7930_v33 = vld [vmem:[#allocation2 + $0x41] sm:$0xff]  ;;  %v7934_v34 = vld [vmem:[#allocation2 + $0x49] sm:$0xff]  ;;  %145 = vst.msk [vmem:[#allocation2 + $0xb0] sm:$0xff] %vm122_vm2, %v111_v12  ;;  %v197_v16 = vld [vmem:[#allocation2 + $0x31] sm:$0xff] }
  0x2d   :  { %6775 = vmatmul.mubr.msk.f32.vlgmr.msra.gmra.mxu1 %vm122_vm2, %v157_v30  ;;  %6679 = vmatprep.mubr.msk.f32.mxu0 %vm7696_vm0, %v7695_v0  ;;  %v7936_v35 = vld [vmem:[#allocation2 + $0x51] sm:$0xff]  ;;  %v7938_v36 = vld [vmem:[#allocation2 + $0x48] sm:$0xff]  ;;  %v7944_v40 = vld [vmem:[#allocation2 + $0x59] sm:$0xff]  ;;  %146 = vst.msk [vmem:[#allocation2 + $0xb8] sm:$0xff] %vm122_vm2, %v112_v15 }
  0x2e   :  { %6777 = vmatprep.mubr.msk.f32.mxu1 %vm7696_vm0, %v7695_v0  ;;  %v7940_v38 = vld [vmem:[#allocation2 + $0x42] sm:$0xff]  ;;  %v7942_v39 = vld [vmem:[#allocation2 + $0x4a] sm:$0xff]  ;;  %v7950_v43 = vld [vmem:[#allocation2 + $0x52] sm:$0xff] }
  0x2f   :  { %1404 = vst [vmem:[#allocation2 + $0x48] sm:$0xff] %v7695_v0  ;;  %v7948_v42 = vld [vmem:[#allocation2 + $0x50] sm:$0xff]  ;;  %v7952_v44 = vld [vmem:[#allocation2 + $0x61] sm:$0xff]  ;;  %v7958_v45 = vld [vmem:[#allocation2 + $0x58] sm:$0xff] }
  0x30   :  { %6680 = vmatmul.mubr.msk.f32.gmra.mxu0 %vm122_vm2, %v193_v31  ;;  %1405 = vst [vmem:[#allocation2 + $0x50] sm:$0xff] %v7695_v0  ;;  %v7960_v46 = vld [vmem:[#allocation2 + $0x5a] sm:$0xff]  ;;  %v7962_v47 = vld [vmem:[#allocation2 + $0x69] sm:$0xff]  ;;  %v7971_v50 = vld [vmem:[#allocation2 + $0x71] sm:$0xff] }
  0x31   :  { %6778 = vmatmul.mubr.msk.f32.gmra.mxu1 %vm122_vm2, %v158_v32  ;;  %6682 = vmatprep.mubr.msk.f32.mxu0 %vm7696_vm0, %v7695_v0  ;;  %1406 = vst [vmem:[#allocation2 + $0x58] sm:$0xff] %v7695_v0  ;;  %v7967_v48 = vld [vmem:[#allocation2 + $0x60] sm:$0xff]  ;;  %v7974_v52 = vld [vmem:[#allocation2 + $0x68] sm:$0xff]  ;;  %v7982_v56 = vld [vmem:[#allocation2 + $0x70] sm:$0xff] }
  0x32   :  { %6780 = vmatprep.mubr.msk.f32.mxu1 %vm7696_vm0, %v7695_v0  ;;  %v7969_v49 = vld [vmem:[#allocation2 + $0x62] sm:$0xff]  ;;  %v7976_v53 = vld [vmem:[#allocation2 + $0x6a] sm:$0xff]  ;;  %v7978_v54 = vld [vmem:[#allocation2 + $0x79] sm:$0xff] }
  0x33   :  { %1407 = vst [vmem:[#allocation2 + $0x60] sm:$0xff] %v7695_v0  ;;  %10769 = vst [vmem:[#allocation10_spill] sm:$0xff] %v7976_v53  ;;  %v7984_v57 = vld [vmem:[#allocation2 + $0x72] sm:$0xff]  ;;  %v7986_v58 = vld [vmem:[#allocation2 + $0x81] sm:$0xff] }
  0x34   :  { %6683 = vmatmul.mubr.msk.f32.gmra.mxu0 %vm122_vm2, %v194_v37  ;;  %1408 = vst [vmem:[#allocation2 + $0x68] sm:$0xff] %v7695_v0  ;;  %10770 = vst [vmem:[#allocation11_spill] sm:$0xff] %v7984_v57  ;;  %v7992_v59 = vld [vmem:[#allocation2 + $0x78] sm:$0xff]  ;;  %v7996_v61 = vld [vmem:[#allocation2 + $0x89] sm:$0xff] }
  0x35   :  { %6781 = vmatmul.mubr.msk.f32.gmra.mxu1 %vm122_vm2, %v159_v41  ;;  %6685 = vmatprep.mubr.msk.f32.mxu0 %vm7696_vm0, %v7695_v0  ;;  %1409 = vst [vmem:[#allocation2 + $0x70] sm:$0xff] %v7695_v0  ;;  %v7994_v60 = vld [vmem:[#allocation2 + $0x7a] sm:$0xff]  ;;  %v8003_v63 = vld [vmem:[#allocation2 + $0x82] sm:$0xff]  ;;  %v8005_v1 = vld [vmem:[#allocation2 + $0x91] sm:$0xff] }
  0x36   :  { %10771 = vst [vmem:[#allocation12_spill] sm:$0xff] %v7994_v60  ;;  %6783 = vmatprep.mubr.msk.f32.mxu1 %vm7696_vm0, %v7695_v0  ;;  %1410 = vst [vmem:[#allocation2 + $0x78] sm:$0xff] %v7695_v0  ;;  %v8001_v62 = vld [vmem:[#allocation2 + $0x80] sm:$0xff]  ;;  %v8008_v3 = vld [vmem:[#allocation2 + $0x88] sm:$0xff] }
  0x37   :  { %10772 = vst [vmem:[#allocation13_spill] sm:$0xff] %v8003_v63  ;;  %1411 = vst [vmem:[#allocation2 + $0x80] sm:$0xff] %v7695_v0  ;;  %v8010_v4 = vld [vmem:[#allocation2 + $0x8a] sm:$0xff]  ;;  %v8012_v5 = vld [vmem:[#allocation2 + $0x99] sm:$0xff] }
  0x38   :  { %10773 = vst [vmem:[#allocation14_spill] sm:$0xff] %v8010_v4  ;;  %6686 = vmatmul.mubr.msk.f32.gmra.mxu0 %vm122_vm2, %v195_v51  ;;  %1412 = vst [vmem:[#allocation2 + $0x88] sm:$0xff] %v7695_v0  ;;  %v8016_v7 = vld [vmem:[#allocation2 + $0x90] sm:$0xff]  ;;  %v8020_v9 = vld [vmem:[#allocation2 + $0xa1] sm:$0xff] }
  0x39   :  { %v8018_v8 = vld [vmem:[#allocation2 + $0x92] sm:$0xff]  ;;  %6784 = vmatmul.mubr.msk.f32.gmra.mxu1 %vm122_vm2, %v160_v55  ;;  %6688 = vmatprep.mubr.msk.f32.mxu0 %vm7696_vm0, %v7695_v0  ;;  %v8028_v11 = vld [vmem:[#allocation2 + $0x9a] sm:$0xff]  ;;  %v8039_v14 = vld [vmem:[#allocation2 + $0xa2] sm:$0xff] }
  0x3a   :  { %10774 = vst [vmem:[#allocation15_spill] sm:$0xff] %v8018_v8  ;;  %4992 = vst [vmem:[#allocation2 + $0x90] sm:$0xff] %v7695_v0  ;;  %v8026_v10 = vld [vmem:[#allocation2 + $0x98] sm:$0xff]  ;;  %6786 = vmatprep.mubr.msk.f32.mxu1 %vm7696_vm0, %v7695_v0  ;;  %v8037_v13 = vld [vmem:[#allocation2 + $0xa0] sm:$0xff] }
  0x3b   :  { %10775 = vst [vmem:[#allocation16_spill] sm:$0xff] %v8028_v11  ;;  %4993 = vst [vmem:[#allocation2 + $0x98] sm:$0xff] %v7695_v0  ;;  %v113_v17 = vld [vmem:[%s10755_s0 + $0xc0] sm:$0xff]  ;;  %v114_v18 = vld [vmem:[%s10755_s0 + $0xc8] sm:$0xff] }
  0x3c   :  { %10776 = vst [vmem:[#allocation17_spill] sm:$0xff] %v8039_v14  ;;  %4994 = vst [vmem:[#allocation2 + $0xa0] sm:$0xff] %v7695_v0  ;;  %6689 = vmatmul.mubr.msk.f32.gmra.mxu0 %vm122_vm2, %v196_v2  ;;  %v162_v19 = vld [vmem:[#allocation2 + $0x28] sm:$0xff]  ;;  %v115_v20 = vld [vmem:[%s10755_s0 + $0xd0] sm:$0xff] }
  0x3d   :  { %147 = vst.msk [vmem:[#allocation2 + $0xc0] sm:$0xff] %vm122_vm2, %v113_v17  ;;  %148 = vst.msk [vmem:[#allocation2 + $0xc8] sm:$0xff] %vm122_vm2, %v114_v18  ;;  %v116_v21 = vld [vmem:[%s10755_s0 + $0xd8] sm:$0xff]  ;;  %v117_v22 = vld [vmem:[%s10755_s0 + $0xe0] sm:$0xff]  ;;  %6787 = vmatmul.mubr.msk.f32.gmra.mxu1 %vm122_vm2, %v161_v6  ;;  %6691 = vmatprep.mubr.msk.f32.mxu0 %vm7696_vm0, %v7695_v0 }
  0x3e   :  { %149 = vst.msk [vmem:[#allocation2 + $0xd0] sm:$0xff] %vm122_vm2, %v115_v20  ;;  %150 = vst.msk [vmem:[#allocation2 + $0xd8] sm:$0xff] %vm122_vm2, %v116_v21  ;;  %v118_v23 = vld [vmem:[%s10755_s0 + $0xe8] sm:$0xff]  ;;  %v119_v24 = vld [vmem:[%s10755_s0 + $0xf0] sm:$0xff]  ;;  %6789 = vmatprep.mubr.msk.f32.mxu1 %vm7696_vm0, %v7695_v0 }
  0x3f   :  { %151 = vst.msk [vmem:[#allocation2 + $0xe0] sm:$0xff] %vm122_vm2, %v117_v22  ;;  %v120_v25 = vld [vmem:[%s10755_s0 + $0xf8] sm:$0xff]  ;;  %v163_v26 = vld [vmem:[#allocation2 + $0x30] sm:$0xff]  ;;  %152 = vst.msk [vmem:[#allocation2 + $0xe8] sm:$0xff] %vm122_vm2, %v118_v23 }
  0x40   :  { %153 = vst.msk [vmem:[#allocation2 + $0xf0] sm:$0xff] %vm122_vm2, %v119_v24  ;;  %154 = vst.msk [vmem:[#allocation2 + $0xf8] sm:$0xff] %vm122_vm2, %v120_v25  ;;  %v8084_v27 = vld [vmem:[#allocation2 + $0x2] sm:$0xff]  ;;  %v8086_v28 = vld [vmem:[#allocation2 + $0xa] sm:$0xff]  ;;  %6692 = vmatmul.mubr.msk.f32.gmra.mxu0 %vm122_vm2, %v197_v16 }
  0x41   :  { %v198_v29 = vld [vmem:[#allocation2 + $0x39] sm:$0xff]  ;;  %1395 = vst [vmem:[#allocation2] sm:$0xff] %v7695_v0  ;;  %1396 = vst [vmem:[#allocation2 + $0x8] sm:$0xff] %v7695_v0  ;;  %v8094_v32 = vld [vmem:[#allocation2 + $0x22] sm:$0xff]  ;;  %6790 = vmatmul.mubr.msk.f32.gmra.mxu1 %vm122_vm2, %v162_v19  ;;  %6694 = vmatprep.mubr.msk.f32.mxu0 %vm7696_vm0, %v7695_v0 }
  0x42   :  { %v8090_v30 = vld [vmem:[#allocation2 + $0x12] sm:$0xff]  ;;  %v8092_v31 = vld [vmem:[#allocation2 + $0x1a] sm:$0xff]  ;;  %v8097_v37 = vld [vmem:[#allocation2 + $0xa8] sm:$0xff]  ;;  %6792 = vmatprep.mubr.msk.f32.mxu1 %vm7696_vm0, %v7695_v0 }
  0x43   :  { %1397 = vst [vmem:[#allocation2 + $0x10] sm:$0xff] %v7695_v0  ;;  %1398 = vst [vmem:[#allocation2 + $0x18] sm:$0xff] %v7695_v0  ;;  %v8102_v41 = vld [vmem:[#allocation2 + $0x2a] sm:$0xff]  ;;  %v8104_v51 = vld [vmem:[#allocation2 + $0x32] sm:$0xff] }
  0x44   :  { %1399 = vst [vmem:[#allocation2 + $0x20] sm:$0xff] %v7695_v0  ;;  %v8109_v55 = vld [vmem:[#allocation2 + $0xa9] sm:$0xff]  ;;  %1400 = vst [vmem:[#allocation2 + $0x28] sm:$0xff] %v7695_v0  ;;  %v8119_v12 = vld [vmem:[#allocation2 + $0xb1] sm:$0xff]  ;;  %6695 = vmatmul.mubr.msk.f32.gmra.mxu0 %vm122_vm2, %v198_v29 }
  0x45   :  { %v8111_v2 = vld [vmem:[#allocation2 + $0xaa] sm:$0xff]  ;;  %1401 = vst [vmem:[#allocation2 + $0x30] sm:$0xff] %v7695_v0  ;;  %v8122_v15 = vld [vmem:[#allocation2 + $0xb2] sm:$0xff]  ;;  %v8129_v18 = vld [vmem:[#allocation2 + $0xc1] sm:$0xff]  ;;  %6793 = vmatmul.mubr.msk.f32.gmra.mxu1 %vm122_vm2, %v163_v26  ;;  %6697 = vmatprep.mubr.msk.f32.mxu0 %vm7696_vm0, %v7695_v0 }
  0x46   :  { %10777 = vst [vmem:[#allocation18_spill] sm:$0xff] %v8111_v2  ;;  %v8113_v6 = vld [vmem:[#allocation2 + $0xb0] sm:$0xff]  ;;  %4995 = vst [vmem:[#allocation2 + $0xa8] sm:$0xff] %v7695_v0  ;;  %v8124_v16 = vld [vmem:[#allocation2 + $0xb8] sm:$0xff]  ;;  %6795 = vmatprep.mubr.msk.f32.mxu1 %vm7696_vm0, %v7695_v0 }
  0x47   :  { %10778 = vst [vmem:[#allocation19_spill] sm:$0xff] %v8122_v15  ;;  %v8126_v17 = vld [vmem:[#allocation2 + $0xb9] sm:$0xff]  ;;  %4996 = vst [vmem:[#allocation2 + $0xb0] sm:$0xff] %v7695_v0  ;;  %v8135_v21 = vld [vmem:[#allocation2 + $0xc9] sm:$0xff] }
  0x48   :  { %v8131_v19 = vld [vmem:[#allocation2 + $0xba] sm:$0xff]  ;;  %v8139_v23 = vld [vmem:[#allocation2 + $0xc2] sm:$0xff]  ;;  %v8145_v24 = vld [vmem:[#allocation2 + $0xd1] sm:$0xff]  ;;  %6698 = vmatmul.mubr.msk.f32.gmra.mxu0 %vm122_vm2, %v7930_v33 }
  0x49   :  { %10779 = vst [vmem:[#allocation20_spill] sm:$0xff] %v8131_v19  ;;  %v164_v20 = vld [vmem:[#allocation2 + $0x38] sm:$0xff]  ;;  %4997 = vst [vmem:[#allocation2 + $0xb8] sm:$0xff] %v7695_v0  ;;  %v8137_v22 = vld [vmem:[#allocation2 + $0xc0] sm:$0xff]  ;;  %6700 = vmatprep.mubr.msk.f32.mxu0 %vm7696_vm0, %v7695_v0 }
  0x4a   :  { %10780 = vst [vmem:[#allocation21_spill] sm:$0xff] %v8139_v23  ;;  %4998 = vst [vmem:[#allocation2 + $0xc0] sm:$0xff] %v7695_v0  ;;  %v8147_v25 = vld [vmem:[#allocation2 + $0xc8] sm:$0xff]  ;;  %v8154_v19 = vld [vmem:[#allocation2 + $0xd9] sm:$0xff]  ;;  %6796 = vmatmul.mubr.msk.f32.gmra.mxu1 %vm122_vm2, %v164_v20 }
  0x4b   :  { %v8149_v29 = vld [vmem:[#allocation2 + $0xca] sm:$0xff]  ;;  %v8158_v26 = vld [vmem:[#allocation2 + $0xd2] sm:$0xff]  ;;  %v8161_v15 = vld [vmem:[#allocation2 + $0xe1] sm:$0xff]  ;;  %6798 = vmatprep.mubr.msk.f32.mxu1 %vm7696_vm0, %v7695_v0 }
  0x4c   :  { %10781 = vst [vmem:[#allocation22_spill] sm:$0xff] %v8149_v29  ;;  %4999 = vst [vmem:[#allocation2 + $0xc8] sm:$0xff] %v7695_v0  ;;  %v8156_v23 = vld [vmem:[#allocation2 + $0xd0] sm:$0xff]  ;;  %v8163_v2 = vld [vmem:[#allocation2 + $0xd8] sm:$0xff]  ;;  %6701 = vmatmul.mubr.msk.f32.gmra.mxu0 %vm122_vm2, %v7934_v34 }
  0x4d   :  { %10782 = vst [vmem:[#allocation23_spill] sm:$0xff] %v8158_v26  ;;  %5000 = vst [vmem:[#allocation2 + $0xd0] sm:$0xff] %v7695_v0  ;;  %v8165_v14 = vld [vmem:[#allocation2 + $0xda] sm:$0xff]  ;;  %v8170_v11 = vld [vmem:[#allocation2 + $0xe9] sm:$0xff]  ;;  %6703 = vmatprep.mubr.msk.f32.mxu0 %vm7696_vm0, %v7695_v0 }
  0x4e   :  { %10783 = vst [vmem:[#allocation24_spill] sm:$0xff] %v8165_v14  ;;  %v165_v29 = vld [vmem:[#allocation2 + $0x40] sm:$0xff]  ;;  %5001 = vst [vmem:[#allocation2 + $0xd8] sm:$0xff] %v7695_v0  ;;  %v8180_v14 = vld [vmem:[#allocation2 + $0xf1] sm:$0xff] }
  0x4f   :  { %v8172_v8 = vld [vmem:[#allocation2 + $0xe0] sm:$0xff]  ;;  %v8182_v26 = vld [vmem:[#allocation2 + $0xe8] sm:$0xff]  ;;  %v8193_v20 = vld [vmem:[#allocation2 + $0xf2] sm:$0xff]  ;;  %6799 = vmatmul.mubr.msk.f32.gmra.mxu1 %vm122_vm2, %v165_v29 }
  0x50   :  { %v8174_v4 = vld [vmem:[#allocation2 + $0xe2] sm:$0xff]  ;;  %v8184_v33 = vld [vmem:[#allocation2 + $0xea] sm:$0xff]  ;;  %v8189_v63 = vld [vmem:[#allocation2 + $0xf9] sm:$0xff]  ;;  %6801 = vmatprep.mubr.msk.f32.mxu1 %vm7696_vm0, %v7695_v0  ;;  %6704 = vmatmul.mubr.msk.f32.gmra.mxu0 %vm122_vm2, %v7936_v35 }
  0x51   :  { %10784 = vst [vmem:[#allocation25_spill] sm:$0xff] %v8174_v4  ;;  %5002 = vst [vmem:[#allocation2 + $0xe0] sm:$0xff] %v7695_v0  ;;  %v8191_v4 = vld [vmem:[#allocation2 + $0xf0] sm:$0xff]  ;;  %v8196_v60 = vld [vmem:[#allocation2 + $0xf8] sm:$0xff]  ;;  %6706 = vmatprep.mubr.msk.f32.mxu0 %vm7696_vm0, %v7695_v0 }
  0x52   :  { %5003 = vst [vmem:[#allocation2 + $0xe8] sm:$0xff] %v7695_v0  ;;  %5004 = vst [vmem:[#allocation2 + $0xf0] sm:$0xff] %v7695_v0  ;;  %v8198_v57 = vld [vmem:[#allocation2 + $0xfa] sm:$0xff]  ;;  %v8390_v35 = vld [vmem:[#allocation2 + $0x102] sm:$0xf] }
  0x53   :  { %v8200_v53 = vld [vmem:[#allocation2 + $0x3a] sm:$0xff]  ;;  %5005 = vst [vmem:[#allocation2 + $0xf8] sm:$0xff] %v7695_v0  ;;  %6802 = vmatmul.mubr.msk.f32.gmra.mxu1 %vm122_vm2, %v7938_v36  ;;  %v1558_v36 = vld [vmem:[%s10757_s2 + $0x4] sm:$0xf] }
  0x54   :  { %1402 = vst [vmem:[#allocation2 + $0x38] sm:$0xff] %v7695_v0  ;;  %1403 = vst [vmem:[#allocation2 + $0x40] sm:$0xff] %v7695_v0  ;;  %6804 = vmatprep.mubr.msk.f32.mxu1 %vm7696_vm0, %v7695_v0  ;;  %6707 = vmatmul.mubr.msk.f32.gmra.mxu0 %vm122_vm2, %v7944_v40  ;;  %v189_v34 = vld [vmem:[#allocation2 + $0x100] sm:$0xf] }
  0x55   :  { %6709 = vmatprep.mubr.msk.f32.mxu0 %vm7696_vm0, %v7695_v0  ;;  %5006 = vst [vmem:[#allocation2 + $0x100] sm:$0xff] %v7695_v0  ;;  %6975 = vmatpush3.msk.msra.mxu1 %vm1610_vm4, %v1558_v36  ;;  %v10787_v40 = vld [vmem:[#allocation12_spill] sm:$0xff]  ;;  %v10797_v36 = vld [vmem:[#allocation22_spill] sm:$0xff] }
  0x56   :  { %7027 = vmatprep.subr.mxu1 %v7695_v0 }
  0x57   :  { %6805 = vmatmul.mubr.msk.f32.gmra.mxu1 %vm122_vm2, %v7948_v42 }
  0x58   :  { %6807 = vmatprep.mubr.msk.f32.mxu1 %vm7696_vm0, %v7695_v0  ;;  %6710 = vmatmul.mubr.msk.f32.gmra.mxu0 %vm122_vm2, %v7952_v44 }
  0x59   :  { %6712 = vmatprep.mubr.msk.f32.mxu0 %vm7696_vm0, %v7695_v0 }
  0x5b   :  { %6808 = vmatmul.mubr.msk.f32.gmra.mxu1 %vm122_vm2, %v7958_v45 }
  0x5c   :  { %6810 = vmatprep.mubr.msk.f32.mxu1 %vm7696_vm0, %v7695_v0  ;;  %6713 = vmatmul.mubr.msk.f32.gmra.mxu0 %vm122_vm2, %v7962_v47 }
  0x5d   :  { %6715 = vmatprep.mubr.msk.f32.mxu0 %vm7696_vm0, %v7695_v0 }
  0x5f   :  { %6811 = vmatmul.mubr.msk.f32.gmra.mxu1 %vm122_vm2, %v7967_v48  ;;  %v10789_v48 = vld [vmem:[#allocation14_spill] sm:$0xff] }
  0x60   :  { %6813 = vmatprep.mubr.msk.f32.mxu1 %vm7696_vm0, %v7695_v0  ;;  %6716 = vmatmul.mubr.msk.f32.gmra.mxu0 %vm122_vm2, %v7971_v50 }
  0x61   :  { %6718 = vmatprep.mubr.msk.f32.mxu0 %vm7696_vm0, %v7695_v0 }
  0x63   :  { %6814 = vmatmul.mubr.msk.f32.gmra.mxu1 %vm122_vm2, %v7974_v52 }
  0x64   :  { %6816 = vmatprep.mubr.msk.f32.mxu1 %vm7696_vm0, %v7695_v0  ;;  %6719 = vmatmul.mubr.msk.f32.gmra.mxu0 %vm122_vm2, %v7978_v54 }
  0x65   :  { %6721 = vmatprep.mubr.msk.f32.mxu0 %vm7696_vm0, %v7695_v0 }
  0x67   :  { %6817 = vmatmul.mubr.msk.f32.gmra.mxu1 %vm122_vm2, %v7982_v56  ;;  %v10790_v56 = vld [vmem:[#allocation15_spill] sm:$0xff] }
  0x68   :  { %6819 = vmatprep.mubr.msk.f32.mxu1 %vm7696_vm0, %v7695_v0  ;;  %6722 = vmatmul.mubr.msk.f32.gmra.mxu0 %vm122_vm2, %v7986_v58 }
  0x69   :  { %6724 = vmatprep.mubr.msk.f32.mxu0 %vm7696_vm0, %v7695_v0 }
  0x6b   :  { %6820 = vmatmul.mubr.msk.f32.gmra.mxu1 %vm122_vm2, %v7992_v59 }
  0x6c   :  { %6822 = vmatprep.mubr.msk.f32.mxu1 %vm7696_vm0, %v7695_v0  ;;  %6725 = vmatmul.mubr.msk.f32.gmra.mxu0 %vm122_vm2, %v7996_v61 }
  0x6d   :  { %6727 = vmatprep.mubr.msk.f32.mxu0 %vm7696_vm0, %v7695_v0 }
  0x6f   :  { %6823 = vmatmul.mubr.msk.f32.gmra.mxu1 %vm122_vm2, %v8001_v62 }
  0x70   :  { %6825 = vmatprep.mubr.msk.f32.mxu1 %vm7696_vm0, %v7695_v0  ;;  %6728 = vmatmul.mubr.msk.f32.gmra.mxu0 %vm122_vm2, %v8005_v1 }
  0x71   :  { %6730 = vmatprep.mubr.msk.f32.mxu0 %vm7696_vm0, %v7695_v0 }
  0x73   :  { %6826 = vmatmul.mubr.msk.f32.gmra.mxu1 %vm122_vm2, %v8008_v3 }
  0x74   :  { %6828 = vmatprep.mubr.msk.f32.mxu1 %vm7696_vm0, %v7695_v0  ;;  %6731 = vmatmul.mubr.msk.f32.gmra.mxu0 %vm122_vm2, %v8012_v5 }
  0x75   :  { %6733 = vmatprep.mubr.msk.f32.mxu0 %vm7696_vm0, %v7695_v0 }
  0x77   :  { %6829 = vmatmul.mubr.msk.f32.gmra.mxu1 %vm122_vm2, %v8016_v7 }
  0x78   :  { %6831 = vmatprep.mubr.msk.f32.mxu1 %vm7696_vm0, %v7695_v0  ;;  %6734 = vmatmul.mubr.msk.f32.gmra.mxu0 %vm122_vm2, %v8020_v9 }
  0x79   :  { %6736 = vmatprep.mubr.msk.f32.mxu0 %vm7696_vm0, %v7695_v0 }
  0x7b   :  { %6832 = vmatmul.mubr.msk.f32.gmra.mxu1 %vm122_vm2, %v8026_v10 }
  0x7c   :  { %6834 = vmatprep.mubr.msk.f32.mxu1 %vm7696_vm0, %v7695_v0  ;;  %6737 = vmatmul.mubr.msk.f32.gmra.mxu0 %vm122_vm2, %v8109_v55 }
  0x7d   :  { %6739 = vmatprep.mubr.msk.f32.mxu0 %vm7696_vm0, %v7695_v0 }
  0x7f   :  { %6835 = vmatmul.mubr.msk.f32.gmra.mxu1 %vm122_vm2, %v8037_v13 }
  0x80   :  { %6837 = vmatprep.mubr.msk.f32.mxu1 %vm7696_vm0, %v7695_v0  ;;  %6740 = vmatmul.mubr.msk.f32.gmra.mxu0 %vm122_vm2, %v8119_v12 }
  0x81   :  { %6742 = vmatprep.mubr.msk.f32.mxu0 %vm7696_vm0, %v7695_v0 }
  0x83   :  { %6838 = vmatmul.mubr.msk.f32.gmra.mxu1 %vm122_vm2, %v8097_v37 }
  0x84   :  { %6840 = vmatprep.mubr.msk.f32.mxu1 %vm7696_vm0, %v7695_v0  ;;  %6743 = vmatmul.mubr.msk.f32.gmra.mxu0 %vm122_vm2, %v8126_v17 }
  0x85   :  { %6745 = vmatprep.mubr.msk.f32.mxu0 %vm7696_vm0, %v7695_v0 }
  0x87   :  { %6841 = vmatmul.mubr.msk.f32.gmra.mxu1 %vm122_vm2, %v8113_v6 }
  0x88   :  { %6843 = vmatprep.mubr.msk.f32.mxu1 %vm7696_vm0, %v7695_v0  ;;  %6746 = vmatmul.mubr.msk.f32.gmra.mxu0 %vm122_vm2, %v8129_v18 }
  0x89   :  { %6748 = vmatprep.mubr.msk.f32.mxu0 %vm7696_vm0, %v7695_v0 }
  0x8b   :  { %6844 = vmatmul.mubr.msk.f32.gmra.mxu1 %vm122_vm2, %v8124_v16  ;;  %v1985_v16 = vld [vmem:[%s10757_s2 + $0x8] sm:$0xf] }
  0x8c   :  { %6846 = vmatprep.mubr.msk.f32.mxu1 %vm7696_vm0, %v7695_v0  ;;  %6749 = vmatmul.mubr.msk.f32.gmra.mxu0 %vm122_vm2, %v8135_v21 }
  0x8d   :  { %6751 = vmatprep.mubr.msk.f32.mxu0 %vm7696_vm0, %v7695_v0 }
  0x8f   :  { %6847 = vmatmul.mubr.msk.f32.gmra.mxu1 %vm122_vm2, %v8137_v22 }
  0x90   :  { %6849 = vmatprep.mubr.msk.f32.mxu1 %vm7696_vm0, %v7695_v0  ;;  %6752 = vmatmul.mubr.msk.f32.gmra.mxu0 %vm122_vm2, %v8145_v24 }
  0x91   :  { %6754 = vmatprep.mubr.msk.f32.mxu0 %vm7696_vm0, %v7695_v0 }
  0x93   :  { %6850 = vmatmul.mubr.msk.f32.gmra.mxu1 %vm122_vm2, %v8147_v25 }
  0x94   :  { %6852 = vmatprep.mubr.msk.f32.mxu1 %vm7696_vm0, %v7695_v0  ;;  %6755 = vmatmul.mubr.msk.f32.gmra.mxu0 %vm122_vm2, %v8154_v19 }
  0x95   :  { %6757 = vmatprep.mubr.msk.f32.mxu0 %vm7696_vm0, %v7695_v0 }
  0x97   :  { %6853 = vmatmul.mubr.msk.f32.gmra.mxu1 %vm122_vm2, %v8156_v23  ;;  %v10796_v23 = vld [vmem:[#allocation21_spill] sm:$0xff] }
  0x98   :  { %6855 = vmatprep.mubr.msk.f32.mxu1 %vm7696_vm0, %v7695_v0  ;;  %6758 = vmatmul.mubr.msk.f32.gmra.mxu0 %vm122_vm2, %v8161_v15  ;;  %v10795_v15 = vld [vmem:[#allocation20_spill] sm:$0xff] }
  0x99   :  { %6760 = vmatprep.mubr.msk.f32.mxu0 %vm7696_vm0, %v7695_v0 }
  0x9b   :  { %6856 = vmatmul.mubr.msk.f32.gmra.mxu1 %vm122_vm2, %v8163_v2 }
  0x9c   :  { %6858 = vmatprep.mubr.msk.f32.mxu1 %vm7696_vm0, %v7695_v0  ;;  %6761 = vmatmul.mubr.msk.f32.gmra.mxu0 %vm122_vm2, %v8170_v11 }
  0x9d   :  { %6763 = vmatprep.mubr.msk.f32.mxu0 %vm7696_vm0, %v7695_v0 }
  0x9f   :  { %6859 = vmatmul.mubr.msk.f32.gmra.mxu1 %vm122_vm2, %v8172_v8  ;;  %v10792_v8 = vld [vmem:[#allocation17_spill] sm:$0xff] }
  0xa0   :  { %6861 = vmatprep.mubr.msk.f32.mxu1 %vm7696_vm0, %v7695_v0  ;;  %6764 = vmatmul.mubr.msk.f32.gmra.mxu0 %vm122_vm2, %v8180_v14 }
  0xa1   :  { %6766 = vmatprep.mubr.msk.f32.mxu0 %vm7696_vm0, %v7695_v0 }
  0xa3   :  { %6862 = vmatmul.mubr.msk.f32.gmra.mxu1 %vm122_vm2, %v8182_v26 }
  0xa4   :  { %6864 = vmatprep.mubr.msk.f32.mxu1 %vm7696_vm0, %v7695_v0  ;;  %6767 = vmatmul.mubr.msk.f32.gmra.mxu0 %vm122_vm2, %v8189_v63  ;;  %v10791_v63 = vld [vmem:[#allocation16_spill] sm:$0xff] }
  0xa5   :  { %6875 = vmatprep.mubr.msk.f32.mxu0 %vm7696_vm0, %v7695_v0 }
  0xa7   :  { %6865 = vmatmul.mubr.msk.f32.gmra.mxu1 %vm122_vm2, %v8191_v4 }
  0xa8   :  { %6867 = vmatprep.mubr.msk.f32.mxu1 %vm7696_vm0, %v7695_v0  ;;  %6876 = vmatmul.mubr.msk.f32.vlgmr.msra.gmra.mxu0 %vm122_vm2, %v8084_v27  ;;  %v10793_v27 = vld [vmem:[#allocation18_spill] sm:$0xff] }
  0xa9   :  { %6878 = vmatprep.mubr.msk.f32.mxu0 %vm7696_vm0, %v7695_v0  ;;  %7081 = vmatpush3.msk.msra.mxu0 %vm1610_vm4, %v1985_v16 }
  0xaa   :  { %7186 = vmatprep.subr.mxu0 %v7695_v0 }
  0xab   :  { %6868 = vmatmul.mubr.msk.f32.gmra.mxu1 %vm122_vm2, %v8196_v60 }
  0xac   :  { %6870 = vmatprep.mubr.msk.f32.mxu1 %vm7696_vm0, %v7695_v0  ;;  %6879 = vmatmul.mubr.msk.f32.gmra.mxu0 %vm122_vm2, %v8086_v28 }
  0xad   :  { %6881 = vmatprep.mubr.msk.f32.mxu0 %vm7696_vm0, %v7695_v0 }
  0xaf   :  { %6871 = vmatmul.mubr.msk.f32.gmra.mxu1 %vm122_vm2, %v189_v34 }
  0xb0   :  { %6976 = vmatprep.mubr.msk.f32.mxu1 %vm7696_vm0, %v7695_v0  ;;  %6882 = vmatmul.mubr.msk.f32.gmra.mxu0 %vm122_vm2, %v8090_v30 }
  0xb1   :  { %6884 = vmatprep.mubr.msk.f32.mxu0 %vm7696_vm0, %v7695_v0 }
  0xb4   :  { %6885 = vmatmul.mubr.msk.f32.gmra.mxu0 %vm122_vm2, %v8092_v31 }
  0xb5   :  { %6887 = vmatprep.mubr.msk.f32.mxu0 %vm7696_vm0, %v7695_v0 }
  0xb8   :  { %6888 = vmatmul.mubr.msk.f32.gmra.mxu0 %vm122_vm2, %v8094_v32 }
  0xb9   :  { %6890 = vmatprep.mubr.msk.f32.mxu0 %vm7696_vm0, %v7695_v0 }
  0xbc   :  { %6891 = vmatmul.mubr.msk.f32.gmra.mxu0 %vm122_vm2, %v8102_v41  ;;  %v10794_v41 = vld [vmem:[#allocation19_spill] sm:$0xff] }
  0xbd   :  { %6893 = vmatprep.mubr.msk.f32.mxu0 %vm7696_vm0, %v7695_v0 }
  0xc0   :  { %6894 = vmatmul.mubr.msk.f32.gmra.mxu0 %vm122_vm2, %v8104_v51 }
  0xc1   :  { %6896 = vmatprep.mubr.msk.f32.mxu0 %vm7696_vm0, %v7695_v0 }
  0xc4   :  { %6897 = vmatmul.mubr.msk.f32.gmra.mxu0 %vm122_vm2, %v8200_v53 }
  0xc5   :  { %6899 = vmatprep.mubr.msk.f32.mxu0 %vm7696_vm0, %v7695_v0 }
  0xc8   :  { %6900 = vmatmul.mubr.msk.f32.gmra.mxu0 %vm122_vm2, %v7940_v38  ;;  %v10785_v38 = vld [vmem:[#allocation10_spill] sm:$0xff] }
  0xc9   :  { %6902 = vmatprep.mubr.msk.f32.mxu0 %vm7696_vm0, %v7695_v0 }
  0xcc   :  { %6903 = vmatmul.mubr.msk.f32.gmra.mxu0 %vm122_vm2, %v7942_v39  ;;  %v10786_v39 = vld [vmem:[#allocation11_spill] sm:$0xff] }
  0xcd   :  { %6905 = vmatprep.mubr.msk.f32.mxu0 %vm7696_vm0, %v7695_v0 }
  0xd0   :  { %6906 = vmatmul.mubr.msk.f32.gmra.mxu0 %vm122_vm2, %v7950_v43  ;;  %v10788_v43 = vld [vmem:[#allocation13_spill] sm:$0xff] }
  0xd1   :  { %6908 = vmatprep.mubr.msk.f32.mxu0 %vm7696_vm0, %v7695_v0 }
  0xd4   :  { %6909 = vmatmul.mubr.msk.f32.gmra.mxu0 %vm122_vm2, %v7960_v46 }
  0xd5   :  { %6911 = vmatprep.mubr.msk.f32.mxu0 %vm7696_vm0, %v7695_v0 }
  0xd8   :  { %6912 = vmatmul.mubr.msk.f32.gmra.mxu0 %vm122_vm2, %v7969_v49 }
  0xd9   :  { %6914 = vmatprep.mubr.msk.f32.mxu0 %vm7696_vm0, %v7695_v0 }
  0xdc   :  { %6915 = vmatmul.mubr.msk.f32.gmra.mxu0 %vm122_vm2, %v10785_v38 }
  0xdd   :  { %6917 = vmatprep.mubr.msk.f32.mxu0 %vm7696_vm0, %v7695_v0 }
  0xe0   :  { %6918 = vmatmul.mubr.msk.f32.gmra.mxu0 %vm122_vm2, %v10786_v39 }
  0xe1   :  { %6920 = vmatprep.mubr.msk.f32.mxu0 %vm7696_vm0, %v7695_v0 }
  0xe4   :  { %6921 = vmatmul.mubr.msk.f32.gmra.mxu0 %vm122_vm2, %v10787_v40 }
  0xe5   :  { %6923 = vmatprep.mubr.msk.f32.mxu0 %vm7696_vm0, %v7695_v0 }
  0xe8   :  { %v394_v42 = vpop.f32.mrf.mxu0  ;;  %6924 = vmatmul.mubr.msk.f32.gmra.mxu0 %vm122_vm2, %v10788_v43 }
  0xe9   :  { %v8469_v44 = vpop.f32.mrf.mxu1  ;;  %6926 = vmatprep.mubr.msk.f32.mxu0 %vm7696_vm0, %v7695_v0 }
  0xea   :  { %v6675_v45 = vpop.f32.mrf.mxu0 }
  0xeb   :  { %v6771_v46 = vpop.f32.mrf.mxu1  ;;  %v10798_v45 = vld [vmem:[#allocation23_spill] sm:$0xff] }
  0xec   :  { %v399_v47 = vpop.f32.mrf.mxu0  ;;  %6927 = vmatmul.mubr.msk.f32.gmra.mxu0 %vm122_vm2, %v10789_v48 }
  0xed   :  { %v726_v49 = vpop.f32.mrf.mxu1  ;;  %6929 = vmatprep.mubr.msk.f32.mxu0 %vm7696_vm0, %v7695_v0 }
  0xee   :  { %v8477_v50 = vadd.f32 %v726_v49, %v394_v42  ;;  %v6678_v52 = vpop.f32.mrf.mxu0 }
  0xef   :  { %v6776_v53 = vpop.f32.mrf.mxu1 }
  0xf0   :  { %v404_v54 = vpop.f32.mrf.mxu0  ;;  %6930 = vmatmul.mubr.msk.f32.gmra.mxu0 %vm122_vm2, %v10790_v56  ;;  %v10799_v53 = vld [vmem:[#allocation24_spill] sm:$0xff] }
  0xf1   :  { %v731_v58 = vpop.f32.mrf.mxu1  ;;  %6932 = vmatprep.mubr.msk.f32.mxu0 %vm7696_vm0, %v7695_v0 }
  0xf2   :  { %v8483_v59 = vadd.f32 %v731_v58, %v399_v47  ;;  %v6681_v60 = vpop.f32.mrf.mxu0 }
  0xf3   :  { %v6779_v61 = vpop.f32.mrf.mxu1 }
  0xf4   :  { %v409_v62 = vpop.f32.mrf.mxu0  ;;  %6933 = vmatmul.mubr.msk.f32.gmra.mxu0 %vm122_vm2, %v10791_v63 }
  0xf5   :  { %v736_v1 = vpop.f32.mrf.mxu1  ;;  %6935 = vmatprep.mubr.msk.f32.mxu0 %vm7696_vm0, %v7695_v0 }
  0xf6   :  { %v8489_v3 = vadd.f32 %v736_v1, %v404_v54  ;;  %v6684_v4 = vpop.f32.mrf.mxu0 }
  0xf7   :  { %v6782_v5 = vpop.f32.mrf.mxu1 }
  0xf8   :  { %v414_v7 = vpop.f32.mrf.mxu0  ;;  %6936 = vmatmul.mubr.msk.f32.gmra.mxu0 %vm122_vm2, %v10792_v8 }
  0xf9   :  { %v741_v9 = vpop.f32.mrf.mxu1  ;;  %6938 = vmatprep.mubr.msk.f32.mxu0 %vm7696_vm0, %v7695_v0 }
  0xfa   :  { %v8495_v10 = vadd.f32 %v741_v9, %v409_v62  ;;  %v6687_v11 = vpop.f32.mrf.mxu0  ;;  %v10800_v62 = vld [vmem:[#allocation25_spill] sm:$0xff] }
  0xfb   :  { %v6785_v13 = vpop.f32.mrf.mxu1 }
  0xfc   :  { %v419_v14 = vpop.f32.mrf.mxu0  ;;  %6939 = vmatmul.mubr.msk.f32.gmra.mxu0 %vm122_vm2, %v10793_v27 }
  0xfd   :  { %v746_v28 = vpop.f32.mrf.mxu1  ;;  %6941 = vmatprep.mubr.msk.f32.mxu0 %vm7696_vm0, %v7695_v0 }
  0xfe   :  { %v8501_v30 = vadd.f32 %v746_v28, %v414_v7  ;;  %v6690_v31 = vpop.f32.mrf.mxu0 }
  0xff   :  { %v6788_v32 = vpop.f32.mrf.mxu1 }
 0x100   :  { %v424_v37 = vpop.f32.mrf.mxu0  ;;  %6942 = vmatmul.mubr.msk.f32.gmra.mxu0 %vm122_vm2, %v10794_v41 }
 0x101   :  { %v751_v51 = vpop.f32.mrf.mxu1  ;;  %6944 = vmatprep.mubr.msk.f32.mxu0 %vm7696_vm0, %v7695_v0 }
 0x102   :  { %v8507_v55 = vadd.f32 %v751_v51, %v419_v14  ;;  %v6693_v2 = vpop.f32.mrf.mxu0 }
 0x103   :  { %v6791_v6 = vpop.f32.mrf.mxu1 }
 0x104   :  { %v429_v12 = vpop.f32.mrf.mxu0  ;;  %6945 = vmatmul.mubr.msk.f32.gmra.mxu0 %vm122_vm2, %v10795_v15 }
 0x105   :  { %v756_v17 = vpop.f32.mrf.mxu1  ;;  %6947 = vmatprep.mubr.msk.f32.mxu0 %vm7696_vm0, %v7695_v0 }
 0x106   :  { %v8517_v18 = vadd.f32 %v756_v17, %v424_v37  ;;  %v6696_v19 = vpop.f32.mrf.mxu0 }
 0x107   :  { %v6794_v21 = vpop.f32.mrf.mxu1 }
 0x108   :  { %v434_v22 = vpop.f32.mrf.mxu0  ;;  %6948 = vmatmul.mubr.msk.f32.gmra.mxu0 %vm122_vm2, %v10796_v23 }
 0x109   :  { %6950 = vmatprep.mubr.msk.f32.mxu0 %vm7696_vm0, %v7695_v0 }
 0x10a   :  { %v761_v24 = vpop.f32.mrf.mxu1  ;;  %v6699_v29 = vpop.f32.mrf.mxu0 }
 0x10b   :  { %v8524_v25 = vadd.f32 %v761_v24, %v429_v12 }
 0x10c   :  { %v6797_v26 = vpop.f32.mrf.mxu1  ;;  %v439_v34 = vpop.f32.mrf.mxu0  ;;  %6951 = vmatmul.mubr.msk.f32.gmra.mxu0 %vm122_vm2, %v10797_v36 }
 0x10d   :  { %6953 = vmatprep.mubr.msk.f32.mxu0 %vm7696_vm0, %v7695_v0 }
 0x10e   :  { %v6702_v40 = vpop.f32.mrf.mxu0 }
 0x10f   :  { %v766_v38 = vpop.f32.mrf.mxu1 }
 0x110   :  { %v8530_v39 = vadd.f32 %v766_v38, %v434_v22  ;;  %v444_v43 = vpop.f32.mrf.mxu0  ;;  %6954 = vmatmul.mubr.msk.f32.gmra.mxu0 %vm122_vm2, %v10798_v45 }
 0x111   :  { %v6800_v42 = vpop.f32.mrf.mxu1  ;;  %6956 = vmatprep.mubr.msk.f32.mxu0 %vm7696_vm0, %v7695_v0 }
 0x112   :  { %v6705_v48 = vpop.f32.mrf.mxu0 }
 0x113   :  { %v771_v46 = vpop.f32.mrf.mxu1 }
 0x114   :  { %v8536_v47 = vadd.f32 %v771_v46, %v439_v34  ;;  %v449_v52 = vpop.f32.mrf.mxu0  ;;  %6957 = vmatmul.mubr.msk.f32.gmra.mxu0 %vm122_vm2, %v10799_v53 }
 0x115   :  { %v6803_v49 = vpop.f32.mrf.mxu1  ;;  %6959 = vmatprep.mubr.msk.f32.mxu0 %vm7696_vm0, %v7695_v0 }
 0x116   :  { %v6708_v58 = vpop.f32.mrf.mxu0 }
 0x117   :  { %v776_v54 = vpop.f32.mrf.mxu1 }
 0x118   :  { %v8542_v56 = vadd.f32 %v776_v54, %v444_v43  ;;  %v454_v61 = vpop.f32.mrf.mxu0  ;;  %6960 = vmatmul.mubr.msk.f32.gmra.mxu0 %vm122_vm2, %v10800_v62 }
 0x119   :  { %v6806_v60 = vpop.f32.mrf.mxu1  ;;  %6962 = vmatprep.mubr.msk.f32.mxu0 %vm7696_vm0, %v7695_v0 }
 0x11a   :  { %v6711_v4 = vpop.f32.mrf.mxu0 }
 0x11b   :  { %v781_v63 = vpop.f32.mrf.mxu1 }
 0x11c   :  { %v8548_v1 = vadd.f32 %v781_v63, %v449_v52  ;;  %v459_v7 = vpop.f32.mrf.mxu0  ;;  %6963 = vmatmul.mubr.msk.f32.gmra.mxu0 %vm122_vm2, %v8184_v33 }
 0x11d   :  { %v6809_v5 = vpop.f32.mrf.mxu1  ;;  %6965 = vmatprep.mubr.msk.f32.mxu0 %vm7696_vm0, %v7695_v0 }
 0x11e   :  { %v6714_v11 = vpop.f32.mrf.mxu0 }
 0x11f   :  { %v786_v8 = vpop.f32.mrf.mxu1 }
 0x120   :  { %v8554_v9 = vadd.f32 %v786_v8, %v454_v61  ;;  %v464_v14 = vpop.f32.mrf.mxu0  ;;  %6966 = vmatmul.mubr.msk.f32.gmra.mxu0 %vm122_vm2, %v8193_v20 }
 0x121   :  { %v6812_v13 = vpop.f32.mrf.mxu1  ;;  %6968 = vmatprep.mubr.msk.f32.mxu0 %vm7696_vm0, %v7695_v0 }
 0x122   :  { %v6717_v31 = vpop.f32.mrf.mxu0 }
 0x123   :  { %v791_v27 = vpop.f32.mrf.mxu1 }
 0x124   :  { %v8560_v28 = vadd.f32 %v791_v27, %v459_v7  ;;  %v469_v32 = vpop.f32.mrf.mxu0  ;;  %6969 = vmatmul.mubr.msk.f32.gmra.mxu0 %vm122_vm2, %v8198_v57 }
 0x125   :  { %v6815_v33 = vpop.f32.mrf.mxu1  ;;  %6971 = vmatprep.mubr.msk.f32.mxu0 %vm7696_vm0, %v7695_v0 }
 0x126   :  { %v6720_v51 = vpop.f32.mrf.mxu0 }
 0x127   :  { %v796_v37 = vpop.f32.mrf.mxu1 }
 0x128   :  { %v8566_v41 = vadd.f32 %v796_v37, %v464_v14  ;;  %v474_v2 = vpop.f32.mrf.mxu0  ;;  %6972 = vmatmul.mubr.msk.f32.gmra.mxu0 %vm122_vm2, %v8390_v35 }
 0x129   :  { %v6818_v20 = vpop.f32.mrf.mxu1  ;;  %7082 = vmatprep.mubr.msk.f32.mxu0 %vm7696_vm0, %v7695_v0 }
 0x12a   :  { %v6723_v15 = vpop.f32.mrf.mxu0 }
 0x12b   :  { %v801_v6 = vpop.f32.mrf.mxu1 }
 0x12c   :  { %v8572_v12 = vadd.f32 %v801_v6, %v469_v32  ;;  %v479_v16 = vpop.f32.mrf.mxu0 }
 0x12d   :  { %v6821_v57 = vpop.f32.mrf.mxu1 }
 0x12e   :  { %v6726_v21 = vpop.f32.mrf.mxu0 }
 0x12f   :  { %v806_v17 = vpop.f32.mrf.mxu1 }
 0x130   :  { %v8574_v19 = vadd.f32 %v806_v17, %v474_v2  ;;  %v484_v23 = vpop.f32.mrf.mxu0 }
 0x131   :  { %v6824_v22 = vpop.f32.mrf.mxu1 }
 0x132   :  { %v6729_v26 = vpop.f32.mrf.mxu0 }
 0x133   :  { %v811_v24 = vpop.f32.mrf.mxu1 }
 0x134   :  { %v8576_v29 = vadd.f32 %v811_v24, %v479_v16  ;;  %v489_v34 = vpop.f32.mrf.mxu0 }
 0x135   :  { %v6827_v35 = vpop.f32.mrf.mxu1 }
 0x136   :  { %v6732_v0 = vpop.f32.mrf.mxu0 }
 0x137   :  { %v816_v36 = vpop.f32.mrf.mxu1 }
 0x138   :  { %v8578_v38 = vadd.f32 %v816_v36, %v484_v23  ;;  %v494_v42 = vpop.f32.mrf.mxu0 }
 0x139   :  { %v6830_v40 = vpop.f32.mrf.mxu1 }
 0x13a   :  { %v6735_v46 = vpop.f32.mrf.mxu0 }
 0x13b   :  { %v821_v43 = vpop.f32.mrf.mxu1 }
 0x13c   :  { %v8580_v45 = vadd.f32 %v821_v43, %v489_v34  ;;  %v499_v49 = vpop.f32.mrf.mxu0 }
 0x13d   :  { %v6833_v48 = vpop.f32.mrf.mxu1 }
 0x13e   :  { %v6738_v54 = vpop.f32.mrf.mxu0 }
 0x13f   :  { %v826_v52 = vpop.f32.mrf.mxu1 }
 0x140   :  { %v8582_v53 = vadd.f32 %v826_v52, %v494_v42  ;;  %v504_v60 = vpop.f32.mrf.mxu0 }
 0x141   :  { %v6836_v58 = vpop.f32.mrf.mxu1 }
 0x142   :  { %v6741_v63 = vpop.f32.mrf.mxu0 }
 0x143   :  { %v831_v61 = vpop.f32.mrf.mxu1 }
 0x144   :  { %v8584_v62 = vadd.f32 %v831_v61, %v499_v49  ;;  %v509_v5 = vpop.f32.mrf.mxu0 }
 0x145   :  { %v6839_v4 = vpop.f32.mrf.mxu1 }
 0x146   :  { %v6744_v11 = vpop.f32.mrf.mxu0 }
 0x147   :  { %v836_v7 = vpop.f32.mrf.mxu1 }
 0x148   :  { %v8586_v8 = vadd.f32 %v836_v7, %v504_v60  ;;  %v514_v14 = vpop.f32.mrf.mxu0 }
 0x149   :  { %v6842_v13 = vpop.f32.mrf.mxu1 }
 0x14a   :  { %v6747_v33 = vpop.f32.mrf.mxu0 }
 0x14b   :  { %v841_v27 = vpop.f32.mrf.mxu1 }
 0x14c   :  { %v8588_v31 = vadd.f32 %v841_v27, %v509_v5  ;;  %v519_v37 = vpop.f32.mrf.mxu0  ;;  %v8607_v27 = vld [vmem:[%s10762_s7] ss:$0 sm:$0xff] }
 0x14d   :  { %v6845_v32 = vpop.f32.mrf.mxu1 }
 0x14e   :  { %v6750_v2 = vpop.f32.mrf.mxu0 }
 0x14f   :  { %v846_v51 = vpop.f32.mrf.mxu1 }
 0x150   :  { %v8590_v20 = vadd.f32 %v846_v51, %v514_v14  ;;  %v524_v15 = vpop.f32.mrf.mxu0 }
 0x151   :  { %v6848_v6 = vpop.f32.mrf.mxu1 }
 0x152   :  { %v6753_v17 = vpop.f32.mrf.mxu0 }
 0x153   :  { %v851_v57 = vpop.f32.mrf.mxu1 }
 0x154   :  { %v8592_v16 = vadd.f32 %v851_v57, %v519_v37  ;;  %v529_v22 = vpop.f32.mrf.mxu0 }
 0x155   :  { %v6851_v21 = vpop.f32.mrf.mxu1 }
 0x156   :  { %v6756_v26 = vpop.f32.mrf.mxu0 }
 0x157   :  { %v856_v23 = vpop.f32.mrf.mxu1 }
 0x158   :  { %v8594_v24 = vadd.f32 %v856_v23, %v524_v15  ;;  %v534_v34 = vpop.f32.mrf.mxu0 }
 0x159   :  { %v6854_v35 = vpop.f32.mrf.mxu1 }
 0x15a   :  { %v6759_v40 = vpop.f32.mrf.mxu0 }
 0x15b   :  { %v861_v36 = vpop.f32.mrf.mxu1 }
 0x15c   :  { %v8596_v0 = vadd.f32 %v861_v36, %v529_v22  ;;  %v539_v43 = vpop.f32.mrf.mxu0 }
 0x15d   :  { %v6857_v42 = vpop.f32.mrf.mxu1 }
 0x15e   :  { %v6762_v49 = vpop.f32.mrf.mxu0 }
 0x15f   :  { %v866_v46 = vpop.f32.mrf.mxu1 }
 0x160   :  { %v8598_v48 = vadd.f32 %v866_v46, %v534_v34  ;;  %v544_v54 = vpop.f32.mrf.mxu0 }
 0x161   :  { %v6860_v52 = vpop.f32.mrf.mxu1 }
 0x162   :  { %v6765_v61 = vpop.f32.mrf.mxu0 }
 0x163   :  { %v871_v58 = vpop.f32.mrf.mxu1 }
 0x164   :  { %v8600_v60 = vadd.f32 %v871_v58, %v539_v43  ;;  %v549_v4 = vpop.f32.mrf.mxu0 }
 0x165   :  { %v6863_v63 = vpop.f32.mrf.mxu1 }
 0x166   :  { %v6768_v11 = vpop.f32.mrf.mxu0 }
 0x167   :  { %v876_v5 = vpop.f32.mrf.mxu1 }
 0x168   :  { %v8602_v7 = vadd.f32 %v876_v5, %v544_v54  ;;  %v1092_v14 = vpop.f32.mrf.mxu0 }
 0x169   :  { %v6866_v13 = vpop.f32.mrf.mxu1  ;;  %v1256_v32 = vadd.f32 %v1092_v14, %v8477_v50 }
 0x16a   :  { %v6877_v51 = vpop.f32.mrf.mxu0 }
 0x16b   :  { %v881_v33 = vpop.f32.mrf.mxu1  ;;  %v1294_v2 = vadd.f32 %v8607_v27, %v1256_v32 }
 0x16c   :  { %v8610_v37 = vadd.f32 %v881_v33, %v549_v4  ;;  %v1097_v15 = vpop.f32.mrf.mxu0 }
 0x16d   :  { %v6869_v6 = vpop.f32.mrf.mxu1  ;;  %v1327_v57 = vmax.f32 %v1294_v2, 0.0  ;;  %v1257_v21 = vadd.f32 %v1097_v15, %v8483_v59 }
 0x16e   :  { %v6880_v22 = vpop.f32.mrf.mxu0 }
 0x16f   :  { %v8613_v17 = vpop.f32.mrf.mxu1  ;;  %1361 = vst.msk [vmem:[#allocation3] sm:$0xff] %vm1360_vm5, %v1327_v57  ;;  %v1295_v23 = vadd.f32 %v8607_v27, %v1257_v21 }
 0x170   :  { %v1102_v50 = vpop.f32.mrf.mxu0 }
 0x171   :  { %v6872_v26 = vpop.f32.mrf.mxu1  ;;  %v1328_v35 = vmax.f32 %v1295_v23, 0.0  ;;  %v1258_v34 = vadd.f32 %v1102_v50, %v8489_v3 }
 0x172   :  { %v6883_v36 = vpop.f32.mrf.mxu0  ;;  %v1540_v26 = vld [vmem:[%s10757_s2] sm:$0xf] }
 0x173   :  { %1362 = vst.msk [vmem:[#allocation3 + $0x8] sm:$0xff] %vm1360_vm5, %v1328_v35  ;;  %v1296_v40 = vadd.f32 %v8607_v27, %v1258_v34  ;;  %v8641_v34 = vld [vmem:[#allocation2 + $0x48] sm:$0xff]  ;;  %v2463_v36 = vld [vmem:[%s10757_s2 + $0x10] sm:$0xf] }
 0x174   :  { %v1107_v42 = vpop.f32.mrf.mxu0 }
 0x175   :  { %v1329_v43 = vmax.f32 %v1296_v40, 0.0  ;;  %v1259_v46 = vadd.f32 %v1107_v42, %v8495_v10 }
 0x176   :  { %v6886_v59 = vpop.f32.mrf.mxu0 }
 0x177   :  { %1363 = vst.msk [vmem:[#allocation3 + $0x10] sm:$0xff] %vm1360_vm5, %v1329_v43  ;;  %v1297_v49 = vadd.f32 %v8607_v27, %v1259_v46 }
 0x178   :  { %v1112_v52 = vpop.f32.mrf.mxu0 }
 0x179   :  { %v1330_v54 = vmax.f32 %v1297_v49, 0.0  ;;  %v1260_v58 = vadd.f32 %v1112_v52, %v8501_v30 }
 0x17a   :  { %v1428_v61 = vld [vmem:[#allocation3] ss:$2 sm:$0xff]  ;;  %v1444_v3 = vld [vmem:[#allocation3 + $0x1] ss:$2 sm:$0xff]  ;;  %v6889_v63 = vpop.f32.mrf.mxu0 }
 0x17b   :  { %v1459_v4 = vmax.f32 %v1428_v61, %v1444_v3  ;;  %1364 = vst.msk [vmem:[#allocation3 + $0x18] sm:$0xff] %vm1360_vm5, %v1330_v54  ;;  %v1298_v5 = vadd.f32 %v8607_v27, %v1260_v58 }
 0x17c   :  { %v1117_v11 = vpop.f32.mrf.mxu0 }
 0x17d   :  { %1467 = vst.msk [vmem:[#allocation2 + $0x2] sm:$0xff] %vm1360_vm5, %v1459_v4  ;;  %v1331_v10 = vmax.f32 %v1298_v5, 0.0  ;;  %v1261_v13 = vadd.f32 %v1117_v11, %v8507_v55 }
 0x17e   :  { %v6892_v14 = vpop.f32.mrf.mxu0 }
 0x17f   :  { %1365 = vst.msk [vmem:[#allocation3 + $0x20] sm:$0xff] %vm1360_vm5, %v1331_v10  ;;  %v1299_v33 = vadd.f32 %v8607_v27, %v1261_v13 }
 0x180   :  { %v1122_v30 = vpop.f32.mrf.mxu0 }
 0x181   :  { %v1332_v32 = vmax.f32 %v1299_v33, 0.0  ;;  %v1262_v51 = vadd.f32 %v1122_v30, %v8517_v18 }
 0x182   :  { %v1430_v2 = vld [vmem:[#allocation3 + $0x10] ss:$2 sm:$0xff]  ;;  %v1446_v6 = vld [vmem:[#allocation3 + $0x11] ss:$2 sm:$0xff]  ;;  %v6895_v15 = vpop.f32.mrf.mxu0 }
 0x183   :  { %v1460_v57 = vmax.f32 %v1430_v2, %v1446_v6  ;;  %1366 = vst.msk [vmem:[#allocation3 + $0x28] sm:$0xff] %vm1360_vm5, %v1332_v32  ;;  %v1300_v21 = vadd.f32 %v8607_v27, %v1262_v51 }
 0x184   :  { %v1127_v22 = vpop.f32.mrf.mxu0  ;;  %v1541_v23 = vld [vmem:[#allocation2 + $0x1] sm:$0xff] }
 0x185   :  { %v1968_v55 = vld [vmem:[#allocation2 + $0x2] sm:$0xff]  ;;  %1468 = vst.msk [vmem:[#allocation2 + $0xa] sm:$0xff] %vm1360_vm5, %v1460_v57  ;;  %v1333_v50 = vmax.f32 %v1300_v21, 0.0  ;;  %v1263_v18 = vadd.f32 %v1127_v22, %v8524_v25  ;;  %6977 = vmatmul.mubr.msk.f32.vlgmr.msra.gmra.mxu1 %vm1360_vm5, %v1541_v23 }
 0x186   :  { %7083 = vmatmul.mubr.msk.f32.vlgmr.msra.gmra.mxu0 %vm1360_vm5, %v1968_v55  ;;  %v6898_v35 = vpop.f32.mrf.mxu0  ;;  %6979 = vmatprep.mubr.msk.f32.mxu1 %vm7696_vm0, %v8641_v34 }
 0x187   :  { %7085 = vmatprep.mubr.msk.f32.mxu0 %vm7696_vm0, %v8641_v34  ;;  %1367 = vst.msk [vmem:[#allocation3 + $0x30] sm:$0xff] %vm1360_vm5, %v1333_v50  ;;  %v1301_v25 = vadd.f32 %v8607_v27, %v1263_v18  ;;  %7028 = vmatpush3.msk.msra.mxu1 %vm1610_vm4, %v1540_v26 }
 0x188   :  { %7187 = vmatpush3.msk.msra.mxu0 %vm1610_vm4, %v2463_v36  ;;  %v1132_v40 = vpop.f32.mrf.mxu0  ;;  %7133 = vmatprep.subr.mxu1 %v8641_v34 }
 0x189   :  { %v1334_v42 = vmax.f32 %v1301_v25, 0.0  ;;  %v1264_v43 = vadd.f32 %v1132_v40, %v8530_v39  ;;  %v8662_v39 = vld [vmem:[#allocation2] sm:$0xff] }
 0x18a   :  { %v1432_v46 = vld [vmem:[#allocation3 + $0x20] ss:$2 sm:$0xff]  ;;  %v1448_v59 = vld [vmem:[#allocation3 + $0x21] ss:$2 sm:$0xff]  ;;  %v6901_v49 = vpop.f32.mrf.mxu0 }
 0x18b   :  { %v1461_v52 = vmax.f32 %v1432_v46, %v1448_v59  ;;  %1368 = vst.msk [vmem:[#allocation3 + $0x38] sm:$0xff] %vm1360_vm5, %v1334_v42  ;;  %v1302_v54 = vadd.f32 %v8607_v27, %v1264_v43 }
 0x18c   :  { %v1137_v58 = vpop.f32.mrf.mxu0  ;;  %v1542_v61 = vld [vmem:[#allocation2 + $0x9] sm:$0xff] }
 0x18d   :  { %v1969_v3 = vld [vmem:[#allocation2 + $0xa] sm:$0xff]  ;;  %1469 = vst.msk [vmem:[#allocation2 + $0x12] sm:$0xff] %vm1360_vm5, %v1461_v52  ;;  %v1335_v63 = vmax.f32 %v1302_v54, 0.0  ;;  %v1265_v4 = vadd.f32 %v1137_v58, %v8536_v47  ;;  %6980 = vmatmul.mubr.msk.f32.gmra.mxu1 %vm1360_vm5, %v1542_v61 }
 0x18e   :  { %7086 = vmatmul.mubr.msk.f32.gmra.mxu0 %vm1360_vm5, %v1969_v3  ;;  %v8664_v5 = vld [vmem:[#allocation2 + $0x4] sm:$0xff]  ;;  %v6904_v10 = vpop.f32.mrf.mxu0  ;;  %6982 = vmatprep.mubr.msk.f32.mxu1 %vm7696_vm0, %v8641_v34 }
 0x18f   :  { %v8666_v11 = vld [vmem:[#allocation2 + $0x3] sm:$0xff]  ;;  %7088 = vmatprep.mubr.msk.f32.mxu0 %vm7696_vm0, %v8641_v34  ;;  %1369 = vst.msk [vmem:[#allocation3 + $0x40] sm:$0xff] %vm1360_vm5, %v1335_v63  ;;  %v1303_v47 = vadd.f32 %v8607_v27, %v1265_v4 }
 0x190   :  { %2742 = vst [vmem:[#allocation2] sm:$0xff] %v8641_v34  ;;  %v1142_v13 = vpop.f32.mrf.mxu0 }
 0x191   :  { %v1336_v14 = vmax.f32 %v1303_v47, 0.0  ;;  %v1266_v33 = vadd.f32 %v1142_v13, %v8542_v56  ;;  %v8682_v56 = vld [vmem:[#allocation2 + $0x8] sm:$0xff] }
 0x192   :  { %v1434_v30 = vld [vmem:[#allocation3 + $0x30] ss:$2 sm:$0xff]  ;;  %v1450_v32 = vld [vmem:[#allocation3 + $0x31] ss:$2 sm:$0xff]  ;;  %v6907_v51 = vpop.f32.mrf.mxu0 }
 0x193   :  { %v1462_v2 = vmax.f32 %v1434_v30, %v1450_v32  ;;  %1370 = vst.msk [vmem:[#allocation3 + $0x48] sm:$0xff] %vm1360_vm5, %v1336_v14  ;;  %v1304_v6 = vadd.f32 %v8607_v27, %v1266_v33 }
 0x194   :  { %v1147_v15 = vpop.f32.mrf.mxu0  ;;  %v1543_v57 = vld [vmem:[#allocation2 + $0x11] sm:$0xff] }
 0x195   :  { %v1970_v21 = vld [vmem:[#allocation2 + $0x12] sm:$0xff]  ;;  %1470 = vst.msk [vmem:[#allocation2 + $0x1a] sm:$0xff] %vm1360_vm5, %v1462_v2  ;;  %v1337_v22 = vmax.f32 %v1304_v6, 0.0  ;;  %v1267_v23 = vadd.f32 %v1147_v15, %v8548_v1  ;;  %6983 = vmatmul.mubr.msk.f32.gmra.mxu1 %vm1360_vm5, %v1543_v57 }
 0x196   :  { %7089 = vmatmul.mubr.msk.f32.gmra.mxu0 %vm1360_vm5, %v1970_v21  ;;  %v8684_v55 = vld [vmem:[#allocation2 + $0xc] sm:$0xff]  ;;  %v6910_v50 = vpop.f32.mrf.mxu0  ;;  %6985 = vmatprep.mubr.msk.f32.mxu1 %vm7696_vm0, %v8641_v34 }
 0x197   :  { %v8686_v26 = vld [vmem:[#allocation2 + $0xb] sm:$0xff]  ;;  %7091 = vmatprep.mubr.msk.f32.mxu0 %vm7696_vm0, %v8641_v34  ;;  %1371 = vst.msk [vmem:[#allocation3 + $0x50] sm:$0xff] %vm1360_vm5, %v1337_v22  ;;  %v1305_v1 = vadd.f32 %v8607_v27, %v1267_v23 }
 0x198   :  { %2743 = vst [vmem:[#allocation2 + $0x8] sm:$0xff] %v8641_v34  ;;  %v1152_v18 = vpop.f32.mrf.mxu0 }
 0x199   :  { %v1338_v35 = vmax.f32 %v1305_v1, 0.0  ;;  %v1268_v36 = vadd.f32 %v1152_v18, %v8554_v9  ;;  %v8702_v9 = vld [vmem:[#allocation2 + $0x10] sm:$0xff] }
 0x19a   :  { %v1436_v25 = vld [vmem:[#allocation3 + $0x40] ss:$2 sm:$0xff]  ;;  %v1452_v40 = vld [vmem:[#allocation3 + $0x41] ss:$2 sm:$0xff]  ;;  %v6913_v42 = vpop.f32.mrf.mxu0 }
 0x19b   :  { %v1463_v43 = vmax.f32 %v1436_v25, %v1452_v40  ;;  %1372 = vst.msk [vmem:[#allocation3 + $0x58] sm:$0xff] %vm1360_vm5, %v1338_v35  ;;  %v1306_v46 = vadd.f32 %v8607_v27, %v1268_v36 }
 0x19c   :  { %v1157_v59 = vpop.f32.mrf.mxu0  ;;  %v1544_v49 = vld [vmem:[#allocation2 + $0x19] sm:$0xff] }
 0x19d   :  { %v1971_v52 = vld [vmem:[#allocation2 + $0x1a] sm:$0xff]  ;;  %1471 = vst.msk [vmem:[#allocation2 + $0x22] sm:$0xff] %vm1360_vm5, %v1463_v43  ;;  %v1339_v54 = vmax.f32 %v1306_v46, 0.0  ;;  %v1269_v58 = vadd.f32 %v1157_v59, %v8560_v28  ;;  %6986 = vmatmul.mubr.msk.f32.gmra.mxu1 %vm1360_vm5, %v1544_v49 }
 0x19e   :  { %7092 = vmatmul.mubr.msk.f32.gmra.mxu0 %vm1360_vm5, %v1971_v52  ;;  %v8704_v61 = vld [vmem:[#allocation2 + $0x14] sm:$0xff]  ;;  %v6916_v63 = vpop.f32.mrf.mxu0  ;;  %6988 = vmatprep.mubr.msk.f32.mxu1 %vm7696_vm0, %v8641_v34 }
 0x19f   :  { %v8706_v3 = vld [vmem:[#allocation2 + $0x13] sm:$0xff]  ;;  %7094 = vmatprep.mubr.msk.f32.mxu0 %vm7696_vm0, %v8641_v34  ;;  %1373 = vst.msk [vmem:[#allocation3 + $0x60] sm:$0xff] %vm1360_vm5, %v1339_v54  ;;  %v1307_v28 = vadd.f32 %v8607_v27, %v1269_v58 }
 0x1a0   :  { %2744 = vst [vmem:[#allocation2 + $0x10] sm:$0xff] %v8641_v34  ;;  %v1162_v4 = vpop.f32.mrf.mxu0 }
 0x1a1   :  { %v1340_v10 = vmax.f32 %v1307_v28, 0.0  ;;  %v1270_v47 = vadd.f32 %v1162_v4, %v8566_v41  ;;  %v8722_v41 = vld [vmem:[#allocation2 + $0x18] sm:$0xff] }
 0x1a2   :  { %v1438_v13 = vld [vmem:[#allocation3 + $0x50] ss:$2 sm:$0xff]  ;;  %v1454_v14 = vld [vmem:[#allocation3 + $0x51] ss:$2 sm:$0xff]  ;;  %v6919_v33 = vpop.f32.mrf.mxu0 }
 0x1a3   :  { %v1464_v30 = vmax.f32 %v1438_v13, %v1454_v14  ;;  %1374 = vst.msk [vmem:[#allocation3 + $0x68] sm:$0xff] %vm1360_vm5, %v1340_v10  ;;  %v1308_v32 = vadd.f32 %v8607_v27, %v1270_v47 }
 0x1a4   :  { %v1167_v51 = vpop.f32.mrf.mxu0  ;;  %v1545_v2 = vld [vmem:[#allocation2 + $0x21] sm:$0xff] }
 0x1a5   :  { %v1972_v6 = vld [vmem:[#allocation2 + $0x22] sm:$0xff]  ;;  %1472 = vst.msk [vmem:[#allocation2 + $0x2a] sm:$0xff] %vm1360_vm5, %v1464_v30  ;;  %v1341_v15 = vmax.f32 %v1308_v32, 0.0  ;;  %v1271_v57 = vadd.f32 %v1167_v51, %v8572_v12  ;;  %6989 = vmatmul.mubr.msk.f32.gmra.mxu1 %vm1360_vm5, %v1545_v2 }
 0x1a6   :  { %7095 = vmatmul.mubr.msk.f32.gmra.mxu0 %vm1360_vm5, %v1972_v6  ;;  %v8724_v21 = vld [vmem:[#allocation2 + $0x1c] sm:$0xff]  ;;  %v6922_v23 = vpop.f32.mrf.mxu0  ;;  %6991 = vmatprep.mubr.msk.f32.mxu1 %vm7696_vm0, %v8641_v34 }
 0x1a7   :  { %v8726_v22 = vld [vmem:[#allocation2 + $0x1b] sm:$0xff]  ;;  %7097 = vmatprep.mubr.msk.f32.mxu0 %vm7696_vm0, %v8641_v34  ;;  %1375 = vst.msk [vmem:[#allocation3 + $0x70] sm:$0xff] %vm1360_vm5, %v1341_v15  ;;  %v1309_v12 = vadd.f32 %v8607_v27, %v1271_v57 }
 0x1a8   :  { %2745 = vst [vmem:[#allocation2 + $0x18] sm:$0xff] %v8641_v34  ;;  %v1172_v50 = vpop.f32.mrf.mxu0 }
 0x1a9   :  { %v1342_v1 = vmax.f32 %v1309_v12, 0.0  ;;  %v1272_v18 = vadd.f32 %v1172_v50, %v8574_v19  ;;  %v8742_v19 = vld [vmem:[#allocation2 + $0x20] sm:$0xff] }
 0x1aa   :  { %v1440_v35 = vld [vmem:[#allocation3 + $0x60] ss:$2 sm:$0xff]  ;;  %v1456_v36 = vld [vmem:[#allocation3 + $0x61] ss:$2 sm:$0xff]  ;;  %v6925_v25 = vpop.f32.mrf.mxu0 }
 0x1ab   :  { %v1465_v40 = vmax.f32 %v1440_v35, %v1456_v36  ;;  %1376 = vst.msk [vmem:[#allocation3 + $0x78] sm:$0xff] %vm1360_vm5, %v1342_v1  ;;  %v1310_v42 = vadd.f32 %v8607_v27, %v1272_v18 }
 0x1ac   :  { %v1177_v43 = vpop.f32.mrf.mxu0  ;;  %v1546_v46 = vld [vmem:[#allocation2 + $0x29] sm:$0xff] }
 0x1ad   :  { %v1973_v59 = vld [vmem:[#allocation2 + $0x2a] sm:$0xff]  ;;  %1473 = vst.msk [vmem:[#allocation2 + $0x32] sm:$0xff] %vm1360_vm5, %v1465_v40  ;;  %v1343_v49 = vmax.f32 %v1310_v42, 0.0  ;;  %v1273_v52 = vadd.f32 %v1177_v43, %v8576_v29  ;;  %6992 = vmatmul.mubr.msk.f32.gmra.mxu1 %vm1360_vm5, %v1546_v46 }
 0x1ae   :  { %7098 = vmatmul.mubr.msk.f32.gmra.mxu0 %vm1360_vm5, %v1973_v59  ;;  %v8744_v54 = vld [vmem:[#allocation2 + $0x24] sm:$0xff]  ;;  %v6928_v63 = vpop.f32.mrf.mxu0  ;;  %6994 = vmatprep.mubr.msk.f32.mxu1 %vm7696_vm0, %v8641_v34 }
 0x1af   :  { %v8746_v58 = vld [vmem:[#allocation2 + $0x23] sm:$0xff]  ;;  %7100 = vmatprep.mubr.msk.f32.mxu0 %vm7696_vm0, %v8641_v34  ;;  %1377 = vst.msk [vmem:[#allocation3 + $0x80] sm:$0xff] %vm1360_vm5, %v1343_v49  ;;  %v1311_v29 = vadd.f32 %v8607_v27, %v1273_v52 }
 0x1b0   :  { %2746 = vst [vmem:[#allocation2 + $0x20] sm:$0xff] %v8641_v34  ;;  %v1182_v28 = vpop.f32.mrf.mxu0 }
 0x1b1   :  { %v1344_v4 = vmax.f32 %v1311_v29, 0.0  ;;  %v1274_v10 = vadd.f32 %v1182_v28, %v8578_v38  ;;  %v8762_v38 = vld [vmem:[#allocation2 + $0x28] sm:$0xff] }
 0x1b2   :  { %v1442_v47 = vld [vmem:[#allocation3 + $0x70] ss:$2 sm:$0xff]  ;;  %v1458_v13 = vld [vmem:[#allocation3 + $0x71] ss:$2 sm:$0xff]  ;;  %v6931_v14 = vpop.f32.mrf.mxu0 }
 0x1b3   :  { %v1466_v33 = vmax.f32 %v1442_v47, %v1458_v13  ;;  %1378 = vst.msk [vmem:[#allocation3 + $0x88] sm:$0xff] %vm1360_vm5, %v1344_v4  ;;  %v1312_v30 = vadd.f32 %v8607_v27, %v1274_v10 }
 0x1b4   :  { %v1187_v32 = vpop.f32.mrf.mxu0  ;;  %v1547_v51 = vld [vmem:[#allocation2 + $0x31] sm:$0xff] }
 0x1b5   :  { %v1974_v2 = vld [vmem:[#allocation2 + $0x32] sm:$0xff]  ;;  %1474 = vst.msk [vmem:[#allocation2 + $0x3a] sm:$0xff] %vm1360_vm5, %v1466_v33  ;;  %v1345_v6 = vmax.f32 %v1312_v30, 0.0  ;;  %v1275_v15 = vadd.f32 %v1187_v32, %v8580_v45  ;;  %6995 = vmatmul.mubr.msk.f32.gmra.mxu1 %vm1360_vm5, %v1547_v51 }
 0x1b6   :  { %7101 = vmatmul.mubr.msk.f32.gmra.mxu0 %vm1360_vm5, %v1974_v2  ;;  %v8764_v57 = vld [vmem:[#allocation2 + $0x2c] sm:$0xff]  ;;  %v6934_v12 = vpop.f32.mrf.mxu0  ;;  %6997 = vmatprep.mubr.msk.f32.mxu1 %vm7696_vm0, %v8641_v34 }
 0x1b7   :  { %v8766_v23 = vld [vmem:[#allocation2 + $0x2b] sm:$0xff]  ;;  %7103 = vmatprep.mubr.msk.f32.mxu0 %vm7696_vm0, %v8641_v34  ;;  %1379 = vst.msk [vmem:[#allocation3 + $0x90] sm:$0xff] %vm1360_vm5, %v1345_v6  ;;  %v1313_v45 = vadd.f32 %v8607_v27, %v1275_v15 }
 0x1b8   :  { %2747 = vst [vmem:[#allocation2 + $0x28] sm:$0xff] %v8641_v34  ;;  %v1192_v50 = vpop.f32.mrf.mxu0  ;;  %v8778_v25 = vld [vmem:[#allocation2 + $0x30] sm:$0xff] }
 0x1b9   :  { %v1346_v1 = vmax.f32 %v1313_v45, 0.0  ;;  %v1276_v18 = vadd.f32 %v1192_v50, %v8582_v53 }
 0x1ba   :  { %v6937_v35 = vpop.f32.mrf.mxu0 }
 0x1bb   :  { %1380 = vst.msk [vmem:[#allocation3 + $0x98] sm:$0xff] %vm1360_vm5, %v1346_v1  ;;  %v1314_v36 = vadd.f32 %v8607_v27, %v1276_v18 }
 0x1bc   :  { %v1197_v40 = vpop.f32.mrf.mxu0  ;;  %v1548_v42 = vld [vmem:[#allocation2 + $0x39] sm:$0xff] }
 0x1bd   :  { %v1975_v43 = vld [vmem:[#allocation2 + $0x3a] sm:$0xff]  ;;  %v1347_v59 = vmax.f32 %v1314_v36, 0.0  ;;  %v1277_v49 = vadd.f32 %v1197_v40, %v8584_v62  ;;  %6998 = vmatmul.mubr.msk.f32.gmra.mxu1 %vm1360_vm5, %v1548_v42 }
 0x1be   :  { %v8780_v46 = vld [vmem:[#allocation2 + $0x34] sm:$0xff]  ;;  %7104 = vmatmul.mubr.msk.f32.gmra.mxu0 %vm1360_vm5, %v1975_v43  ;;  %v8787_v52 = vld [vmem:[#allocation2 + $0x3c] sm:$0xff]  ;;  %v6940_v4 = vpop.f32.mrf.mxu0  ;;  %7000 = vmatprep.mubr.msk.f32.mxu1 %vm7696_vm0, %v8641_v34 }
 0x1bf   :  { %v8785_v53 = vld [vmem:[#allocation2 + $0x38] sm:$0xff]  ;;  %7106 = vmatprep.mubr.msk.f32.mxu0 %vm7696_vm0, %v8641_v34  ;;  %1381 = vst.msk [vmem:[#allocation3 + $0xa0] sm:$0xff] %vm1360_vm5, %v1347_v59  ;;  %v1315_v47 = vadd.f32 %v8607_v27, %v1277_v49 }
 0x1c0   :  { %v8789_v63 = vld [vmem:[#allocation2 + $0x33] sm:$0xff]  ;;  %v8796_v62 = vld [vmem:[#allocation2 + $0x3b] sm:$0xff]  ;;  %v1202_v13 = vpop.f32.mrf.mxu0 }
 0x1c1   :  { %v1476_v29 = vld [vmem:[#allocation3 + $0x82] ss:$2 sm:$0xff]  ;;  %v1492_v28 = vld [vmem:[#allocation3 + $0x83] ss:$2 sm:$0xff]  ;;  %2748 = vst [vmem:[#allocation2 + $0x30] sm:$0xff] %v8641_v34  ;;  %2749 = vst [vmem:[#allocation2 + $0x38] sm:$0xff] %v8641_v34  ;;  %v1278_v33 = vadd.f32 %v1202_v13, %v8586_v8 }
 0x1c2   :  { %v1507_v10 = vmax.f32 %v1476_v29, %v1492_v28  ;;  %v1348_v14 = vmax.f32 %v1315_v47, 0.0  ;;  %v6943_v30 = vpop.f32.mrf.mxu0 }
 0x1c3   :  { %v1316_v32 = vadd.f32 %v8607_v27, %v1278_v33 }
 0x1c4   :  { %1515 = vst.msk [vmem:[#allocation2 + $0x46] sm:$0xff] %vm1360_vm5, %v1507_v10  ;;  %1382 = vst.msk [vmem:[#allocation3 + $0xa8] sm:$0xff] %vm1360_vm5, %v1348_v14  ;;  %v1207_v51 = vpop.f32.mrf.mxu0 }
 0x1c5   :  { %v1349_v2 = vmax.f32 %v1316_v32, 0.0  ;;  %v1279_v6 = vadd.f32 %v1207_v51, %v8588_v31 }
 0x1c6   :  { %v1478_v15 = vld [vmem:[#allocation3 + $0x92] ss:$2 sm:$0xff]  ;;  %v1494_v12 = vld [vmem:[#allocation3 + $0x93] ss:$2 sm:$0xff]  ;;  %v6946_v45 = vpop.f32.mrf.mxu0 }
 0x1c7   :  { %v1508_v50 = vmax.f32 %v1478_v15, %v1494_v12  ;;  %1383 = vst.msk [vmem:[#allocation3 + $0xb0] sm:$0xff] %vm1360_vm5, %v1349_v2  ;;  %v1317_v1 = vadd.f32 %v8607_v27, %v1279_v6 }
 0x1c8   :  { %v1212_v18 = vpop.f32.mrf.mxu0 }
 0x1c9   :  { %1516 = vst.msk [vmem:[#allocation2 + $0x4e] sm:$0xff] %vm1360_vm5, %v1508_v50  ;;  %v1350_v36 = vmax.f32 %v1317_v1, 0.0  ;;  %v1280_v40 = vadd.f32 %v1212_v18, %v8590_v20 }
 0x1ca   :  { %v6949_v59 = vpop.f32.mrf.mxu0 }
 0x1cb   :  { %v1549_v35 = vld [vmem:[#allocation2 + $0x41] sm:$0xff]  ;;  %1384 = vst.msk [vmem:[#allocation3 + $0xb8] sm:$0xff] %vm1360_vm5, %v1350_v36  ;;  %v1318_v20 = vadd.f32 %v8607_v27, %v1280_v40 }
 0x1cc   :  { %v1976_v8 = vld [vmem:[#allocation2 + $0x42] sm:$0xff]  ;;  %7001 = vmatmul.mubr.msk.f32.gmra.mxu1 %vm1360_vm5, %v1549_v35  ;;  %v1217_v49 = vpop.f32.mrf.mxu0 }
 0x1cd   :  { %7107 = vmatmul.mubr.msk.f32.gmra.mxu0 %vm1360_vm5, %v1976_v8  ;;  %v8812_v31 = vld [vmem:[#allocation2 + $0x40] sm:$0xff]  ;;  %7003 = vmatprep.mubr.msk.f32.mxu1 %vm7696_vm0, %v8641_v34  ;;  %v1351_v29 = vmax.f32 %v1318_v20, 0.0  ;;  %v1281_v28 = vadd.f32 %v1217_v49, %v8592_v16 }
 0x1ce   :  { %v8814_v42 = vld [vmem:[#allocation2 + $0x44] sm:$0xff]  ;;  %7109 = vmatprep.mubr.msk.f32.mxu0 %vm7696_vm0, %v8641_v34  ;;  %v6952_v47 = vpop.f32.mrf.mxu0 }
 0x1cf   :  { %v8816_v43 = vld [vmem:[#allocation2 + $0x43] sm:$0xff]  ;;  %v1496_v10 = vld [vmem:[#allocation3 + $0xa3] ss:$2 sm:$0xff]  ;;  %1385 = vst.msk [vmem:[#allocation3 + $0xc0] sm:$0xff] %vm1360_vm5, %v1351_v29  ;;  %v1319_v14 = vadd.f32 %v8607_v27, %v1281_v28 }
 0x1d0   :  { %2750 = vst [vmem:[#allocation2 + $0x40] sm:$0xff] %v8641_v34  ;;  %v1480_v4 = vld [vmem:[#allocation3 + $0xa2] ss:$2 sm:$0xff]  ;;  %v1222_v33 = vpop.f32.mrf.mxu0 }
 0x1d1   :  { %v1509_v13 = vmax.f32 %v1480_v4, %v1496_v10  ;;  %v1550_v30 = vld [vmem:[#allocation2 + $0x49] sm:$0xff]  ;;  %v1352_v51 = vmax.f32 %v1319_v14, 0.0  ;;  %v1282_v2 = vadd.f32 %v1222_v33, %v8594_v24 }
 0x1d2   :  { %v1977_v32 = vld [vmem:[#allocation2 + $0x4a] sm:$0xff]  ;;  %7004 = vmatmul.mubr.msk.f32.gmra.mxu1 %vm1360_vm5, %v1550_v30  ;;  %v6955_v12 = vpop.f32.mrf.mxu0 }
 0x1d3   :  { %1517 = vst.msk [vmem:[#allocation2 + $0x56] sm:$0xff] %vm1360_vm5, %v1509_v13  ;;  %7110 = vmatmul.mubr.msk.f32.gmra.mxu0 %vm1360_vm5, %v1977_v32  ;;  %v8832_v16 = vld [vmem:[#allocation2 + $0x48] sm:$0xff]  ;;  %7006 = vmatprep.mubr.msk.f32.mxu1 %vm7696_vm0, %v8641_v34  ;;  %1386 = vst.msk [vmem:[#allocation3 + $0xc8] sm:$0xff] %vm1360_vm5, %v1352_v51  ;;  %v1320_v24 = vadd.f32 %v8607_v27, %v1282_v2 }
 0x1d4   :  { %v8834_v6 = vld [vmem:[#allocation2 + $0x4c] sm:$0xff]  ;;  %7112 = vmatprep.mubr.msk.f32.mxu0 %vm7696_vm0, %v8641_v34  ;;  %v1227_v45 = vpop.f32.mrf.mxu0 }
 0x1d5   :  { %v8836_v15 = vld [vmem:[#allocation2 + $0x4b] sm:$0xff]  ;;  %v1353_v50 = vmax.f32 %v1320_v24, 0.0  ;;  %v1283_v1 = vadd.f32 %v1227_v45, %v8596_v0 }
 0x1d6   :  { %2751 = vst [vmem:[#allocation2 + $0x48] sm:$0xff] %v8641_v34  ;;  %v1482_v18 = vld [vmem:[#allocation3 + $0xb2] ss:$2 sm:$0xff]  ;;  %v1498_v35 = vld [vmem:[#allocation3 + $0xb3] ss:$2 sm:$0xff]  ;;  %v6958_v8 = vpop.f32.mrf.mxu0 }
 0x1d7   :  { %v1510_v36 = vmax.f32 %v1482_v18, %v1498_v35  ;;  %1387 = vst.msk [vmem:[#allocation3 + $0xd0] sm:$0xff] %vm1360_vm5, %v1353_v50  ;;  %v1321_v40 = vadd.f32 %v8607_v27, %v1283_v1 }
 0x1d8   :  { %v1232_v59 = vpop.f32.mrf.mxu0 }
 0x1d9   :  { %1518 = vst.msk [vmem:[#allocation2 + $0x5e] sm:$0xff] %vm1360_vm5, %v1510_v36  ;;  %v1354_v29 = vmax.f32 %v1321_v40, 0.0  ;;  %v1284_v28 = vadd.f32 %v1232_v59, %v8598_v48 }
 0x1da   :  { %v1551_v20 = vld [vmem:[#allocation2 + $0x51] sm:$0xff]  ;;  %v6961_v47 = vpop.f32.mrf.mxu0 }
 0x1db   :  { %v1978_v49 = vld [vmem:[#allocation2 + $0x52] sm:$0xff]  ;;  %7007 = vmatmul.mubr.msk.f32.gmra.mxu1 %vm1360_vm5, %v1551_v20  ;;  %1388 = vst.msk [vmem:[#allocation3 + $0xd8] sm:$0xff] %vm1360_vm5, %v1354_v29  ;;  %v1322_v48 = vadd.f32 %v8607_v27, %v1284_v28  ;;  %v887_v47 = vadd.f32 %v8613_v17, %v8469_v44 }
 0x1dc   :  { %7113 = vmatmul.mubr.msk.f32.gmra.mxu0 %vm1360_vm5, %v1978_v49  ;;  %v8852_v0 = vld [vmem:[#allocation2 + $0x50] sm:$0xff]  ;;  %7009 = vmatprep.mubr.msk.f32.mxu1 %vm7696_vm0, %v8641_v34  ;;  %v1237_v13 = vpop.f32.mrf.mxu0 }
 0x1dd   :  { %v8854_v4 = vld [vmem:[#allocation2 + $0x54] sm:$0xff]  ;;  %7115 = vmatprep.mubr.msk.f32.mxu0 %vm7696_vm0, %v8641_v34  ;;  %v1355_v14 = vmax.f32 %v1322_v48, 0.0  ;;  %v1285_v33 = vadd.f32 %v1237_v13, %v8600_v60 }
 0x1de   :  { %v8856_v10 = vld [vmem:[#allocation2 + $0x53] sm:$0xff]  ;;  %v6964_v51 = vpop.f32.mrf.mxu0 }
 0x1df   :  { %2752 = vst [vmem:[#allocation2 + $0x50] sm:$0xff] %v8641_v34  ;;  %v1484_v30 = vld [vmem:[#allocation3 + $0xc2] ss:$2 sm:$0xff]  ;;  %v1500_v32 = vld [vmem:[#allocation3 + $0xc3] ss:$2 sm:$0xff]  ;;  %1389 = vst.msk [vmem:[#allocation3 + $0xe0] sm:$0xff] %vm1360_vm5, %v1355_v14  ;;  %v1323_v12 = vadd.f32 %v8607_v27, %v1285_v33 }
 0x1e0   :  { %v1511_v2 = vmax.f32 %v1484_v30, %v1500_v32  ;;  %v1242_v24 = vpop.f32.mrf.mxu0  ;;  %v1552_v45 = vld [vmem:[#allocation2 + $0x59] sm:$0xff] }
 0x1e1   :  { %v1979_v50 = vld [vmem:[#allocation2 + $0x5a] sm:$0xff]  ;;  %v1356_v1 = vmax.f32 %v1323_v12, 0.0  ;;  %v1286_v18 = vadd.f32 %v1242_v24, %v8602_v7  ;;  %7010 = vmatmul.mubr.msk.f32.gmra.mxu1 %vm1360_vm5, %v1552_v45 }
 0x1e2   :  { %1519 = vst.msk [vmem:[#allocation2 + $0x66] sm:$0xff] %vm1360_vm5, %v1511_v2  ;;  %7116 = vmatmul.mubr.msk.f32.gmra.mxu0 %vm1360_vm5, %v1979_v50  ;;  %v8872_v60 = vld [vmem:[#allocation2 + $0x58] sm:$0xff]  ;;  %v6967_v36 = vpop.f32.mrf.mxu0  ;;  %7012 = vmatprep.mubr.msk.f32.mxu1 %vm7696_vm0, %v8641_v34 }
 0x1e3   :  { %v8874_v35 = vld [vmem:[#allocation2 + $0x5c] sm:$0xff]  ;;  %7118 = vmatprep.mubr.msk.f32.mxu0 %vm7696_vm0, %v8641_v34  ;;  %1390 = vst.msk [vmem:[#allocation3 + $0xe8] sm:$0xff] %vm1360_vm5, %v1356_v1  ;;  %v1324_v7 = vadd.f32 %v8607_v27, %v1286_v18 }
 0x1e4   :  { %v8876_v8 = vld [vmem:[#allocation2 + $0x5b] sm:$0xff]  ;;  %v1247_v40 = vpop.f32.mrf.mxu0 }
 0x1e5   :  { %4985 = vst [vmem:[#allocation2 + $0x58] sm:$0xff] %v8641_v34  ;;  %v1357_v59 = vmax.f32 %v1324_v7, 0.0  ;;  %v1287_v20 = vadd.f32 %v1247_v40, %v8610_v37 }
 0x1e6   :  { %v1486_v49 = vld [vmem:[#allocation3 + $0xd2] ss:$2 sm:$0xff]  ;;  %v1502_v29 = vld [vmem:[#allocation3 + $0xd3] ss:$2 sm:$0xff]  ;;  %v6970_v28 = vpop.f32.mrf.mxu0 }
 0x1e7   :  { %v1512_v48 = vmax.f32 %v1486_v49, %v1502_v29  ;;  %1391 = vst.msk [vmem:[#allocation3 + $0xf0] sm:$0xff] %vm1360_vm5, %v1357_v59  ;;  %v1325_v13 = vadd.f32 %v8607_v27, %v1287_v20 }
 0x1e8   :  { %v1252_v14 = vpop.f32.mrf.mxu0 }
 0x1e9   :  { %v1553_v33 = vld [vmem:[#allocation2 + $0x61] sm:$0xff]  ;;  %1520 = vst.msk [vmem:[#allocation2 + $0x6e] sm:$0xff] %vm1360_vm5, %v1512_v48  ;;  %v1358_v32 = vmax.f32 %v1325_v13, 0.0  ;;  %v1288_v51 = vadd.f32 %v1252_v14, %v887_v47 }
 0x1ea   :  { %v1980_v30 = vld [vmem:[#allocation2 + $0x62] sm:$0xff]  ;;  %7013 = vmatmul.mubr.msk.f32.gmra.mxu1 %vm1360_vm5, %v1553_v33  ;;  %v6973_v17 = vpop.f32.mrf.mxu0 }
 0x1eb   :  { %7119 = vmatmul.mubr.msk.f32.gmra.mxu0 %vm1360_vm5, %v1980_v30  ;;  %v8893_v37 = vld [vmem:[#allocation2 + $0x60] sm:$0xff]  ;;  %7015 = vmatprep.mubr.msk.f32.mxu1 %vm7696_vm0, %v8641_v34  ;;  %1392 = vst.msk [vmem:[#allocation3 + $0xf8] sm:$0xff] %vm1360_vm5, %v1358_v32  ;;  %v1326_v12 = vadd.f32 %v8607_v27, %v1288_v51 }
 0x1ec   :  { %v8895_v2 = vld [vmem:[#allocation2 + $0x64] sm:$0xff]  ;;  %7121 = vmatprep.mubr.msk.f32.mxu0 %vm7696_vm0, %v8641_v34 }
 0x1ed   :  { %v8897_v44 = vld [vmem:[#allocation2 + $0x63] sm:$0xff]  ;;  %v1359_v24 = vmax.f32 %v1326_v12, 0.0 }
 0x1ee   :  { %4986 = vst [vmem:[#allocation2 + $0x60] sm:$0xff] %v8641_v34  ;;  %v1488_v45 = vld [vmem:[#allocation3 + $0xe2] ss:$2 sm:$0xff]  ;;  %v1504_v50 = vld [vmem:[#allocation3 + $0xe3] ss:$2 sm:$0xff] }
 0x1ef   :  { %v1513_v1 = vmax.f32 %v1488_v45, %v1504_v50  ;;  %1394 = vst.msk [vmem:[#allocation3 + $0x100] sm:$0xf] %vm1393_vm6, %v1359_v24 }
 0x1f0   :  { %v1554_v18 = vld [vmem:[#allocation2 + $0x69] sm:$0xff] }
 0x1f1   :  { %v1981_v36 = vld [vmem:[#allocation2 + $0x6a] sm:$0xff]  ;;  %1521 = vst.msk [vmem:[#allocation2 + $0x76] sm:$0xff] %vm1360_vm5, %v1513_v1  ;;  %7016 = vmatmul.mubr.msk.f32.gmra.mxu1 %vm1360_vm5, %v1554_v18 }
 0x1f2   :  { %7122 = vmatmul.mubr.msk.f32.gmra.mxu0 %vm1360_vm5, %v1981_v36  ;;  %v8909_v7 = vld [vmem:[#allocation2 + $0x68] sm:$0xff]  ;;  %7018 = vmatprep.mubr.msk.f32.mxu1 %vm7696_vm0, %v8641_v34 }
 0x1f3   :  { %v8911_v40 = vld [vmem:[#allocation2 + $0x6c] sm:$0xff]  ;;  %7124 = vmatprep.mubr.msk.f32.mxu0 %vm7696_vm0, %v8641_v34 }
 0x1f4   :  { %v8913_v59 = vld [vmem:[#allocation2 + $0x6b] sm:$0xff] }
 0x1f5   :  { %4987 = vst [vmem:[#allocation2 + $0x68] sm:$0xff] %v8641_v34  ;;  %v2224_v1 = vld [vmem:[%s10757_s2 + $0xc] sm:$0xf]  ;;  %s7697_s2 = smov 48  }
 0x1f6   :  { %v1490_v27 = vld [vmem:[#allocation3 + $0xf2] ss:$2 sm:$0xff]  ;;  %v1506_v20 = vld [vmem:[#allocation3 + $0xf3] ss:$2 sm:$0xff] }
 0x1f7   :  { %v1514_v49 = vmax.f32 %v1490_v27, %v1506_v20 }
 0x1f8   :  { %v1555_v29 = vld [vmem:[#allocation2 + $0x71] sm:$0xff] }
 0x1f9   :  { %v1982_v28 = vld [vmem:[#allocation2 + $0x72] sm:$0xff]  ;;  %1522 = vst.msk [vmem:[#allocation2 + $0x7e] sm:$0xff] %vm1360_vm5, %v1514_v49  ;;  %7019 = vmatmul.mubr.msk.f32.gmra.mxu1 %vm1360_vm5, %v1555_v29 }
 0x1fa   :  { %7125 = vmatmul.mubr.msk.f32.gmra.mxu0 %vm1360_vm5, %v1982_v28  ;;  %v8923_v47 = vld [vmem:[#allocation2 + $0x70] sm:$0xff]  ;;  %7021 = vmatprep.mubr.msk.f32.mxu1 %vm7696_vm0, %v8641_v34  ;;  %v2836_v28 = vld [vmem:[%s10758_s3 + $0x8] sm:$0xff] }
 0x1fb   :  { %v8925_v48 = vld [vmem:[#allocation2 + $0x74] sm:$0xff]  ;;  %7127 = vmatprep.mubr.msk.f32.mxu0 %vm7696_vm0, %v8641_v34 }
 0x1fc   :  { %v8927_v13 = vld [vmem:[#allocation2 + $0x73] sm:$0xff] }
 0x1fd   :  { %4988 = vst [vmem:[#allocation2 + $0x70] sm:$0xff] %v8641_v34 }
 0x200   :  { %v1556_v14 = vld [vmem:[#allocation2 + $0x79] sm:$0xff]  ;;  %v1557_v30 = vld [vmem:[#allocation2 + $0x81] sm:$0xff] }
 0x201   :  { %v1983_v33 = vld [vmem:[#allocation2 + $0x7a] sm:$0xff]  ;;  %7022 = vmatmul.mubr.msk.f32.gmra.mxu1 %vm1360_vm5, %v1556_v14  ;;  %v1984_v32 = vld [vmem:[#allocation2 + $0x82] sm:$0xff] }
 0x202   :  { %7128 = vmatmul.mubr.msk.f32.gmra.mxu0 %vm1360_vm5, %v1983_v33  ;;  %7024 = vmatprep.mubr.msk.f32.mxu1 %vm7696_vm0, %v8641_v34  ;;  %v8940_v51 = vld [vmem:[#allocation2 + $0x78] sm:$0xff]  ;;  %v8946_v24 = vld [vmem:[#allocation2 + $0x80] sm:$0xff] }
 0x203   :  { %7130 = vmatprep.mubr.msk.f32.mxu0 %vm7696_vm0, %v8641_v34  ;;  %v8942_v17 = vld [vmem:[#allocation2 + $0x7c] sm:$0xff]  ;;  %v8948_v45 = vld [vmem:[#allocation2 + $0x84] sm:$0xff] }
 0x204   :  { %v8944_v12 = vld [vmem:[#allocation2 + $0x7b] sm:$0xff]  ;;  %v8951_v50 = vld [vmem:[#allocation2 + $0x83] sm:$0xff] }
 0x205   :  { %4989 = vst [vmem:[#allocation2 + $0x78] sm:$0xff] %v8641_v34  ;;  %4990 = vst [vmem:[#allocation2 + $0x80] sm:$0xff] %v8641_v34  ;;  %7025 = vmatmul.mubr.msk.f32.gmra.mxu1 %vm1360_vm5, %v1557_v30 }
 0x206   :  { %4991 = vst [vmem:[#allocation2 + $0x88] sm:$0xff] %v8641_v34  ;;  %7131 = vmatmul.mubr.msk.f32.gmra.mxu0 %vm1360_vm5, %v1984_v32  ;;  %7029 = vmatprep.mubr.msk.f32.mxu1 %vm7696_vm0, %v8641_v34 }
 0x207   :  { %7188 = vmatprep.mubr.msk.f32.mxu0 %vm7696_vm0, %v8641_v34 }
 0x209   :  { %7030 = vmatmul.mubr.msk.f32.vlgmr.msra.gmra.mxu1 %vm1360_vm5, %v8662_v39 }
 0x20a   :  { %7189 = vmatmul.mubr.msk.f32.vlgmr.msra.gmra.mxu0 %vm1360_vm5, %v8664_v5  ;;  %7134 = vmatpush3.msk.msra.mxu1 %vm1610_vm4, %v2224_v1 }
 0x20b   :  { %7032 = vmatprep.mubr.msk.f32.mxu1 %vm7696_vm0, %v8641_v34  ;;  %7191 = vmatprep.mubr.msk.f32.mxu0 %vm7696_vm0, %v8641_v34 }
 0x20c   :  { %7239 = vmatprep.subr.mxu1 %v2836_v28 }
 0x20d   :  { %7033 = vmatmul.mubr.msk.f32.gmra.mxu1 %vm1360_vm5, %v8682_v56 }
 0x20e   :  { %7192 = vmatmul.mubr.msk.f32.gmra.mxu0 %vm1360_vm5, %v8684_v55  ;;  %7035 = vmatprep.mubr.msk.f32.mxu1 %vm7696_vm0, %v8641_v34 }
 0x20f   :  { %7194 = vmatprep.mubr.msk.f32.mxu0 %vm7696_vm0, %v8641_v34 }
 0x211   :  { %7036 = vmatmul.mubr.msk.f32.gmra.mxu1 %vm1360_vm5, %v8702_v9 }
 0x212   :  { %7195 = vmatmul.mubr.msk.f32.gmra.mxu0 %vm1360_vm5, %v8704_v61  ;;  %7038 = vmatprep.mubr.msk.f32.mxu1 %vm7696_vm0, %v8641_v34 }
 0x213   :  { %7197 = vmatprep.mubr.msk.f32.mxu0 %vm7696_vm0, %v8641_v34 }
 0x215   :  { %7039 = vmatmul.mubr.msk.f32.gmra.mxu1 %vm1360_vm5, %v8722_v41 }
 0x216   :  { %7198 = vmatmul.mubr.msk.f32.gmra.mxu0 %vm1360_vm5, %v8724_v21  ;;  %7041 = vmatprep.mubr.msk.f32.mxu1 %vm7696_vm0, %v8641_v34 }
 0x217   :  { %7200 = vmatprep.mubr.msk.f32.mxu0 %vm7696_vm0, %v8641_v34 }
 0x219   :  { %7042 = vmatmul.mubr.msk.f32.gmra.mxu1 %vm1360_vm5, %v8742_v19 }
 0x21a   :  { %7201 = vmatmul.mubr.msk.f32.gmra.mxu0 %vm1360_vm5, %v8744_v54  ;;  %7044 = vmatprep.mubr.msk.f32.mxu1 %vm7696_vm0, %v8641_v34 }
 0x21b   :  { %7203 = vmatprep.mubr.msk.f32.mxu0 %vm7696_vm0, %v8641_v34 }
 0x21d   :  { %7045 = vmatmul.mubr.msk.f32.gmra.mxu1 %vm1360_vm5, %v8762_v38 }
 0x21e   :  { %7204 = vmatmul.mubr.msk.f32.gmra.mxu0 %vm1360_vm5, %v8764_v57  ;;  %7047 = vmatprep.mubr.msk.f32.mxu1 %vm7696_vm0, %v8641_v34 }
 0x21f   :  { %7206 = vmatprep.mubr.msk.f32.mxu0 %vm7696_vm0, %v8641_v34 }
 0x221   :  { %7048 = vmatmul.mubr.msk.f32.gmra.mxu1 %vm1360_vm5, %v8778_v25 }
 0x222   :  { %7207 = vmatmul.mubr.msk.f32.gmra.mxu0 %vm1360_vm5, %v8780_v46  ;;  %7050 = vmatprep.mubr.msk.f32.mxu1 %vm7696_vm0, %v8641_v34 }
 0x223   :  { %7209 = vmatprep.mubr.msk.f32.mxu0 %vm7696_vm0, %v8641_v34 }
 0x225   :  { %7051 = vmatmul.mubr.msk.f32.gmra.mxu1 %vm1360_vm5, %v8785_v53 }
 0x226   :  { %7210 = vmatmul.mubr.msk.f32.gmra.mxu0 %vm1360_vm5, %v8787_v52  ;;  %7053 = vmatprep.mubr.msk.f32.mxu1 %vm7696_vm0, %v8641_v34 }
 0x227   :  { %7212 = vmatprep.mubr.msk.f32.mxu0 %vm7696_vm0, %v8641_v34 }
 0x229   :  { %7054 = vmatmul.mubr.msk.f32.gmra.mxu1 %vm1360_vm5, %v8812_v31 }
 0x22a   :  { %7213 = vmatmul.mubr.msk.f32.gmra.mxu0 %vm1360_vm5, %v8814_v42  ;;  %7056 = vmatprep.mubr.msk.f32.mxu1 %vm7696_vm0, %v8641_v34 }
 0x22b   :  { %7215 = vmatprep.mubr.msk.f32.mxu0 %vm7696_vm0, %v8641_v34 }
 0x22d   :  { %7057 = vmatmul.mubr.msk.f32.gmra.mxu1 %vm1360_vm5, %v8832_v16 }
 0x22e   :  { %7216 = vmatmul.mubr.msk.f32.gmra.mxu0 %vm1360_vm5, %v8834_v6  ;;  %7059 = vmatprep.mubr.msk.f32.mxu1 %vm7696_vm0, %v8641_v34 }
 0x22f   :  { %7218 = vmatprep.mubr.msk.f32.mxu0 %vm7696_vm0, %v8641_v34 }
 0x231   :  { %7060 = vmatmul.mubr.msk.f32.gmra.mxu1 %vm1360_vm5, %v8852_v0 }
 0x232   :  { %7219 = vmatmul.mubr.msk.f32.gmra.mxu0 %vm1360_vm5, %v8854_v4  ;;  %7062 = vmatprep.mubr.msk.f32.mxu1 %vm7696_vm0, %v8641_v34 }
 0x233   :  { %7221 = vmatprep.mubr.msk.f32.mxu0 %vm7696_vm0, %v8641_v34 }
 0x235   :  { %7063 = vmatmul.mubr.msk.f32.gmra.mxu1 %vm1360_vm5, %v8872_v60 }
 0x236   :  { %7222 = vmatmul.mubr.msk.f32.gmra.mxu0 %vm1360_vm5, %v8874_v35  ;;  %7065 = vmatprep.mubr.msk.f32.mxu1 %vm7696_vm0, %v8641_v34 }
 0x237   :  { %7224 = vmatprep.mubr.msk.f32.mxu0 %vm7696_vm0, %v8641_v34 }
 0x239   :  { %7066 = vmatmul.mubr.msk.f32.gmra.mxu1 %vm1360_vm5, %v8893_v37 }
 0x23a   :  { %7225 = vmatmul.mubr.msk.f32.gmra.mxu0 %vm1360_vm5, %v8895_v2  ;;  %7068 = vmatprep.mubr.msk.f32.mxu1 %vm7696_vm0, %v8641_v34 }
 0x23b   :  { %7227 = vmatprep.mubr.msk.f32.mxu0 %vm7696_vm0, %v8641_v34 }
 0x23d   :  { %7069 = vmatmul.mubr.msk.f32.gmra.mxu1 %vm1360_vm5, %v8909_v7 }
 0x23e   :  { %7228 = vmatmul.mubr.msk.f32.gmra.mxu0 %vm1360_vm5, %v8911_v40  ;;  %7071 = vmatprep.mubr.msk.f32.mxu1 %vm7696_vm0, %v8641_v34 }
 0x23f   :  { %7230 = vmatprep.mubr.msk.f32.mxu0 %vm7696_vm0, %v8641_v34 }
 0x241   :  { %7072 = vmatmul.mubr.msk.f32.gmra.mxu1 %vm1360_vm5, %v8923_v47 }
 0x242   :  { %7231 = vmatmul.mubr.msk.f32.gmra.mxu0 %vm1360_vm5, %v8925_v48  ;;  %7074 = vmatprep.mubr.msk.f32.mxu1 %vm7696_vm0, %v8641_v34 }
 0x243   :  { %7233 = vmatprep.mubr.msk.f32.mxu0 %vm7696_vm0, %v8641_v34 }
 0x245   :  { %v9085_v39 = vpop.f32.mrf.mxu1  ;;  %7075 = vmatmul.mubr.msk.f32.gmra.mxu1 %vm1360_vm5, %v8940_v51 }
 0x246   :  { %v9089_v5 = vpop.f32.mrf.mxu0  ;;  %7234 = vmatmul.mubr.msk.f32.gmra.mxu0 %vm1360_vm5, %v8942_v17  ;;  %7077 = vmatprep.mubr.msk.f32.mxu1 %vm7696_vm0, %v8641_v34 }
 0x247   :  { %7236 = vmatprep.mubr.msk.f32.mxu0 %vm7696_vm0, %v8641_v34  ;;  %v6978_v56 = vpop.f32.mrf.mxu1 }
 0x248   :  { %v7084_v55 = vpop.f32.mrf.mxu0 }
 0x249   :  { %7078 = vmatmul.mubr.msk.f32.gmra.mxu1 %vm1360_vm5, %v8946_v24 }
 0x24a   :  { %7237 = vmatmul.mubr.msk.f32.gmra.mxu0 %vm1360_vm5, %v8948_v45  ;;  %7135 = vmatprep.mubr.msk.f32.mxu1 %vm7696_vm0, %v8641_v34 }
 0x24d   :  { %v9103_v9 = vpop.f32.mrf.mxu1  ;;  %7136 = vmatmul.mubr.msk.f32.vlgmr.msra.gmra.mxu1 %vm1360_vm5, %v8666_v11 }
 0x24e   :  { %v9105_v61 = vpop.f32.mrf.mxu0  ;;  %7138 = vmatprep.mubr.msk.f32.mxu1 %vm7696_vm0, %v8641_v34  ;;  %7240 = vmatpush3.msra.mxu1 %v2836_v28 }
 0x24f   :  { %v6981_v41 = vpop.f32.mrf.mxu1 }
 0x250   :  { %v7087_v21 = vpop.f32.mrf.mxu0 }
 0x251   :  { %7139 = vmatmul.mubr.msk.f32.gmra.mxu1 %vm1360_vm5, %v8686_v26 }
 0x252   :  { %7141 = vmatprep.mubr.msk.f32.mxu1 %vm7696_vm0, %v8641_v34 }
 0x255   :  { %v9115_v19 = vpop.f32.mrf.mxu1  ;;  %7142 = vmatmul.mubr.msk.f32.gmra.mxu1 %vm1360_vm5, %v8706_v3 }
 0x256   :  { %v9117_v54 = vpop.f32.mrf.mxu0  ;;  %7144 = vmatprep.mubr.msk.f32.mxu1 %vm7696_vm0, %v8641_v34 }
 0x257   :  { %v6984_v11 = vpop.f32.mrf.mxu1 }
 0x258   :  { %v7090_v38 = vpop.f32.mrf.mxu0 }
 0x259   :  { %7145 = vmatmul.mubr.msk.f32.gmra.mxu1 %vm1360_vm5, %v8726_v22 }
 0x25a   :  { %7147 = vmatprep.mubr.msk.f32.mxu1 %vm7696_vm0, %v8641_v34 }
 0x25d   :  { %v9127_v26 = vpop.f32.mrf.mxu1  ;;  %7148 = vmatmul.mubr.msk.f32.gmra.mxu1 %vm1360_vm5, %v8746_v58 }
 0x25e   :  { %v9129_v57 = vpop.f32.mrf.mxu0  ;;  %7150 = vmatprep.mubr.msk.f32.mxu1 %vm7696_vm0, %v8641_v34 }
 0x25f   :  { %v6987_v3 = vpop.f32.mrf.mxu1 }
 0x260   :  { %v7093_v25 = vpop.f32.mrf.mxu0 }
 0x261   :  { %7151 = vmatmul.mubr.msk.f32.gmra.mxu1 %vm1360_vm5, %v8766_v23 }
 0x262   :  { %7153 = vmatprep.mubr.msk.f32.mxu1 %vm7696_vm0, %v8641_v34 }
 0x265   :  { %v9139_v22 = vpop.f32.mrf.mxu1  ;;  %7154 = vmatmul.mubr.msk.f32.gmra.mxu1 %vm1360_vm5, %v8789_v63 }
 0x266   :  { %v9141_v46 = vpop.f32.mrf.mxu0  ;;  %7156 = vmatprep.mubr.msk.f32.mxu1 %vm7696_vm0, %v8641_v34 }
 0x267   :  { %v6990_v58 = vpop.f32.mrf.mxu1 }
 0x268   :  { %v7096_v53 = vpop.f32.mrf.mxu0 }
 0x269   :  { %7157 = vmatmul.mubr.msk.f32.gmra.mxu1 %vm1360_vm5, %v8796_v62 }
 0x26a   :  { %7159 = vmatprep.mubr.msk.f32.mxu1 %vm7696_vm0, %v8641_v34 }
 0x26d   :  { %v9151_v23 = vpop.f32.mrf.mxu1  ;;  %7160 = vmatmul.mubr.msk.f32.gmra.mxu1 %vm1360_vm5, %v8816_v43 }
 0x26e   :  { %v9153_v52 = vpop.f32.mrf.mxu0  ;;  %7162 = vmatprep.mubr.msk.f32.mxu1 %vm7696_vm0, %v8641_v34 }
 0x26f   :  { %v6993_v63 = vpop.f32.mrf.mxu1 }
 0x270   :  { %v7099_v31 = vpop.f32.mrf.mxu0 }
 0x271   :  { %7163 = vmatmul.mubr.msk.f32.gmra.mxu1 %vm1360_vm5, %v8836_v15 }
 0x272   :  { %7165 = vmatprep.mubr.msk.f32.mxu1 %vm7696_vm0, %v8641_v34 }
 0x275   :  { %v9163_v62 = vpop.f32.mrf.mxu1  ;;  %7166 = vmatmul.mubr.msk.f32.gmra.mxu1 %vm1360_vm5, %v8856_v10  ;;  %v9189_v10 = vld [vmem:[#allocation2 + $0x90] sm:$0xff] }
 0x276   :  { %v9165_v42 = vpop.f32.mrf.mxu0  ;;  %7168 = vmatprep.mubr.msk.f32.mxu1 %vm7696_vm0, %v8641_v34 }
 0x277   :  { %v6996_v43 = vpop.f32.mrf.mxu1 }
 0x278   :  { %v7102_v16 = vpop.f32.mrf.mxu0 }
 0x279   :  { %7169 = vmatmul.mubr.msk.f32.gmra.mxu1 %vm1360_vm5, %v8876_v8 }
 0x27a   :  { %7171 = vmatprep.mubr.msk.f32.mxu1 %vm7696_vm0, %v8641_v34 }
 0x27d   :  { %v9175_v6 = vpop.f32.mrf.mxu1  ;;  %7172 = vmatmul.mubr.msk.f32.gmra.mxu1 %vm1360_vm5, %v8897_v44 }
 0x27e   :  { %v9177_v15 = vpop.f32.mrf.mxu0  ;;  %7174 = vmatprep.mubr.msk.f32.mxu1 %vm7696_vm0, %v8641_v34 }
 0x27f   :  { %v6999_v0 = vpop.f32.mrf.mxu1 }
 0x280   :  { %v7105_v4 = vpop.f32.mrf.mxu0 }
 0x281   :  { %7175 = vmatmul.mubr.msk.f32.gmra.mxu1 %vm1360_vm5, %v8913_v59 }
 0x282   :  { %7177 = vmatprep.mubr.msk.f32.mxu1 %vm7696_vm0, %v8641_v34 }
 0x285   :  { %7178 = vmatmul.mubr.msk.f32.gmra.mxu1 %vm1360_vm5, %v8927_v13 }
 0x286   :  { %7180 = vmatprep.mubr.msk.f32.mxu1 %vm7696_vm0, %v9189_v10 }
 0x289   :  { %7181 = vmatmul.mubr.msk.f32.gmra.mxu1 %vm1360_vm5, %v8944_v12 }
 0x28a   :  { %7183 = vmatprep.mubr.msk.f32.mxu1 %vm7696_vm0, %v9189_v10 }
 0x28c   :  { %v9193_v60 = vpop.f32.mrf.mxu1 }
 0x28d   :  { %v9195_v35 = vpop.f32.mrf.mxu0  ;;  %7184 = vmatmul.mubr.msk.f32.gmra.mxu1 %vm1360_vm5, %v8951_v50  ;;  %v3469_v50 = vld [vmem:[%s10758_s3 + $0x20] sm:$0xff] }
 0x28e   :  { %v7002_v8 = vpop.f32.mrf.mxu1  ;;  %7307 = vmatprep.subr.mxu0 %v3469_v50 }
 0x28f   :  { %v7108_v34 = vpop.f32.mrf.mxu0  ;;  %7308 = vmatpush3.msra.mxu0 %v3469_v50  ;;  %v9268_v50 = vld [vmem:[%s10758_s3] sm:$0xff] }
 0x290   :  { %7256 = vmatprep.subr.mxu1 %v9268_v50 }
 0x292   :  { %v9203_v37 = vpop.f32.mrf.mxu1 }
 0x293   :  { %v9205_v2 = vpop.f32.mrf.mxu0 }
 0x294   :  { %v7005_v44 = vpop.f32.mrf.mxu1 }
 0x295   :  { %v7111_v18 = vpop.f32.mrf.mxu0 }
 0x29b   :  { %v9207_v36 = vpop.f32.mrf.mxu1 }
 0x29c   :  { %v9209_v7 = vpop.f32.mrf.mxu0 }
 0x29d   :  { %v7008_v40 = vpop.f32.mrf.mxu1 }
 0x29e   :  { %v7114_v59 = vpop.f32.mrf.mxu0 }
 0x2a1   :  { %v9211_v27 = vpop.f32.mrf.mxu1 }
 0x2a2   :  { %v9213_v20 = vpop.f32.mrf.mxu0 }
 0x2a3   :  { %10801 = vst [vmem:[#allocation10_spill] sm:$0xff] %v9213_v20  ;;  %v7011_v49 = vpop.f32.mrf.mxu1 }
 0x2a4   :  { %v7117_v29 = vpop.f32.mrf.mxu0 }
 0x2aa   :  { %v9218_v47 = vpop.f32.mrf.mxu1 }
 0x2ab   :  { %v9220_v48 = vpop.f32.mrf.mxu0 }
 0x2ac   :  { %10802 = vst [vmem:[#allocation11_spill] sm:$0xff] %v9220_v48  ;;  %v7014_v13 = vpop.f32.mrf.mxu1 }
 0x2ad   :  { %v7120_v14 = vpop.f32.mrf.mxu0 }
 0x2b1   :  { %v9222_v33 = vpop.f32.mrf.mxu1 }
 0x2b2   :  { %10803 = vst [vmem:[#allocation12_spill] sm:$0xff] %v9222_v33  ;;  %v9224_v30 = vpop.f32.mrf.mxu0 }
 0x2b3   :  { %10804 = vst [vmem:[#allocation13_spill] sm:$0xff] %v9224_v30  ;;  %v7017_v32 = vpop.f32.mrf.mxu1 }
 0x2b4   :  { %v7123_v51 = vpop.f32.mrf.mxu0 }
 0x2b9   :  { %v9226_v17 = vpop.f32.mrf.mxu1 }
 0x2ba   :  { %10805 = vst [vmem:[#allocation14_spill] sm:$0xff] %v9226_v17  ;;  %v9228_v12 = vpop.f32.mrf.mxu0 }
 0x2bb   :  { %10806 = vst [vmem:[#allocation15_spill] sm:$0xff] %v9228_v12  ;;  %v7020_v24 = vpop.f32.mrf.mxu1 }
 0x2bc   :  { %v7126_v45 = vpop.f32.mrf.mxu0 }
 0x2c1   :  { %v9233_v1 = vpop.f32.mrf.mxu1 }
 0x2c2   :  { %10807 = vst [vmem:[#allocation16_spill] sm:$0xff] %v9233_v1  ;;  %v9235_v56 = vpop.f32.mrf.mxu0 }
 0x2c3   :  { %10808 = vst [vmem:[#allocation17_spill] sm:$0xff] %v9235_v56  ;;  %v7023_v55 = vpop.f32.mrf.mxu1 }
 0x2c4   :  { %v7129_v41 = vpop.f32.mrf.mxu0 }
 0x2c5   :  { %v9237_v21 = vpop.f32.mrf.mxu1 }
 0x2c6   :  { %10809 = vst [vmem:[#allocation18_spill] sm:$0xff] %v9237_v21  ;;  %v9239_v11 = vpop.f32.mrf.mxu0 }
 0x2c7   :  { %10810 = vst [vmem:[#allocation19_spill] sm:$0xff] %v9239_v11  ;;  %v7026_v38 = vpop.f32.mrf.mxu1 }
 0x2c8   :  { %v7132_v3 = vpop.f32.mrf.mxu0 }
 0x2c9   :  { %v9241_v25 = vpop.f32.mrf.mxu1 }
 0x2ca   :  { %v9243_v58 = vpop.f32.mrf.mxu0 }
 0x2cb   :  { %v7031_v53 = vpop.f32.mrf.mxu1 }
 0x2cc   :  { %v7190_v63 = vpop.f32.mrf.mxu0 }
 0x2cd   :  { %v9245_v31 = vpop.f32.mrf.mxu1 }
 0x2ce   :  { %v9247_v43 = vpop.f32.mrf.mxu0 }
 0x2cf   :  { %v7034_v16 = vpop.f32.mrf.mxu1 }
 0x2d0   :  { %v7193_v0 = vpop.f32.mrf.mxu0 }
 0x2d1   :  { %v9249_v4 = vpop.f32.mrf.mxu1 }
 0x2d2   :  { %v9251_v8 = vpop.f32.mrf.mxu0 }
 0x2d3   :  { %v7037_v34 = vpop.f32.mrf.mxu1 }
 0x2d4   :  { %v7196_v44 = vpop.f32.mrf.mxu0 }
 0x2d5   :  { %v9253_v18 = vpop.f32.mrf.mxu1 }
 0x2d6   :  { %v9255_v40 = vpop.f32.mrf.mxu0 }
 0x2d7   :  { %v7040_v59 = vpop.f32.mrf.mxu1 }
 0x2d8   :  { %v7199_v49 = vpop.f32.mrf.mxu0 }
 0x2d9   :  { %v9257_v29 = vpop.f32.mrf.mxu1 }
 0x2da   :  { %v9259_v28 = vpop.f32.mrf.mxu0 }
 0x2db   :  { %v7043_v13 = vpop.f32.mrf.mxu1 }
 0x2dc   :  { %v7202_v14 = vpop.f32.mrf.mxu0 }
 0x2dd   :  { %v9261_v32 = vpop.f32.mrf.mxu1 }
 0x2de   :  { %v9263_v51 = vpop.f32.mrf.mxu0 }
 0x2df   :  { %v7046_v24 = vpop.f32.mrf.mxu1 }
 0x2e0   :  { %v7205_v45 = vpop.f32.mrf.mxu0  ;;  %v9290_v24 = vld [vmem:[%s10758_s3 + $0x30] sm:$0xff] }
 0x2e1   :  { %v9270_v55 = vpop.f32.mrf.mxu1  ;;  %10811 = vst [vmem:[#allocation20_spill] sm:$0xff] %v9290_v24  ;;  %7341 = vmatprep.subr.mxu0 %v9290_v24 }
 0x2e2   :  { %v9272_v41 = vpop.f32.mrf.mxu0 }
 0x2e3   :  { %v7049_v38 = vpop.f32.mrf.mxu1 }
 0x2e4   :  { %v7208_v3 = vpop.f32.mrf.mxu0 }
 0x2e5   :  { %v9275_v53 = vpop.f32.mrf.mxu1 }
 0x2e6   :  { %v9277_v63 = vpop.f32.mrf.mxu0 }
 0x2e7   :  { %v7052_v16 = vpop.f32.mrf.mxu1 }
 0x2e8   :  { %v7211_v0 = vpop.f32.mrf.mxu0 }
 0x2e9   :  { %v9279_v34 = vpop.f32.mrf.mxu1 }
 0x2ea   :  { %v9281_v44 = vpop.f32.mrf.mxu0 }
 0x2eb   :  { %v7055_v59 = vpop.f32.mrf.mxu1 }
 0x2ec   :  { %v7214_v49 = vpop.f32.mrf.mxu0 }
 0x2ed   :  { %v9283_v13 = vpop.f32.mrf.mxu1 }
 0x2ee   :  { %v9285_v14 = vpop.f32.mrf.mxu0 }
 0x2ef   :  { %v7058_v45 = vpop.f32.mrf.mxu1 }
 0x2f0   :  { %v7217_v38 = vpop.f32.mrf.mxu0 }
 0x2f1   :  { %v9293_v3 = vpop.f32.mrf.mxu1 }
 0x2f2   :  { %v9295_v16 = vpop.f32.mrf.mxu0 }
 0x2f3   :  { %v7061_v0 = vpop.f32.mrf.mxu1 }
 0x2f4   :  { %v7220_v59 = vpop.f32.mrf.mxu0 }
 0x2f5   :  { %v9297_v49 = vpop.f32.mrf.mxu1 }
 0x2f6   :  { %v9299_v11 = vpop.f32.mrf.mxu0 }
 0x2f7   :  { %10812 = vst [vmem:[#allocation21_spill] sm:$0xff] %v9299_v11  ;;  %v7064_v56 = vpop.f32.mrf.mxu1 }
 0x2f8   :  { %v7223_v21 = vpop.f32.mrf.mxu0 }
 0x2f9   :  { %v9301_v12 = vpop.f32.mrf.mxu1 }
 0x2fa   :  { %v9303_v1 = vpop.f32.mrf.mxu0 }
 0x2fb   :  { %10813 = vst [vmem:[#allocation22_spill] sm:$0xff] %v9303_v1  ;;  %v7067_v45 = vpop.f32.mrf.mxu1 }
 0x2fc   :  { %v7226_v38 = vpop.f32.mrf.mxu0  ;;  %v1885_v45 = vadd.f32 %v9241_v25, %v9085_v39  ;;  %v1895_v39 = vadd.f32 %v9249_v4, %v9115_v19  ;;  %v1905_v4 = vadd.f32 %v9257_v29, %v9139_v22 }
 0x2fd   :  { %v9305_v30 = vpop.f32.mrf.mxu1 }
 0x2fe   :  { %v9307_v17 = vpop.f32.mrf.mxu0  ;;  %v2194_v22 = vadd.f32 %v9141_v46, %v1905_v4 }
 0x2ff   :  { %10814 = vst [vmem:[#allocation23_spill] sm:$0xff] %v9307_v17  ;;  %v7070_v24 = vpop.f32.mrf.mxu1 }
 0x300   :  { %v7229_v48 = vpop.f32.mrf.mxu0 }
 0x301   :  { %v9309_v0 = vpop.f32.mrf.mxu1 }
 0x302   :  { %v9311_v59 = vpop.f32.mrf.mxu0 }
 0x303   :  { %10815 = vst [vmem:[#allocation24_spill] sm:$0xff] %v9311_v59  ;;  %v7073_v33 = vpop.f32.mrf.mxu1  ;;  %v1890_v59 = vadd.f32 %v9245_v31, %v9103_v9 }
 0x304   :  { %v7232_v11 = vpop.f32.mrf.mxu0  ;;  %v2190_v33 = vadd.f32 %v9089_v5, %v1885_v45  ;;  %v1900_v45 = vadd.f32 %v9253_v18, %v9127_v26 }
 0x305   :  { %v9313_v56 = vpop.f32.mrf.mxu1 }
 0x306   :  { %10816 = vst [vmem:[#allocation25_spill] sm:$0xff] %v9313_v56  ;;  %v9315_v21 = vpop.f32.mrf.mxu0  ;;  %v2193_v26 = vadd.f32 %v9129_v57, %v1900_v45 }
 0x307   :  { %v7076_v20 = vpop.f32.mrf.mxu1 }
 0x308   :  { %v7235_v1 = vpop.f32.mrf.mxu0  ;;  %v9329_v20 = vld [vmem:[%s10762_s7 + $0x1] ss:$0 sm:$0xff] }
 0x309   :  { %v9319_v38 = vpop.f32.mrf.mxu1 }
 0x30a   :  { %v9321_v17 = vpop.f32.mrf.mxu0 }
 0x30b   :  { %10817 = vst [vmem:[#allocation26_spill] sm:$0xff] %v9321_v17  ;;  %v7079_v48 = vpop.f32.mrf.mxu1 }
 0x30c   :  { %v7238_v24 = vpop.f32.mrf.mxu0  ;;  %v2191_v48 = vadd.f32 %v9105_v61, %v1890_v59 }
 0x30d   :  { %v2345_v11 = vpop.f32.mrf.mxu1 }
 0x30e   :  { %v2429_v56 = vadd.f32 %v2345_v11, %v2190_v33 }
 0x30f   :  { %v7137_v1 = vpop.f32.mrf.mxu1 }
 0x310   :  { %v2668_v25 = vadd.f32 %v9243_v58, %v2429_v56  ;;  %v2192_v1 = vadd.f32 %v9117_v54, %v1895_v39 }
 0x311   :  { %v2350_v24 = vpop.f32.mrf.mxu1 }
 0x312   :  { %v2690_v9 = vadd.f32 %v9329_v20, %v2668_v25  ;;  %v2430_v31 = vadd.f32 %v2350_v24, %v2191_v48  ;;  %v1910_v25 = vadd.f32 %v9261_v32, %v9151_v23 }
 0x313   :  { %v7140_v5 = vpop.f32.mrf.mxu1 }
 0x314   :  { %v2707_v33 = vmax.f32 %v2690_v9, 0.0  ;;  %v2669_v11 = vadd.f32 %v9247_v43, %v2430_v31  ;;  %v1915_v9 = vadd.f32 %v9270_v55, %v9163_v62  ;;  %v2195_v23 = vadd.f32 %v9153_v52, %v1910_v25 }
 0x315   :  { %v2355_v17 = vpop.f32.mrf.mxu1 }
 0x316   :  { %2725 = vst.msk [vmem:[#allocation3] sm:$0xff] %vm2724_vm7, %v2707_v33  ;;  %v2691_v19 = vadd.f32 %v9329_v20, %v2669_v11  ;;  %v2431_v61 = vadd.f32 %v2355_v17, %v2192_v1  ;;  %v2196_v52 = vadd.f32 %v9165_v42, %v1915_v9 }
 0x317   :  { %v7143_v58 = vpop.f32.mrf.mxu1 }
 0x318   :  { %v2708_v59 = vmax.f32 %v2691_v19, 0.0  ;;  %v2670_v56 = vadd.f32 %v9251_v8, %v2431_v61  ;;  %v1920_v19 = vadd.f32 %v9275_v53, %v9175_v6 }
 0x319   :  { %v2360_v18 = vpop.f32.mrf.mxu1 }
 0x31a   :  { %2726 = vst.msk [vmem:[#allocation3 + $0x8] sm:$0xff] %vm2724_vm7, %v2708_v59  ;;  %v2692_v54 = vadd.f32 %v9329_v20, %v2670_v56  ;;  %v2432_v43 = vadd.f32 %v2360_v18, %v2193_v26  ;;  %v1925_v59 = vadd.f32 %v9279_v34, %v9193_v60  ;;  %v2197_v53 = vadd.f32 %v9177_v15, %v1920_v19 }
 0x31b   :  { %v7146_v39 = vpop.f32.mrf.mxu1 }
 0x31c   :  { %v2709_v17 = vmax.f32 %v2692_v54, 0.0  ;;  %v2671_v48 = vadd.f32 %v9255_v40, %v2432_v43  ;;  %v2198_v15 = vadd.f32 %v9195_v35, %v1925_v59 }
 0x31d   :  { %v2365_v29 = vpop.f32.mrf.mxu1 }
 0x31e   :  { %2727 = vst.msk [vmem:[#allocation3 + $0x10] sm:$0xff] %vm2724_vm7, %v2709_v17  ;;  %v2693_v57 = vadd.f32 %v9329_v20, %v2671_v48  ;;  %v2433_v8 = vadd.f32 %v2365_v29, %v2194_v22  ;;  %v1930_v17 = vadd.f32 %v9283_v13, %v9203_v37 }
 0x31f   :  { %v7149_v24 = vpop.f32.mrf.mxu1 }
 0x320   :  { %v2710_v31 = vmax.f32 %v2693_v57, 0.0  ;;  %v2672_v5 = vadd.f32 %v9259_v28, %v2433_v8  ;;  %v1935_v57 = vadd.f32 %v9293_v3, %v9207_v36  ;;  %v2199_v8 = vadd.f32 %v9205_v2, %v1930_v17  ;;  %v9390_v36 = vld [vmem:[%s10758_s3 + $0x10] sm:$0xff] }
 0x321   :  { %v2775_v32 = vld [vmem:[#allocation3] ss:$2 sm:$0xff]  ;;  %v2779_v45 = vld [vmem:[#allocation3 + $0x1] ss:$2 sm:$0xff]  ;;  %v2370_v40 = vpop.f32.mrf.mxu1  ;;  %v1940_v2 = vadd.f32 %v9297_v49, %v9211_v27 }
 0x322   :  { %v2783_v33 = vmax.f32 %v2775_v32, %v2779_v45  ;;  %2728 = vst.msk [vmem:[#allocation3 + $0x18] sm:$0xff] %vm2724_vm7, %v2710_v31  ;;  %v2694_v46 = vadd.f32 %v9329_v20, %v2672_v5  ;;  %v2434_v11 = vadd.f32 %v2370_v40, %v2195_v23  ;;  %v2200_v40 = vadd.f32 %v9209_v7, %v1935_v57 }
 0x323   :  { %v7152_v1 = vpop.f32.mrf.mxu1 }
 0x324   :  { %2787 = vst.msk [vmem:[#allocation2 + $0x3] sm:$0xff] %vm2724_vm7, %v2783_v33  ;;  %v2711_v62 = vmax.f32 %v2694_v46, 0.0  ;;  %v2673_v28 = vadd.f32 %v9263_v51, %v2434_v11 }
 0x325   :  { %v2375_v55 = vpop.f32.mrf.mxu1 }
 0x326   :  { %2729 = vst.msk [vmem:[#allocation3 + $0x20] sm:$0xff] %vm2724_vm7, %v2711_v62  ;;  %v2695_v61 = vadd.f32 %v9329_v20, %v2673_v28  ;;  %v2435_v58 = vadd.f32 %v2375_v55, %v2196_v52  ;;  %v1945_v62 = vadd.f32 %v9301_v12, %v9218_v47  ;;  %v10818_v52 = vld [vmem:[#allocation10_spill] sm:$0xff] }
 0x327   :  { %v7155_v4 = vpop.f32.mrf.mxu1  ;;  %v2201_v55 = vadd.f32 %v10818_v52, %v1940_v2 }
 0x328   :  { %v2712_v56 = vmax.f32 %v2695_v61, 0.0  ;;  %v2674_v6 = vadd.f32 %v9272_v41, %v2435_v58  ;;  %v9418_v61 = vld [vmem:[#allocation2 + $0x4d] sm:$0xf] }
 0x329   :  { %v2776_v26 = vld [vmem:[#allocation3 + $0x10] ss:$2 sm:$0xff]  ;;  %v2780_v18 = vld [vmem:[#allocation3 + $0x11] ss:$2 sm:$0xff]  ;;  %v2380_v51 = vpop.f32.mrf.mxu1 }
 0x32a   :  { %v2784_v54 = vmax.f32 %v2776_v26, %v2780_v18  ;;  %2730 = vst.msk [vmem:[#allocation3 + $0x28] sm:$0xff] %vm2724_vm7, %v2712_v56  ;;  %v2696_v42 = vadd.f32 %v9329_v20, %v2674_v6  ;;  %v2436_v43 = vadd.f32 %v2380_v51, %v2197_v53  ;;  %v9420_v56 = vld [vmem:[#allocation2 + $0x4e] sm:$0xf]  ;;  %v10819_v18 = vld [vmem:[#allocation12_spill] sm:$0xff] }
 0x32b   :  { %v7158_v39 = vpop.f32.mrf.mxu1  ;;  %v2826_v25 = vld [vmem:[#allocation2 + $0x1] sm:$0xff]  ;;  %4984 = vst [vmem:[#allocation2 + $0x50] sm:$0xff] %v9189_v10  ;;  %v1950_v51 = vadd.f32 %v9305_v30, %v10819_v18 }
 0x32c   :  { %2788 = vst.msk [vmem:[#allocation2 + $0xb] sm:$0xff] %vm2724_vm7, %v2784_v54  ;;  %v2713_v60 = vmax.f32 %v2696_v42, 0.0  ;;  %v2675_v41 = vadd.f32 %v9277_v63, %v2436_v43  ;;  %7241 = vmatprep.mubr.msk.f32.mxu1 %vm2724_vm7, %v2826_v25  ;;  %v9399_v33 = vld [vmem:[#allocation2] sm:$0xff]  ;;  %v10820_v42 = vld [vmem:[#allocation21_spill] sm:$0xff] }
 0x32d   :  { %v2385_v34 = vpop.f32.mrf.mxu1  ;;  %v9401_v46 = vld [vmem:[#allocation2 + $0x2] sm:$0xff]  ;;  %v10821_v39 = vld [vmem:[#allocation11_spill] sm:$0xff] }
 0x32e   :  { %2731 = vst.msk [vmem:[#allocation3 + $0x30] sm:$0xff] %vm2724_vm7, %v2713_v60  ;;  %v2697_v48 = vadd.f32 %v9329_v20, %v2675_v41  ;;  %v2437_v22 = vadd.f32 %v2385_v34, %v2198_v15  ;;  %v9406_v27 = vld [vmem:[#allocation2 + $0x3] sm:$0xff]  ;;  %v2202_v25 = vadd.f32 %v10821_v39, %v1945_v62  ;;  %v10830_v39 = vld [vmem:[#allocation18_spill] sm:$0xff] }
 0x32f   :  { %v7161_v29 = vpop.f32.mrf.mxu1  ;;  %v10822_v15 = vld [vmem:[#allocation20_spill] sm:$0xff] }
 0x330   :  { %v2714_v37 = vmax.f32 %v2697_v48, 0.0  ;;  %v2676_v13 = vadd.f32 %v9281_v44, %v2437_v22 }
 0x331   :  { %v2777_v63 = vld [vmem:[#allocation3 + $0x20] ss:$2 sm:$0xff]  ;;  %v2781_v24 = vld [vmem:[#allocation3 + $0x21] ss:$2 sm:$0xff]  ;;  %v2390_v9 = vpop.f32.mrf.mxu1 }
 0x332   :  { %v2785_v31 = vmax.f32 %v2777_v63, %v2781_v24  ;;  %2732 = vst.msk [vmem:[#allocation3 + $0x38] sm:$0xff] %vm2724_vm7, %v2714_v37  ;;  %v2698_v35 = vadd.f32 %v9329_v20, %v2676_v13  ;;  %v2438_v5 = vadd.f32 %v2390_v9, %v2199_v8  ;;  %v10823_v37 = vld [vmem:[#allocation14_spill] sm:$0xff]  ;;  %v10825_v9 = vld [vmem:[#allocation13_spill] sm:$0xff] }
 0x333   :  { %v7164_v23 = vpop.f32.mrf.mxu1  ;;  %v2827_v32 = vld [vmem:[#allocation2 + $0x9] sm:$0xff]  ;;  %v1955_v13 = vadd.f32 %v9309_v0, %v10823_v37  ;;  %v10824_v63 = vld [vmem:[#allocation22_spill] sm:$0xff]  ;;  %v10828_v0 = vld [vmem:[#allocation23_spill] sm:$0xff] }
 0x334   :  { %v3459_v45 = vld [vmem:[#allocation2 + $0x4] sm:$0xff]  ;;  %2789 = vst.msk [vmem:[#allocation2 + $0x13] sm:$0xff] %vm2724_vm7, %v2785_v31  ;;  %v2715_v44 = vmax.f32 %v2698_v35, 0.0  ;;  %v2677_v3 = vadd.f32 %v9285_v14, %v2438_v5  ;;  %7242 = vmatmul.mubr.msk.f32.vlgmr.msra.gmra.mxu1 %vm2724_vm7, %v2827_v32  ;;  %v2203_v31 = vadd.f32 %v10825_v9, %v1950_v51  ;;  %v10833_v9 = vld [vmem:[#allocation19_spill] sm:$0xff] }
 0x335   :  { %7309 = vmatprep.mubr.msk.f32.mxu0 %vm2724_vm7, %v3459_v45  ;;  %v2395_v11 = vpop.f32.mrf.mxu1  ;;  %7257 = vmatpush3.msra.mxu1 %v9268_v50  ;;  %v9404_v1 = vld [vmem:[#allocation2 + $0x6] sm:$0xff] }
 0x336   :  { %v9408_v49 = vld [vmem:[#allocation2 + $0x5] sm:$0xff]  ;;  %2733 = vst.msk [vmem:[#allocation3 + $0x40] sm:$0xff] %vm2724_vm7, %v2715_v44  ;;  %v2699_v14 = vadd.f32 %v9329_v20, %v2677_v3  ;;  %v2439_v19 = vadd.f32 %v2395_v11, %v2200_v40  ;;  %7273 = vmatprep.subr.mxu1 %v9390_v36 }
 0x337   :  { %3994 = vst [vmem:[#allocation2] sm:$0xff] %v9189_v10  ;;  %v7167_v7 = vpop.f32.mrf.mxu1  ;;  %v9432_v17 = vld [vmem:[#allocation2 + $0x8] sm:$0xff] }
 0x338   :  { %v2716_v50 = vmax.f32 %v2699_v14, 0.0  ;;  %v2678_v28 = vadd.f32 %v9295_v16, %v2439_v19  ;;  %v9434_v60 = vld [vmem:[#allocation2 + $0xa] sm:$0xff]  ;;  %v10826_v3 = vld [vmem:[#allocation16_spill] sm:$0xff]  ;;  %v10829_v7 = vld [vmem:[#allocation15_spill] sm:$0xff] }
 0x339   :  { %v2778_v58 = vld [vmem:[#allocation3 + $0x30] ss:$2 sm:$0xff]  ;;  %v2782_v4 = vld [vmem:[#allocation3 + $0x31] ss:$2 sm:$0xff]  ;;  %v2400_v59 = vpop.f32.mrf.mxu1  ;;  %v9439_v30 = vld [vmem:[#allocation2 + $0xb] sm:$0xff]  ;;  %v2204_v62 = vadd.f32 %v10829_v7, %v1955_v13 }
 0x33a   :  { %v2786_v6 = vmax.f32 %v2778_v58, %v2782_v4  ;;  %2734 = vst.msk [vmem:[#allocation3 + $0x48] sm:$0xff] %vm2724_vm7, %v2716_v50  ;;  %v2700_v53 = vadd.f32 %v9329_v20, %v2678_v28  ;;  %v2440_v26 = vadd.f32 %v2400_v59, %v2201_v55  ;;  %v10827_v40 = vld [vmem:[#allocation25_spill] sm:$0xff] }
 0x33b   :  { %v7170_v47 = vpop.f32.mrf.mxu1  ;;  %v2828_v12 = vld [vmem:[#allocation2 + $0x11] sm:$0xff]  ;;  %v1960_v11 = vadd.f32 %v10827_v40, %v10826_v3 }
 0x33c   :  { %v3460_v16 = vld [vmem:[#allocation2 + $0xc] sm:$0xff]  ;;  %2790 = vst.msk [vmem:[#allocation2 + $0x1b] sm:$0xff] %vm2724_vm7, %v2786_v6  ;;  %v2717_v54 = vmax.f32 %v2700_v53, 0.0  ;;  %v2679_v43 = vadd.f32 %v10820_v42, %v2440_v26  ;;  %7244 = vmatprep.mubr.msk.f32.mxu1 %vm2724_vm7, %v2828_v12 }
 0x33d   :  { %7310 = vmatmul.mubr.msk.f32.vlgmr.msra.gmra.mxu0 %vm2724_vm7, %v3460_v16  ;;  %v2405_v41 = vpop.f32.mrf.mxu1  ;;  %v9437_v34 = vld [vmem:[#allocation2 + $0xe] sm:$0xff] }
 0x33e   :  { %7342 = vmatpush3.msra.mxu0 %v10822_v15  ;;  %v9441_v48 = vld [vmem:[#allocation2 + $0xd] sm:$0xff]  ;;  %2735 = vst.msk [vmem:[#allocation3 + $0x50] sm:$0xff] %vm2724_vm7, %v2717_v54  ;;  %v2701_v22 = vadd.f32 %v9329_v20, %v2679_v43  ;;  %v2441_v29 = vadd.f32 %v2405_v41, %v2202_v25  ;;  %v1965_v25 = vadd.f32 %v9319_v38, %v10830_v39  ;;  %v10831_v15 = vld [vmem:[#allocation24_spill] sm:$0xff] }
 0x33f   :  { %3995 = vst [vmem:[#allocation2 + $0x8] sm:$0xff] %v9189_v10  ;;  %v7173_v57 = vpop.f32.mrf.mxu1  ;;  %v9460_v58 = vld [vmem:[#allocation2 + $0x10] sm:$0xff] }
 0x340   :  { %v2718_v8 = vmax.f32 %v2701_v22, 0.0  ;;  %v2680_v24 = vadd.f32 %v10824_v63, %v2441_v29  ;;  %v9464_v59 = vld [vmem:[#allocation2 + $0x12] sm:$0xff]  ;;  %v10832_v29 = vld [vmem:[#allocation17_spill] sm:$0xff] }
 0x341   :  { %v2410_v35 = vpop.f32.mrf.mxu1  ;;  %v9466_v6 = vld [vmem:[#allocation2 + $0x13] sm:$0xff]  ;;  %v2205_v57 = vadd.f32 %v10832_v29, %v1960_v11 }
 0x342   :  { %2736 = vst.msk [vmem:[#allocation3 + $0x58] sm:$0xff] %vm2724_vm7, %v2718_v8  ;;  %v2702_v5 = vadd.f32 %v9329_v20, %v2680_v24  ;;  %v2442_v23 = vadd.f32 %v2410_v35, %v2203_v31  ;;  %v2206_v31 = vadd.f32 %v10833_v9, %v1965_v25 }
 0x343   :  { %v7176_v32 = vpop.f32.mrf.mxu1  ;;  %v2829_v45 = vld [vmem:[#allocation2 + $0x19] sm:$0xff]  ;;  %v2830_v44 = vld [vmem:[#allocation2 + $0x21] sm:$0xff] }
 0x344   :  { %v3461_v2 = vld [vmem:[#allocation2 + $0x14] sm:$0xff]  ;;  %v2719_v14 = vmax.f32 %v2702_v5, 0.0  ;;  %v2681_v19 = vadd.f32 %v10828_v0, %v2442_v23  ;;  %7245 = vmatmul.mubr.msk.f32.gmra.mxu1 %vm2724_vm7, %v2829_v45  ;;  %v3462_v50 = vld [vmem:[#allocation2 + $0x1c] sm:$0xff] }
 0x345   :  { %7312 = vmatprep.mubr.msk.f32.mxu0 %vm2724_vm7, %v3461_v2  ;;  %v2792_v28 = vld [vmem:[#allocation3 + $0x44] ss:$2 sm:$0xff]  ;;  %v2800_v52 = vld [vmem:[#allocation3 + $0x45] ss:$2 sm:$0xff]  ;;  %v2415_v55 = vpop.f32.mrf.mxu1  ;;  %7247 = vmatprep.mubr.msk.f32.mxu1 %vm2724_vm7, %v2830_v44  ;;  %v9472_v16 = vld [vmem:[#allocation2 + $0x1e] sm:$0xff] }
 0x346   :  { %7313 = vmatmul.mubr.msk.f32.gmra.mxu0 %vm2724_vm7, %v3462_v50  ;;  %v9462_v4 = vld [vmem:[#allocation2 + $0x18] sm:$0xff]  ;;  %v2807_v53 = vmax.f32 %v2792_v28, %v2800_v52  ;;  %2737 = vst.msk [vmem:[#allocation3 + $0x60] sm:$0xff] %vm2724_vm7, %v2719_v14  ;;  %v2703_v26 = vadd.f32 %v9329_v20, %v2681_v19  ;;  %v2443_v47 = vadd.f32 %v2415_v55, %v2204_v62 }
 0x347   :  { %v9470_v12 = vld [vmem:[#allocation2 + $0x16] sm:$0xff]  ;;  %v7179_v51 = vpop.f32.mrf.mxu1 }
 0x348   :  { %v9474_v18 = vld [vmem:[#allocation2 + $0x1a] sm:$0xff]  ;;  %2811 = vst.msk [vmem:[#allocation2 + $0x29] sm:$0xff] %vm2724_vm7, %v2807_v53  ;;  %v2720_v41 = vmax.f32 %v2703_v26, 0.0  ;;  %v2682_v22 = vadd.f32 %v10831_v15, %v2443_v47  ;;  %v10834_v14 = vld [vmem:[#allocation26_spill] sm:$0xff] }
 0x349   :  { %v9476_v54 = vld [vmem:[#allocation2 + $0x1b] sm:$0xff]  ;;  %v2420_v37 = vpop.f32.mrf.mxu1 }
 0x34a   :  { %v9478_v42 = vld [vmem:[#allocation2 + $0x15] sm:$0xff]  ;;  %v9480_v43 = vld [vmem:[#allocation2 + $0x1d] sm:$0xff]  ;;  %2738 = vst.msk [vmem:[#allocation3 + $0x68] sm:$0xff] %vm2724_vm7, %v2720_v41  ;;  %v2704_v13 = vadd.f32 %v9329_v20, %v2682_v22  ;;  %v2444_v8 = vadd.f32 %v2420_v37, %v2205_v57 }
 0x34b   :  { %3996 = vst [vmem:[#allocation2 + $0x10] sm:$0xff] %v9189_v10  ;;  %3997 = vst [vmem:[#allocation2 + $0x18] sm:$0xff] %v9189_v10  ;;  %v7182_v63 = vpop.f32.mrf.mxu1 }
 0x34c   :  { %v2721_v24 = vmax.f32 %v2704_v13, 0.0  ;;  %v2683_v38 = vadd.f32 %v9315_v21, %v2444_v8  ;;  %v9499_v21 = vld [vmem:[#allocation2 + $0x20] sm:$0xff] }
 0x34d   :  { %v2794_v35 = vld [vmem:[#allocation3 + $0x54] ss:$2 sm:$0xff]  ;;  %v2802_v5 = vld [vmem:[#allocation3 + $0x55] ss:$2 sm:$0xff]  ;;  %v2425_v23 = vpop.f32.mrf.mxu1 }
 0x34e   :  { %v2808_v32 = vmax.f32 %v2794_v35, %v2802_v5  ;;  %2739 = vst.msk [vmem:[#allocation3 + $0x70] sm:$0xff] %vm2724_vm7, %v2721_v24  ;;  %v2705_v45 = vadd.f32 %v9329_v20, %v2683_v38  ;;  %v2445_v2 = vadd.f32 %v2425_v23, %v2206_v31  ;;  %v2835_v31 = vld [vmem:[#allocation2 + $0x49] sm:$0xf] }
 0x34f   :  { %v7185_v44 = vpop.f32.mrf.mxu1  ;;  %v2831_v3 = vld [vmem:[#allocation2 + $0x29] sm:$0xff] }
 0x350   :  { %v3463_v40 = vld [vmem:[#allocation2 + $0x24] sm:$0xff]  ;;  %2812 = vst.msk [vmem:[#allocation2 + $0x31] sm:$0xff] %vm2724_vm7, %v2808_v32  ;;  %v2722_v11 = vmax.f32 %v2705_v45, 0.0  ;;  %v2684_v0 = vadd.f32 %v10834_v14, %v2445_v2  ;;  %7248 = vmatmul.mubr.msk.f32.gmra.mxu1 %vm2724_vm7, %v2831_v3  ;;  %v3468_v32 = vld [vmem:[#allocation2 + $0x4c] sm:$0xf] }
 0x351   :  { %7315 = vmatprep.mubr.msk.f32.mxu0 %vm2724_vm7, %v3463_v40  ;;  %v9501_v19 = vld [vmem:[#allocation2 + $0x26] sm:$0xff] }
 0x352   :  { %v9503_v7 = vld [vmem:[#allocation2 + $0x22] sm:$0xff]  ;;  %2740 = vst.msk [vmem:[#allocation3 + $0x78] sm:$0xff] %vm2724_vm7, %v2722_v11  ;;  %v2706_v28 = vadd.f32 %v9329_v20, %v2684_v0  ;;  %v3303_v11 = vld [vmem:[%s10758_s3 + $0x18] sm:$0xff]  ;;  %v3136_v14 = vld [vmem:[#allocation2 + $0x4a] sm:$0xf] }
 0x353   :  { %v9505_v62 = vld [vmem:[#allocation2 + $0x23] sm:$0xff]  ;;  %v3302_v0 = vld [vmem:[#allocation2 + $0x4b] sm:$0xf] }
 0x354   :  { %v9507_v50 = vld [vmem:[#allocation2 + $0x25] sm:$0xff]  ;;  %v2723_v52 = vmax.f32 %v2706_v28, 0.0 }
 0x355   :  { %3998 = vst [vmem:[#allocation2 + $0x20] sm:$0xff] %v9189_v10  ;;  %v2796_v55 = vld [vmem:[#allocation3 + $0x64] ss:$2 sm:$0xff]  ;;  %v2804_v53 = vld [vmem:[#allocation3 + $0x65] ss:$2 sm:$0xff] }
 0x356   :  { %v2809_v26 = vmax.f32 %v2796_v55, %v2804_v53  ;;  %2741 = vst.msk [vmem:[#allocation3 + $0x80] sm:$0xff] %vm2724_vm7, %v2723_v52  ;;  %v2820_v39 = vld [vmem:[#allocation2 + $0x28] sm:$0xff] }
 0x357   :  { %v2832_v47 = vld [vmem:[#allocation2 + $0x31] sm:$0xff] }
 0x358   :  { %v3464_v51 = vld [vmem:[#allocation2 + $0x2c] sm:$0xff]  ;;  %2813 = vst.msk [vmem:[#allocation2 + $0x39] sm:$0xff] %vm2724_vm7, %v2809_v26  ;;  %7250 = vmatprep.mubr.msk.f32.mxu1 %vm2724_vm7, %v2832_v47 }
 0x359   :  { %7316 = vmatmul.mubr.msk.f32.gmra.mxu0 %vm2724_vm7, %v3464_v51  ;;  %v3796_v25 = vld [vmem:[#allocation2 + $0x2e] sm:$0xff] }
 0x35a   :  { %v9516_v41 = vld [vmem:[#allocation2 + $0x2a] sm:$0xff] }
 0x35b   :  { %v9518_v20 = vld [vmem:[#allocation2 + $0x2b] sm:$0xff] }
 0x35c   :  { %v9520_v15 = vld [vmem:[#allocation2 + $0x2d] sm:$0xff] }
 0x35d   :  { %3999 = vst [vmem:[#allocation2 + $0x28] sm:$0xff] %v9189_v10  ;;  %v2798_v22 = vld [vmem:[#allocation3 + $0x74] ss:$2 sm:$0xff]  ;;  %v2806_v29 = vld [vmem:[#allocation3 + $0x75] ss:$2 sm:$0xff]  ;;  %v2821_v8 = vld [vmem:[#allocation2 + $0x30] sm:$0xff] }
 0x35e   :  { %v2810_v57 = vmax.f32 %v2798_v22, %v2806_v29  ;;  %v9710_v22 = vld [vmem:[#allocation2 + $0x90] sm:$0xff]  ;;  %v4319_v29 = vld [vmem:[%s10759_s4 + $0x38] sm:$0xff] }
 0x35f   :  { %v2833_v37 = vld [vmem:[#allocation2 + $0x39] sm:$0xff] }
 0x360   :  { %v3465_v13 = vld [vmem:[#allocation2 + $0x34] sm:$0xff]  ;;  %2814 = vst.msk [vmem:[#allocation2 + $0x41] sm:$0xff] %vm2724_vm7, %v2810_v57  ;;  %7251 = vmatmul.mubr.msk.f32.gmra.mxu1 %vm2724_vm7, %v2833_v37 }
 0x361   :  { %7318 = vmatprep.mubr.msk.f32.mxu0 %vm2724_vm7, %v3465_v13  ;;  %v9526_v63 = vld [vmem:[#allocation2 + $0x32] sm:$0xff] }
 0x362   :  { %v9528_v24 = vld [vmem:[#allocation2 + $0x33] sm:$0xff] }
 0x363   :  { %v9530_v38 = vld [vmem:[#allocation2 + $0x35] sm:$0xff] }
 0x364   :  { %v3797_v9 = vld [vmem:[#allocation2 + $0x36] sm:$0xff] }
 0x365   :  { %4000 = vst [vmem:[#allocation2 + $0x30] sm:$0xff] %v9189_v10  ;;  %v2822_v45 = vld [vmem:[#allocation2 + $0x38] sm:$0xff] }
 0x367   :  { %v2834_v35 = vld [vmem:[#allocation2 + $0x41] sm:$0xff] }
 0x368   :  { %v3466_v5 = vld [vmem:[#allocation2 + $0x3c] sm:$0xff]  ;;  %v3467_v23 = vld [vmem:[#allocation2 + $0x44] sm:$0xff]  ;;  %7253 = vmatprep.mubr.msk.f32.mxu1 %vm2724_vm7, %v2834_v35 }
 0x369   :  { %7319 = vmatmul.mubr.msk.f32.gmra.mxu0 %vm2724_vm7, %v3466_v5  ;;  %7254 = vmatmul.mubr.msk.f32.gmra.mxu1 %vm2724_vm7, %v2835_v31  ;;  %v2823_v2 = vld [vmem:[#allocation2 + $0x40] sm:$0xff]  ;;  %v2824_v3 = vld [vmem:[#allocation2 + $0x48] sm:$0xf] }
 0x36a   :  { %7321 = vmatprep.mubr.msk.f32.mxu0 %vm2724_vm7, %v3467_v23  ;;  %7258 = vmatprep.mubr.msk.f32.mxu1 %vm2724_vm7, %v9399_v33  ;;  %v3798_v44 = vld [vmem:[#allocation2 + $0x3e] sm:$0xff]  ;;  %v3799_v40 = vld [vmem:[#allocation2 + $0x46] sm:$0xff] }
 0x36b   :  { %v3134_v28 = vld [vmem:[#allocation2 + $0x3a] sm:$0xff]  ;;  %v3135_v52 = vld [vmem:[#allocation2 + $0x42] sm:$0xff] }
 0x36c   :  { %v3300_v55 = vld [vmem:[#allocation2 + $0x3b] sm:$0xff]  ;;  %v3301_v53 = vld [vmem:[#allocation2 + $0x43] sm:$0xff] }
 0x36d   :  { %7322 = vmatmul.mubr.msk.f32.gmra.mxu0 %vm2724_vm7, %v3468_v32  ;;  %v3632_v26 = vld [vmem:[#allocation2 + $0x3d] sm:$0xff]  ;;  %v3633_v47 = vld [vmem:[#allocation2 + $0x45] sm:$0xff]  ;;  %7259 = vmatmul.mubr.msk.f32.vlgmr.msra.gmra.mxu1 %vm2724_vm7, %v9432_v17 }
 0x36e   :  { %7343 = vmatprep.mubr.msk.f32.mxu0 %vm2724_vm7, %v9404_v1  ;;  %4981 = vst [vmem:[#allocation2 + $0x38] sm:$0xff] %v9189_v10  ;;  %4982 = vst [vmem:[#allocation2 + $0x40] sm:$0xff] %v9189_v10  ;;  %7274 = vmatpush3.msra.mxu1 %v9390_v36  ;;  %v3635_v36 = vld [vmem:[%s10758_s3 + $0x28] sm:$0xff] }
 0x36f   :  { %4983 = vst [vmem:[#allocation2 + $0x48] sm:$0xff] %v9189_v10  ;;  %7261 = vmatprep.mubr.msk.f32.mxu1 %vm2724_vm7, %v9460_v58  ;;  %7290 = vmatprep.subr.mxu1 %v3303_v11 }
 0x371   :  { %7344 = vmatmul.mubr.msk.f32.vlgmr.msra.gmra.mxu0 %vm2724_vm7, %v9437_v34  ;;  %7262 = vmatmul.mubr.msk.f32.gmra.mxu1 %vm2724_vm7, %v9462_v4 }
 0x372   :  { %7346 = vmatprep.mubr.msk.f32.mxu0 %vm2724_vm7, %v9470_v12  ;;  %7264 = vmatprep.mubr.msk.f32.mxu1 %vm2724_vm7, %v9499_v21  ;;  %v4323_v21 = vld [vmem:[%s10759_s4 + $0x58] sm:$0xff] }
 0x375   :  { %7347 = vmatmul.mubr.msk.f32.gmra.mxu0 %vm2724_vm7, %v9472_v16  ;;  %7265 = vmatmul.mubr.msk.f32.gmra.mxu1 %vm2724_vm7, %v2820_v39  ;;  %v4325_v16 = vld [vmem:[%s10759_s4 + $0x68] sm:$0xff] }
 0x376   :  { %7349 = vmatprep.mubr.msk.f32.mxu0 %vm2724_vm7, %v9501_v19  ;;  %7267 = vmatprep.mubr.msk.f32.mxu1 %vm2724_vm7, %v2821_v8  ;;  %v4321_v39 = vld [vmem:[%s10759_s4 + $0x48] sm:$0xff] }
 0x379   :  { %7350 = vmatmul.mubr.msk.f32.gmra.mxu0 %vm2724_vm7, %v3796_v25  ;;  %7268 = vmatmul.mubr.msk.f32.gmra.mxu1 %vm2724_vm7, %v2822_v45 }
 0x37a   :  { %7352 = vmatprep.mubr.msk.f32.mxu0 %vm2724_vm7, %v3797_v9  ;;  %7270 = vmatprep.mubr.msk.f32.mxu1 %vm2724_vm7, %v2823_v2 }
 0x37d   :  { %7353 = vmatmul.mubr.msk.f32.gmra.mxu0 %vm2724_vm7, %v3798_v44  ;;  %7271 = vmatmul.mubr.msk.f32.gmra.mxu1 %vm2724_vm7, %v2824_v3 }
 0x37e   :  { %7355 = vmatprep.mubr.msk.f32.mxu0 %vm2724_vm7, %v3799_v40  ;;  %7275 = vmatprep.mubr.msk.f32.mxu1 %vm2724_vm7, %v9401_v46 }
 0x381   :  { %7356 = vmatmul.mubr.msk.f32.gmra.mxu0 %vm2724_vm7, %v9420_v56  ;;  %7276 = vmatmul.mubr.msk.f32.vlgmr.msra.gmra.mxu1 %vm2724_vm7, %v9434_v60 }
 0x382   :  { %7291 = vmatpush3.msra.mxu1 %v3303_v11  ;;  %7278 = vmatprep.mubr.msk.f32.mxu1 %vm2724_vm7, %v9464_v59  ;;  %v4327_v59 = vld [vmem:[%s10759_s4 + $0x78] sm:$0xff] }
 0x383   :  { %7324 = vmatprep.subr.mxu1 %v3635_v36 }
 0x385   :  { %7279 = vmatmul.mubr.msk.f32.gmra.mxu1 %vm2724_vm7, %v9474_v18 }
 0x386   :  { %7281 = vmatprep.mubr.msk.f32.mxu1 %vm2724_vm7, %v9503_v7 }
 0x389   :  { %7282 = vmatmul.mubr.msk.f32.gmra.mxu1 %vm2724_vm7, %v9516_v41  ;;  %v4320_v41 = vld [vmem:[%s10759_s4 + $0x40] sm:$0xff] }
 0x38a   :  { %7284 = vmatprep.mubr.msk.f32.mxu1 %vm2724_vm7, %v9526_v63 }
 0x38d   :  { %7285 = vmatmul.mubr.msk.f32.gmra.mxu1 %vm2724_vm7, %v3134_v28 }
 0x38e   :  { %7287 = vmatprep.mubr.msk.f32.mxu1 %vm2724_vm7, %v3135_v52 }
 0x391   :  { %7288 = vmatmul.mubr.msk.f32.gmra.mxu1 %vm2724_vm7, %v3136_v14 }
 0x392   :  { %7292 = vmatprep.mubr.msk.f32.mxu1 %vm2724_vm7, %v9406_v27 }
 0x395   :  { %7293 = vmatmul.mubr.msk.f32.vlgmr.msra.gmra.mxu1 %vm2724_vm7, %v9439_v30 }
 0x396   :  { %7325 = vmatpush3.msra.mxu1 %v3635_v36  ;;  %7295 = vmatprep.mubr.msk.f32.mxu1 %vm2724_vm7, %v9466_v6  ;;  %v4326_v6 = vld [vmem:[%s10759_s4 + $0x70] sm:$0xff] }
 0x397   :  { %4353 = vmatprep.subr.mxu1 %v9189_v10 }
 0x399   :  { %7296 = vmatmul.mubr.msk.f32.gmra.mxu1 %vm2724_vm7, %v9476_v54 }
 0x39a   :  { %7298 = vmatprep.mubr.msk.f32.mxu1 %vm2724_vm7, %v9505_v62  ;;  %v4322_v62 = vld [vmem:[%s10759_s4 + $0x50] sm:$0xff] }
 0x39d   :  { %7299 = vmatmul.mubr.msk.f32.gmra.mxu1 %vm2724_vm7, %v9518_v20 }
 0x39e   :  { %7301 = vmatprep.mubr.msk.f32.mxu1 %vm2724_vm7, %v9528_v24 }
 0x3a1   :  { %7302 = vmatmul.mubr.msk.f32.gmra.mxu1 %vm2724_vm7, %v3300_v55 }
 0x3a2   :  { %7304 = vmatprep.mubr.msk.f32.mxu1 %vm2724_vm7, %v3301_v53 }
 0x3a5   :  { %7305 = vmatmul.mubr.msk.f32.gmra.mxu1 %vm2724_vm7, %v3302_v0 }
 0x3a6   :  { %7326 = vmatprep.mubr.msk.f32.mxu1 %vm2724_vm7, %v9408_v49 }
 0x3a9   :  { %7327 = vmatmul.mubr.msk.f32.vlgmr.msra.gmra.mxu1 %vm2724_vm7, %v9441_v48 }
 0x3aa   :  { %7329 = vmatprep.mubr.msk.f32.mxu1 %vm2724_vm7, %v9478_v42  ;;  %4354 = vmatpush1.msra.mxu1 %v4327_v59  ;;  %v4324_v42 = vld [vmem:[%s10759_s4 + $0x60] sm:$0xff] }
 0x3ab   :  { %4355 = vmatprep.subr.mxu1 %v9189_v10 }
 0x3ac   :  { %4356 = vmatpush1.msra.mxu1 %v4326_v6 }
 0x3ad   :  { %7330 = vmatmul.mubr.msk.f32.gmra.mxu1 %vm2724_vm7, %v9480_v43  ;;  %4357 = vmatprep.subr.mxu1 %v9189_v10 }
 0x3ae   :  { %7332 = vmatprep.mubr.msk.f32.mxu1 %vm2724_vm7, %v9507_v50  ;;  %4358 = vmatpush1.msra.mxu1 %v4325_v16 }
 0x3af   :  { %4359 = vmatprep.subr.mxu1 %v9189_v10 }
 0x3b0   :  { %4360 = vmatpush1.msra.mxu1 %v4324_v42 }
 0x3b1   :  { %7333 = vmatmul.mubr.msk.f32.gmra.mxu1 %vm2724_vm7, %v9520_v15  ;;  %4361 = vmatprep.subr.mxu1 %v9189_v10 }
 0x3b2   :  { %7335 = vmatprep.mubr.msk.f32.mxu1 %vm2724_vm7, %v9530_v38  ;;  %4362 = vmatpush1.msra.mxu1 %v4323_v21 }
 0x3b3   :  { %4363 = vmatprep.subr.mxu1 %v9189_v10 }
 0x3b4   :  { %4364 = vmatpush1.msra.mxu1 %v4322_v62 }
 0x3b5   :  { %7336 = vmatmul.mubr.msk.f32.gmra.mxu1 %vm2724_vm7, %v3632_v26  ;;  %4365 = vmatprep.subr.mxu1 %v9189_v10  ;;  %v4318_v10 = vld [vmem:[%s10759_s4 + $0x30] sm:$0xff] }
 0x3b6   :  { %7338 = vmatprep.mubr.msk.f32.mxu1 %vm2724_vm7, %v3633_v47  ;;  %4366 = vmatpush1.msra.mxu1 %v4321_v39 }
 0x3b7   :  { %4367 = vmatprep.subr.mxu1 %v9710_v22 }
 0x3b8   :  { %4368 = vmatpush1.msra.mxu1 %v4320_v41 }
 0x3b9   :  { %7339 = vmatmul.mubr.msk.f32.gmra.mxu1 %vm2724_vm7, %v9418_v61  ;;  %4369 = vmatprep.subr.mxu1 %v9710_v22 }
 0x3ba   :  { %4370 = vmatpush1.msra.mxu1 %v4319_v29 }
 0x3bb   :  { %4371 = vmatprep.subr.mxu1 %v9710_v22 }
 0x3bc   :  { %4372 = vmatpush1.msra.mxu1 %v4318_v10 }
 0x3bd   :  { %4373 = vmatprep.subr.mxu1 %v9710_v22 }
 0x3f4   :  { %v9632_v33 = vpop.f32.mrf.mxu1 }
 0x3f6   :  { %v9634_v46 = vpop.f32.mrf.mxu1 }
 0x3fd   :  { %v9672_v18 = vpop.f32.mrf.mxu0 }
 0x3ff   :  { %v9686_v19 = vpop.f32.mrf.mxu0 }
 0x404   :  { %v9636_v1 = vpop.f32.mrf.mxu1 }
 0x406   :  { %v9638_v27 = vpop.f32.mrf.mxu1  ;;  %v9694_v50 = vpop.f32.mrf.mxu0 }
 0x408   :  { %v9708_v20 = vpop.f32.mrf.mxu0 }
 0x410   :  { %v9640_v49 = vpop.f32.mrf.mxu1 }
 0x412   :  { %v9642_v56 = vpop.f32.mrf.mxu1 }
 0x419   :  { %v9716_v57 = vpop.f32.mrf.mxu0 }
 0x41b   :  { %v9723_v8 = vpop.f32.mrf.mxu0 }
 0x420   :  { %v9644_v17 = vpop.f32.mrf.mxu1 }
 0x422   :  { %v9646_v60 = vpop.f32.mrf.mxu1 }
 0x429   :  { %v9648_v34 = vpop.f32.mrf.mxu1  ;;  %v9726_v24 = vpop.f32.mrf.mxu0 }
 0x42b   :  { %v9650_v30 = vpop.f32.mrf.mxu1  ;;  %v9728_v31 = vpop.f32.mrf.mxu0 }
 0x42d   :  { %v9652_v61 = vpop.f32.mrf.mxu1  ;;  %v9730_v23 = vpop.f32.mrf.mxu0 }
 0x42e   :  { %v3084_v55 = vadd.f32 %v9652_v61, %v9632_v33 }
 0x42f   :  { %v9654_v48 = vpop.f32.mrf.mxu1  ;;  %v9736_v2 = vpop.f32.mrf.mxu0 }
 0x430   :  { %v3079_v47 = vadd.f32 %v9654_v48, %v9634_v46 }
 0x431   :  { %v9656_v58 = vpop.f32.mrf.mxu1  ;;  %v7345_v40 = vpop.f32.mrf.mxu0 }
 0x432   :  { %v3094_v6 = vadd.f32 %v9656_v58, %v9636_v1 }
 0x433   :  { %v9658_v4 = vpop.f32.mrf.mxu1  ;;  %v3898_v0 = vpop.f32.mrf.mxu0 }
 0x434   :  { %v3089_v39 = vadd.f32 %v9658_v4, %v9638_v27 }
 0x435   :  { %v9666_v12 = vpop.f32.mrf.mxu1  ;;  %v7348_v53 = vpop.f32.mrf.mxu0 }
 0x436   :  { %v3104_v33 = vadd.f32 %v9666_v12, %v9640_v49  ;;  %v9757_v12 = vld [vmem:[%s10762_s7 + $0x2] ss:$0 sm:$0xff] }
 0x437   :  { %v9674_v54 = vpop.f32.mrf.mxu1  ;;  %v3908_v21 = vpop.f32.mrf.mxu0 }
 0x438   :  { %v3099_v1 = vadd.f32 %v9674_v54, %v9642_v56 }
 0x439   :  { %v9680_v43 = vpop.f32.mrf.mxu1  ;;  %v7351_v58 = vpop.f32.mrf.mxu0 }
 0x43a   :  { %v3114_v4 = vadd.f32 %v9680_v43, %v9644_v17 }
 0x43b   :  { %v9688_v7 = vpop.f32.mrf.mxu1 }
 0x43d   :  { %v9696_v51 = vpop.f32.mrf.mxu1 }
 0x43f   :  { %v9702_v25 = vpop.f32.mrf.mxu1 }
 0x441   :  { %v7277_v15 = vpop.f32.mrf.mxu1 }
 0x442   :  { %v3284_v36 = vadd.f32 %v7277_v15, %v3084_v55 }
 0x443   :  { %v3234_v37 = vpop.f32.mrf.mxu1 }
 0x444   :  { %v3283_v16 = vadd.f32 %v3234_v37, %v3079_v47 }
 0x445   :  { %v7280_v13 = vpop.f32.mrf.mxu1 }
 0x446   :  { %v3286_v41 = vadd.f32 %v7280_v13, %v3094_v6 }
 0x447   :  { %v3244_v63 = vpop.f32.mrf.mxu1 }
 0x448   :  { %v3285_v10 = vadd.f32 %v3244_v63, %v3089_v39 }
 0x449   :  { %v7283_v38 = vpop.f32.mrf.mxu1 }
 0x44a   :  { %v3288_v15 = vadd.f32 %v7283_v38, %v3104_v33  ;;  %v3918_v38 = vpop.f32.mrf.mxu0 }
 0x44b   :  { %v3254_v9 = vpop.f32.mrf.mxu1 }
 0x44c   :  { %v3287_v13 = vadd.f32 %v3254_v9, %v3099_v1 }
 0x44d   :  { %v7286_v35 = vpop.f32.mrf.mxu1 }
 0x44f   :  { %v3264_v5 = vpop.f32.mrf.mxu1 }
 0x451   :  { %v9732_v32 = vpop.f32.mrf.mxu1 }
 0x453   :  { %v9734_v45 = vpop.f32.mrf.mxu1 }
 0x455   :  { %v7294_v44 = vpop.f32.mrf.mxu1 }
 0x456   :  { %v3450_v42 = vadd.f32 %v7294_v44, %v3284_v36 }
 0x457   :  { %v3400_v3 = vpop.f32.mrf.mxu1 }
 0x458   :  { %v3449_v29 = vadd.f32 %v3400_v3, %v3283_v16  ;;  %v3616_v48 = vadd.f32 %v9672_v18, %v3450_v42  ;;  %v3109_v3 = vadd.f32 %v9688_v7, %v9646_v60 }
 0x459   :  { %v7297_v11 = vpop.f32.mrf.mxu1 }
 0x45a   :  { %v3452_v46 = vadd.f32 %v7297_v11, %v3286_v41  ;;  %v3615_v27 = vadd.f32 %v9686_v19, %v3449_v29  ;;  %v3290_v19 = vadd.f32 %v7286_v35, %v3114_v4  ;;  %v3289_v47 = vadd.f32 %v3264_v5, %v3109_v3 }
 0x45b   :  { %v3410_v14 = vpop.f32.mrf.mxu1 }
 0x45c   :  { %v3451_v44 = vadd.f32 %v3410_v14, %v3285_v10  ;;  %v3618_v54 = vadd.f32 %v9694_v50, %v3452_v46 }
 0x45d   :  { %v7300_v28 = vpop.f32.mrf.mxu1 }
 0x45e   :  { %v3454_v49 = vadd.f32 %v7300_v28, %v3288_v15  ;;  %v3617_v28 = vadd.f32 %v9708_v20, %v3451_v44 }
 0x45f   :  { %v3420_v52 = vpop.f32.mrf.mxu1 }
 0x460   :  { %v3453_v11 = vadd.f32 %v3420_v52, %v3287_v13  ;;  %v3620_v6 = vadd.f32 %v9716_v57, %v3454_v49  ;;  %v7354_v52 = vpop.f32.mrf.mxu0 }
 0x461   :  { %v7303_v26 = vpop.f32.mrf.mxu1 }
 0x462   :  { %v3456_v36 = vadd.f32 %v7303_v26, %v3290_v19 }
 0x463   :  { %v3430_v59 = vpop.f32.mrf.mxu1 }
 0x464   :  { %v3455_v20 = vadd.f32 %v3430_v59, %v3289_v47  ;;  %v3622_v33 = vadd.f32 %v9726_v24, %v3456_v36  ;;  %v3928_v59 = vpop.f32.mrf.mxu0 }
 0x465   :  { %v7306_v62 = vpop.f32.mrf.mxu1 }
 0x467   :  { %v3440_v61 = vpop.f32.mrf.mxu1 }
 0x469   :  { %v7328_v37 = vpop.f32.mrf.mxu1 }
 0x46a   :  { %v3782_v55 = vadd.f32 %v7328_v37, %v3616_v48  ;;  %v3621_v48 = vadd.f32 %v9728_v31, %v3455_v20  ;;  %v7357_v37 = vpop.f32.mrf.mxu0 }
 0x46b   :  { %v3732_v18 = vpop.f32.mrf.mxu1 }
 0x46c   :  { %v3948_v63 = vadd.f32 %v7345_v40, %v3782_v55  ;;  %v3781_v56 = vadd.f32 %v3732_v18, %v3615_v27  ;;  %v3124_v40 = vadd.f32 %v9696_v51, %v9648_v34  ;;  %v3619_v34 = vadd.f32 %v9723_v8, %v3453_v11 }
 0x46d   :  { %v7331_v17 = vpop.f32.mrf.mxu1 }
 0x46e   :  { %v3963_v43 = vadd.f32 %v9757_v12, %v3948_v63  ;;  %v3947_v9 = vadd.f32 %v3898_v0, %v3781_v56  ;;  %v3784_v14 = vadd.f32 %v7331_v17, %v3618_v54  ;;  %v3119_v0 = vadd.f32 %v9702_v25, %v9650_v30  ;;  %v3938_v54 = vpop.f32.mrf.mxu0 }
 0x46f   :  { %v3742_v50 = vpop.f32.mrf.mxu1  ;;  %v3292_v42 = vadd.f32 %v9732_v32, %v3124_v40 }
 0x470   :  { %v3973_v16 = vmax.f32 %v3963_v43, 0.0  ;;  %v3962_v60 = vadd.f32 %v9757_v12, %v3947_v9  ;;  %v3950_v7 = vadd.f32 %v7348_v53, %v3784_v14  ;;  %v3783_v35 = vadd.f32 %v3742_v50, %v3617_v28  ;;  %v4317_v50 = vld [vmem:[%s10759_s4 + $0x28] sm:$0xff] }
 0x471   :  { %v7334_v39 = vpop.f32.mrf.mxu1  ;;  %v3291_v53 = vadd.f32 %v9734_v45, %v3119_v0  ;;  %v3458_v41 = vadd.f32 %v7306_v62, %v3292_v42  ;;  %4374 = vmatpush1.msra.mxu1 %v4317_v50 }
 0x472   :  { %3984 = vst.msk [vmem:[#allocation3 + $0x8] sm:$0xff] %vm3982_vm8, %v3973_v16  ;;  %v3972_v51 = vmax.f32 %v3962_v60, 0.0  ;;  %v3965_v57 = vadd.f32 %v9757_v12, %v3950_v7  ;;  %v3949_v5 = vadd.f32 %v3908_v21, %v3783_v35  ;;  %v3786_v26 = vadd.f32 %v7334_v39, %v3620_v6  ;;  %v4316_v6 = vld [vmem:[%s10759_s4 + $0x20] sm:$0xff]  ;;  %4375 = vmatprep.subr.mxu1 %v9710_v22  ;;  %v4314_v35 = vld [vmem:[%s10759_s4 + $0x10] sm:$0xff] }
 0x473   :  { %v3752_v29 = vpop.f32.mrf.mxu1  ;;  %v3457_v10 = vadd.f32 %v3440_v61, %v3291_v53  ;;  %v3624_v15 = vadd.f32 %v9730_v23, %v3458_v41  ;;  %4376 = vmatpush1.msra.mxu1 %v4316_v6 }
 0x474   :  { %3983 = vst.msk [vmem:[#allocation3] sm:$0xff] %vm3982_vm8, %v3972_v51  ;;  %v3975_v30 = vmax.f32 %v3965_v57, 0.0  ;;  %v3964_v25 = vadd.f32 %v9757_v12, %v3949_v5  ;;  %v3952_v32 = vadd.f32 %v7351_v58, %v3786_v26  ;;  %v3785_v8 = vadd.f32 %v3752_v29, %v3619_v34  ;;  %4377 = vmatprep.subr.mxu1 %v9710_v22 }
 0x475   :  { %v7337_v46 = vpop.f32.mrf.mxu1  ;;  %v3623_v31 = vadd.f32 %v9736_v2, %v3457_v10 }
 0x476   :  { %3986 = vst.msk [vmem:[#allocation3 + $0x18] sm:$0xff] %vm3982_vm8, %v3975_v30  ;;  %v3974_v21 = vmax.f32 %v3964_v25, 0.0  ;;  %v3967_v45 = vadd.f32 %v9757_v12, %v3952_v32  ;;  %v3951_v62 = vadd.f32 %v3918_v38, %v3785_v8  ;;  %v3788_v1 = vadd.f32 %v7337_v46, %v3622_v33 }
 0x477   :  { %v3762_v24 = vpop.f32.mrf.mxu1 }
 0x478   :  { %3985 = vst.msk [vmem:[#allocation3 + $0x10] sm:$0xff] %vm3982_vm8, %v3974_v21  ;;  %v3977_v58 = vmax.f32 %v3967_v45, 0.0  ;;  %v3966_v44 = vadd.f32 %v9757_v12, %v3951_v62  ;;  %v3954_v61 = vadd.f32 %v7354_v52, %v3788_v1  ;;  %v3787_v55 = vadd.f32 %v3762_v24, %v3621_v48  ;;  %v4313_v62 = vld [vmem:[%s10759_s4 + $0x8] sm:$0xff]  ;;  %v4312_v1 = vld [vmem:[%s10759_s4] sm:$0xff] }
 0x479   :  { %v7340_v27 = vpop.f32.mrf.mxu1 }
 0x47a   :  { %3988 = vst.msk [vmem:[#allocation3 + $0x28] sm:$0xff] %vm3982_vm8, %v3977_v58  ;;  %v3976_v4 = vmax.f32 %v3966_v44, 0.0  ;;  %v3969_v13 = vadd.f32 %v9757_v12, %v3954_v61  ;;  %v3953_v49 = vadd.f32 %v3928_v59, %v3787_v55  ;;  %v3790_v18 = vadd.f32 %v7340_v27, %v3624_v15  ;;  %v4073_v58 = vld [vmem:[#allocation2 + $0x14] sm:$0xff]  ;;  %v4329_v44 = vld [vmem:[%s10759_s4 + $0x88] sm:$0xff] }
 0x47b   :  { %v4027_v63 = vld [vmem:[#allocation3] ss:$2 sm:$0xff]  ;;  %v4029_v23 = vld [vmem:[#allocation3 + $0x1] ss:$2 sm:$0xff]  ;;  %v3772_v56 = vpop.f32.mrf.mxu1 }
 0x47c   :  { %v4031_v38 = vmax.f32 %v4027_v63, %v4029_v23  ;;  %3987 = vst.msk [vmem:[#allocation3 + $0x20] sm:$0xff] %vm3982_vm8, %v3976_v4  ;;  %v3979_v3 = vmax.f32 %v3969_v13, 0.0  ;;  %v3968_v19 = vadd.f32 %v9757_v12, %v3953_v49  ;;  %v3789_v11 = vadd.f32 %v3772_v56, %v3623_v31  ;;  %v4328_v31 = vld [vmem:[%s10759_s4 + $0x80] sm:$0xff]  ;;  %v9841_v13 = vld [vmem:[#allocation2 + $0x2c] sm:$0xff] }
 0x47d   :  { %v3956_v17 = vadd.f32 %v7357_v37, %v3790_v18  ;;  %v9843_v49 = vld [vmem:[#allocation2 + $0x2d] sm:$0xff] }
 0x47e   :  { %4033 = vst.msk [vmem:[#allocation2 + $0x4] sm:$0xff] %vm3982_vm8, %v4031_v38  ;;  %3990 = vst.msk [vmem:[#allocation3 + $0x38] sm:$0xff] %vm3982_vm8, %v3979_v3  ;;  %v3978_v2 = vmax.f32 %v3968_v19, 0.0  ;;  %v3955_v43 = vadd.f32 %v3938_v54, %v3789_v11  ;;  %v9845_v18 = vld [vmem:[#allocation2 + $0x2e] sm:$0xff] }
 0x47f   :  { %v4028_v9 = vld [vmem:[#allocation3 + $0x10] ss:$2 sm:$0xff]  ;;  %v4030_v14 = vld [vmem:[#allocation3 + $0x11] ss:$2 sm:$0xff]  ;;  %v3971_v28 = vadd.f32 %v9757_v12, %v3956_v17  ;;  %v9847_v63 = vld [vmem:[#allocation2 + $0x2f] sm:$0xff] }
 0x480   :  { %v4032_v40 = vmax.f32 %v4028_v9, %v4030_v14  ;;  %3989 = vst.msk [vmem:[#allocation3 + $0x30] sm:$0xff] %vm3982_vm8, %v3978_v2  ;;  %v3970_v47 = vadd.f32 %v9757_v12, %v3955_v43  ;;  %v4315_v12 = vld [vmem:[%s10759_s4 + $0x18] sm:$0xff]  ;;  %s7703_s4 = smov 112  }
 0x481   :  { %v3981_v36 = vmax.f32 %v3971_v28, 0.0  ;;  %4378 = vmatpush1.msra.mxu1 %v4315_v12 }
 0x482   :  { %4034 = vst.msk [vmem:[#allocation2 + $0xc] sm:$0xff] %vm3982_vm8, %v4032_v40  ;;  %v3980_v16 = vmax.f32 %v3970_v47, 0.0  ;;  %4379 = vmatprep.subr.mxu1 %v9710_v22 }
 0x483   :  { %3993 = vst.msk [vmem:[#allocation3 + $0x48] sm:$0xf] %vm3992_vm9, %v3981_v36  ;;  %4380 = vmatpush1.msra.mxu1 %v4314_v35 }
 0x484   :  { %3991 = vst.msk [vmem:[#allocation3 + $0x40] sm:$0xff] %vm3982_vm8, %v3980_v16  ;;  %4381 = vmatprep.subr.mxu1 %v9710_v22 }
 0x485   :  { %v4065_v0 = vld [vmem:[#allocation2 + $0x3] sm:$0xff]  ;;  %4382 = vmatpush1.msra.mxu1 %v4313_v62 }
 0x486   :  { %v4053_v42 = vld [vmem:[#allocation2 + $0x1] sm:$0xff]  ;;  %4383 = vmatprep.subr.mxu1 %v9710_v22 }
 0x487   :  { %v4036_v60 = vld [vmem:[#allocation3 + $0x26] ss:$2 sm:$0xff]  ;;  %v4040_v7 = vld [vmem:[#allocation3 + $0x27] ss:$2 sm:$0xff]  ;;  %v4071_v41 = vld [vmem:[#allocation2 + $0x4] sm:$0xff]  ;;  %4384 = vmatpush1.msra.mxu1 %v4312_v1 }
 0x488   :  { %v4043_v52 = vmax.f32 %v4036_v60, %v4040_v7  ;;  %v4059_v29 = vld [vmem:[#allocation2 + $0x2] sm:$0xff]  ;;  %4413 = vmatprep.subr.mxu1 %v9710_v22 }
 0x489   :  { %v9811_v20 = vld [vmem:[#allocation2 + $0x8] sm:$0xff]  ;;  %v9817_v30 = vld [vmem:[#allocation2] sm:$0xff]  ;;  %v4055_v24 = vld [vmem:[#allocation2 + $0x11] sm:$0xff]  ;;  %4414 = vmatpush2.msra.mxu1 %v4329_v44 }
 0x48a   :  { %v4066_v39 = vld [vmem:[#allocation2 + $0xb] sm:$0xff]  ;;  %4045 = vst.msk [vmem:[#allocation2 + $0x1c] sm:$0xff] %vm3982_vm8, %v4043_v52  ;;  %6122 = vmatprep.mubr.msk.f32.mxu1 %vm3982_vm8, %v9811_v20  ;;  %v4067_v15 = vld [vmem:[#allocation2 + $0x13] sm:$0xff]  ;;  %4415 = vmatprep.subr.mxu1 %v9710_v22 }
 0x48b   :  { %v4054_v34 = vld [vmem:[#allocation2 + $0x9] sm:$0xff]  ;;  %v7479_v51 = vpack.i.bf16 %v4066_v39, %v4065_v0  ;;  %v4061_v37 = vld [vmem:[#allocation2 + $0x12] sm:$0xff]  ;;  %4416 = vmatpush2.msra.mxu1 %v4328_v31 }
 0x48c   :  { %v7469_v57 = vpack.i.bf16 %v4054_v34, %v4053_v42  ;;  %v4072_v5 = vld [vmem:[#allocation2 + $0xc] sm:$0xff] }
 0x48d   :  { %v4038_v26 = vld [vmem:[#allocation3 + $0x36] ss:$2 sm:$0xff]  ;;  %v4042_v53 = vld [vmem:[#allocation3 + $0x37] ss:$2 sm:$0xff]  ;;  %7480 = vrot.lane.b32.xlu1 %v7479_v51, %s7697_s2  ;;  %v4084_v8 = vld [vmem:[#allocation2 + $0xe] sm:$0xff]  ;;  %v7484_v21 = vpack.i.bf16 %v4072_v5, %v4071_v41 }
 0x48e   :  { %v4060_v33 = vld [vmem:[#allocation2 + $0xa] sm:$0xff]  ;;  %v4044_v25 = vmax.f32 %v4038_v26, %v4042_v53  ;;  %7470 = vrot.lane.b32.xlu0 %v7469_v57, %s7698_s14 }
 0x48f   :  { %v4083_v32 = vld [vmem:[#allocation2 + $0x6] sm:$0xff]  ;;  %v4090_v48 = vld [vmem:[#allocation2 + $0xf] sm:$0xff]  ;;  %v7474_v45 = vpack.i.bf16 %v4060_v33, %v4059_v29 }
 0x490   :  { %v4077_v59 = vld [vmem:[#allocation2 + $0x5] sm:$0xff]  ;;  %v4078_v10 = vld [vmem:[#allocation2 + $0xd] sm:$0xff]  ;;  %4046 = vst.msk [vmem:[#allocation2 + $0x24] sm:$0xff] %vm3982_vm8, %v4044_v25  ;;  %v7494_v61 = vpack.i.bf16 %v4084_v8, %v4083_v32 }
 0x491   :  { %v4089_v46 = vld [vmem:[#allocation2 + $0x7] sm:$0xff]  ;;  %7485 = vrot.lane.b32.xlu1 %v7484_v21, %s7699_s19  ;;  %v7489_v55 = vpack.i.bf16 %v4078_v10, %v4077_v59  ;;  %v4056_v27 = vld [vmem:[#allocation2 + $0x19] sm:$0xff]  ;;  %v9839_v4 = vld [vmem:[#allocation2 + $0x10] sm:$0xff] }
 0x492   :  { %4461 = vst [vmem:[#allocation2 + $0x8] sm:$0xff] %v9710_v22  ;;  %4460 = vst [vmem:[#allocation2] sm:$0xff] %v9710_v22  ;;  %7475 = vrot.lane.b32.xlu0 %v7474_v45, %s7700_s20  ;;  %v4079_v23 = vld [vmem:[#allocation2 + $0x15] sm:$0xff]  ;;  %v7504_v9 = vpack.i.bf16 %v4056_v27, %v4055_v24  ;;  %v7499_v14 = vpack.i.bf16 %v4090_v48, %v4089_v46 }
 0x493   :  { %v4091_v56 = vld [vmem:[#allocation2 + $0x17] sm:$0xff] }
 0x494   :  { %v4085_v54 = vld [vmem:[#allocation2 + $0x16] sm:$0xff] }
 0x495   :  { %7495 = vrot.lane.b32.xlu1 %v7494_v61, %s7701_s23  ;;  %v4068_v38 = vld [vmem:[#allocation2 + $0x1b] sm:$0xff]  ;;  %4462 = vst [vmem:[#allocation2 + $0x10] sm:$0xff] %v9710_v22 }
 0x496   :  { %7490 = vrot.lane.b32.xlu0 %v7489_v55, %s7702_s24  ;;  %v4062_v3 = vld [vmem:[#allocation2 + $0x1a] sm:$0xff]  ;;  %v7514_v0 = vpack.i.bf16 %v4068_v38, %v4067_v15 }
 0x497   :  { %v4074_v19 = vld [vmem:[#allocation2 + $0x1c] sm:$0xff]  ;;  %v9855_v17 = vld [vmem:[#allocation2 + $0x29] sm:$0xff]  ;;  %v7509_v42 = vpack.i.bf16 %v4062_v3, %v4061_v37 }
 0x498   :  { %v9853_v11 = vld [vmem:[#allocation2 + $0x18] sm:$0xff]  ;;  %v9857_v2 = vld [vmem:[#allocation2 + $0x2a] sm:$0xff]  ;;  %v4063_v36 = vld [vmem:[#allocation2 + $0x22] sm:$0xff]  ;;  %v7519_v34 = vpack.i.bf16 %v4074_v19, %v4073_v58 }
 0x499   :  { %v9859_v43 = vld [vmem:[#allocation2 + $0x2b] sm:$0xff]  ;;  %v4080_v28 = vld [vmem:[#allocation2 + $0x1d] sm:$0xff]  ;;  %7505 = vrot.lane.b32.xlu1 %v7504_v9, %s7698_s14 }
 0x49a   :  { %v4092_v40 = vld [vmem:[#allocation2 + $0x1f] sm:$0xff]  ;;  %4980 = vst [vmem:[#allocation2 + $0x30] sm:$0xff] %v9710_v22  ;;  %7500 = vrot.lane.b32.xlu0 %v7499_v14, %s7703_s4  ;;  %v4093_v7 = vld [vmem:[#allocation2 + $0x27] sm:$0xff]  ;;  %v7524_v39 = vpack.i.bf16 %v4080_v28, %v4079_v23 }
 0x49b   :  { %v4086_v47 = vld [vmem:[#allocation2 + $0x1e] sm:$0xff]  ;;  %v4087_v12 = vld [vmem:[#allocation2 + $0x26] sm:$0xff]  ;;  %v7534_v51 = vpack.i.bf16 %v4092_v40, %v4091_v56 }
 0x49c   :  { %v4057_v50 = vld [vmem:[#allocation2 + $0x21] sm:$0xff]  ;;  %4463 = vst [vmem:[#allocation2 + $0x18] sm:$0xff] %v9710_v22  ;;  %v7529_v57 = vpack.i.bf16 %v4086_v47, %v4085_v54 }
 0x49d   :  { %v4075_v6 = vld [vmem:[#allocation2 + $0x24] sm:$0xff]  ;;  %7515 = vrot.lane.b32.xlu1 %v7514_v0, %s7697_s2 }
 0x49e   :  { %v4069_v16 = vld [vmem:[#allocation2 + $0x23] sm:$0xff]  ;;  %7510 = vrot.lane.b32.xlu0 %v7509_v42, %s7700_s20 }
 0x49f   :  { %v4081_v60 = vld [vmem:[#allocation2 + $0x25] sm:$0xff] }
 0x4a0   :  { %v9866_v35 = vld [vmem:[#allocation2 + $0x20] sm:$0xff]  ;;  %v9868_v52 = vld [vmem:[#allocation2 + $0x28] sm:$0xff] }
 0x4a1   :  { %4464 = vst [vmem:[#allocation2 + $0x20] sm:$0xff] %v9710_v22  ;;  %4465 = vst [vmem:[#allocation2 + $0x28] sm:$0xff] %v9710_v22  ;;  %7525 = vrot.lane.b32.xlu1 %v7524_v39, %s7702_s24 }
 0x4a2   :  { %7520 = vrot.lane.b32.xlu0 %v7519_v34, %s7699_s19 }
 0x4a5   :  { %7535 = vrot.lane.b32.xlu1 %v7534_v51, %s7703_s4 }
 0x4a6   :  { %7530 = vrot.lane.b32.xlu0 %v7529_v57, %s7701_s23 }
 0x4a9   :  { %4134 = vrot.lane.b32.xlu1 %v4063_v36, %s7700_s20 }
 0x4aa   :  { %4110 = vrot.lane.b32.xlu0 %v4057_v50, %s7698_s14 }
 0x4ad   :  { %4182 = vrot.lane.b32.xlu1 %v4075_v6, %s7699_s19 }
 0x4ae   :  { %4158 = vrot.lane.b32.xlu0 %v4069_v16, %s7697_s2 }
 0x4b1   :  { %4230 = vrot.lane.b32.xlu1 %v4087_v12, %s7701_s23 }
 0x4b2   :  { %4206 = vrot.lane.b32.xlu0 %v4081_v60, %s7702_s24 }
 0x4b6   :  { %4254 = vrot.lane.b32.xlu0 %v4093_v7, %s7703_s4 }
 0x4ff   :  { %v7481_v5 = vpop.permute.xlu1 %7480 }
 0x500   :  { %v7471_v26 = vpop.permute.xlu0 %7470  ;;  %v7482_v8 = vunpack.i.l.bf16 %v7481_v5  ;;  %v7483_v46 = vunpack.i.h.bf16 %v7481_v5 }
 0x501   :  { %v7473_v53 = vunpack.i.h.bf16 %v7471_v26  ;;  %v7472_v41 = vunpack.i.l.bf16 %v7471_v26 }
 0x503   :  { %v7486_v29 = vpop.permute.xlu1 %7485  ;;  %v4264_v59 = vsel %vm3982_vm8, %v9817_v30, %v7472_v41  ;;  %v4265_v10 = vsel %vm3982_vm8, %v9811_v20, %v7473_v53 }
 0x504   :  { %v7476_v33 = vpop.permute.xlu0 %7475  ;;  %v7487_v45 = vunpack.i.l.bf16 %v7486_v29  ;;  %v7488_v58 = vunpack.i.h.bf16 %v7486_v29 }
 0x505   :  { %v7478_v25 = vunpack.i.h.bf16 %v7476_v33  ;;  %v7477_v32 = vunpack.i.l.bf16 %v7476_v33 }
 0x507   :  { %v4271_v48 = vsel %vm4270_vm10, %v4264_v59, %v7477_v32  ;;  %v4272_v21 = vsel %vm4270_vm10, %v4265_v10, %v7478_v25  ;;  %v7496_v1 = vpop.permute.xlu1 %7495 }
 0x508   :  { %v4278_v62 = vsel %vm4277_vm11, %v4271_v48, %v7482_v8  ;;  %v7491_v24 = vpop.permute.xlu0 %7490  ;;  %v4279_v15 = vsel %vm4277_vm11, %v4272_v21, %v7483_v46  ;;  %v7497_v30 = vunpack.i.l.bf16 %v7496_v1  ;;  %v7498_v56 = vunpack.i.h.bf16 %v7496_v1 }
 0x509   :  { %v7492_v37 = vunpack.i.l.bf16 %v7491_v24  ;;  %v4285_v44 = vsel %vm4284_vm12, %v4278_v62, %v7487_v45  ;;  %v7493_v20 = vunpack.i.h.bf16 %v7491_v24  ;;  %v4286_v55 = vsel %vm4284_vm12, %v4279_v15, %v7488_v58 }
 0x50b   :  { %v4292_v61 = vsel %vm4291_vm13, %v4285_v44, %v7492_v37  ;;  %v7506_v27 = vpop.permute.xlu1 %7505  ;;  %v4293_v3 = vsel %vm4291_vm13, %v4286_v55, %v7493_v20 }
 0x50c   :  { %v7501_v31 = vpop.permute.xlu0 %7500  ;;  %v7507_v54 = vunpack.i.l.bf16 %v7506_v27  ;;  %v4299_v38 = vsel %vm4298_vm14, %v4292_v61, %v7497_v30  ;;  %v7508_v14 = vunpack.i.h.bf16 %v7506_v27  ;;  %v4300_v16 = vsel %vm4298_vm14, %v4293_v3, %v7498_v56  ;;  %v4512_v56 = vld [vmem:[#allocation2 + $0x21] sm:$0xf]  ;;  %v4749_v3 = vld [vmem:[%s10760_s5 + $0xf0] sm:$0xff] }
 0x50d   :  { %v7502_v23 = vunpack.i.l.bf16 %v7501_v31  ;;  %v7503_v19 = vunpack.i.h.bf16 %v7501_v31  ;;  %4562 = vrot.lane.b32.xlu1 %v4512_v56, %s7700_s20 }
 0x50e   :  { %v4266_v6 = vsel %vm3982_vm8, %v9839_v4, %v7507_v54  ;;  %v4267_v39 = vsel %vm3982_vm8, %v9853_v11, %v7508_v14  ;;  %v4750_v54 = vld [vmem:[%s10760_s5 + $0xf8] sm:$0xff]  ;;  %v4732_v14 = vld [vmem:[%s10760_s5 + $0x68] sm:$0xff] }
 0x50f   :  { %v4306_v9 = vsel %vm4305_vm15, %v4299_v38, %v7502_v23  ;;  %v7516_v28 = vpop.permute.xlu1 %7515  ;;  %v4307_v60 = vsel %vm4305_vm15, %v4300_v16, %v7503_v19  ;;  %v4734_v38 = vld [vmem:[%s10760_s5 + $0x78] sm:$0xff]  ;;  %6411 = vmatprep.subr.mxu0 %v4750_v54  ;;  %v4733_v19 = vld [vmem:[%s10760_s5 + $0x70] sm:$0xff]  ;;  %v4744_v16 = vld [vmem:[%s10760_s5 + $0xc8] sm:$0xff] }
 0x510   :  { %v7511_v40 = vpop.permute.xlu0 %7510  ;;  %4418 = vmatmul.mubr.f32.vlgmr.msra.gmra.mxu1 %v4306_v9  ;;  %v7517_v50 = vunpack.i.l.bf16 %v7516_v28  ;;  %v7518_v7 = vunpack.i.h.bf16 %v7516_v28  ;;  %6412 = vmatpush3.msra.mxu0 %v4734_v38  ;;  %v4748_v9 = vld [vmem:[%s10760_s5 + $0xe8] sm:$0xff]  ;;  %v4747_v28 = vld [vmem:[%s10760_s5 + $0xe0] sm:$0xff] }
 0x511   :  { %v7513_v47 = vunpack.i.h.bf16 %v7511_v40  ;;  %v7512_v36 = vunpack.i.l.bf16 %v7511_v40  ;;  %6123 = vmatprep.mubr.msk.f32.mxu1 %vm3982_vm8, %v9839_v4  ;;  %6413 = vmatprep.subr.mxu0 %v4749_v3  ;;  %v4731_v40 = vld [vmem:[%s10760_s5 + $0x60] sm:$0xff] }
 0x512   :  { %6414 = vmatpush3.msra.mxu0 %v4733_v19 }
 0x513   :  { %v4273_v12 = vsel %vm4270_vm10, %v4266_v6, %v7512_v36  ;;  %v7526_v0 = vpop.permute.xlu1 %7525  ;;  %v4274_v57 = vsel %vm4270_vm10, %v4267_v39, %v7513_v47  ;;  %6415 = vmatprep.subr.mxu0 %v4748_v9  ;;  %v4746_v47 = vld [vmem:[%s10760_s5 + $0xd8] sm:$0xff]  ;;  %v4729_v6 = vld [vmem:[%s10760_s5 + $0x50] sm:$0xff] }
 0x514   :  { %v7521_v42 = vpop.permute.xlu0 %7520  ;;  %4423 = vmatmul.mubr.f32.gmra.mxu1 %v4307_v60  ;;  %v7527_v4 = vunpack.i.l.bf16 %v7526_v0  ;;  %v4280_v5 = vsel %vm4277_vm11, %v4273_v12, %v7517_v50  ;;  %v7528_v53 = vunpack.i.h.bf16 %v7526_v0  ;;  %v4281_v41 = vsel %vm4277_vm11, %v4274_v57, %v7518_v7  ;;  %6416 = vmatpush3.msra.mxu0 %v4732_v14  ;;  %v4730_v36 = vld [vmem:[%s10760_s5 + $0x58] sm:$0xff]  ;;  %v4745_v50 = vld [vmem:[%s10760_s5 + $0xd0] sm:$0xff]  ;;  %v4728_v12 = vld [vmem:[%s10760_s5 + $0x48] sm:$0xff] }
 0x515   :  { %v7523_v34 = vunpack.i.h.bf16 %v7521_v42  ;;  %v7522_v51 = vunpack.i.l.bf16 %v7521_v42  ;;  %6124 = vmatprep.mubr.msk.f32.mxu1 %vm3982_vm8, %v9853_v11  ;;  %6417 = vmatprep.subr.mxu0 %v4747_v28  ;;  %v4743_v60 = vld [vmem:[%s10760_s5 + $0xc0] sm:$0xff]  ;;  %v4742_v0 = vld [vmem:[%s10760_s5 + $0xb8] sm:$0xff]  ;;  %v4741_v39 = vld [vmem:[%s10760_s5 + $0xb0] sm:$0xff] }
 0x516   :  { %6418 = vmatpush3.msra.mxu0 %v4731_v40  ;;  %v4727_v7 = vld [vmem:[%s10760_s5 + $0x40] sm:$0xff]  ;;  %v4726_v42 = vld [vmem:[%s10760_s5 + $0x38] sm:$0xff]  ;;  %v4724_v57 = vld [vmem:[%s10760_s5 + $0x28] sm:$0xff] }
 0x517   :  { %v4287_v26 = vsel %vm4284_vm12, %v4280_v5, %v7522_v51  ;;  %v7536_v29 = vpop.permute.xlu1 %7535  ;;  %v4288_v59 = vsel %vm4284_vm12, %v4281_v41, %v7523_v34  ;;  %6419 = vmatprep.subr.mxu0 %v4746_v47  ;;  %v4725_v34 = vld [vmem:[%s10760_s5 + $0x30] sm:$0xff]  ;;  %v4740_v51 = vld [vmem:[%s10760_s5 + $0xa8] sm:$0xff]  ;;  %v4723_v5 = vld [vmem:[%s10760_s5 + $0x20] sm:$0xff] }
 0x518   :  { %v7531_v33 = vpop.permute.xlu0 %7530  ;;  %v7537_v25 = vunpack.i.l.bf16 %v7536_v29  ;;  %v4294_v10 = vsel %vm4291_vm13, %v4287_v26, %v7527_v4  ;;  %v7538_v11 = vunpack.i.h.bf16 %v7536_v29  ;;  %v4295_v62 = vsel %vm4291_vm13, %v4288_v59, %v7528_v53  ;;  %6420 = vmatpush3.msra.mxu0 %v4730_v36  ;;  %v4739_v4 = vld [vmem:[%s10760_s5 + $0xa0] sm:$0xff]  ;;  %v4539_v9 = vld [vmem:[#allocation2 + $0xf] sm:$0xff] }
 0x519   :  { %v7533_v32 = vunpack.i.h.bf16 %v7531_v33  ;;  %v7532_v8 = vunpack.i.l.bf16 %v7531_v33  ;;  %6421 = vmatprep.subr.mxu0 %v4745_v50  ;;  %v10011_v26 = vld [vmem:[%s10762_s7 + $0x3] ss:$0 sm:$0xff]  ;;  %v4529_v50 = vld [vmem:[#allocation2 + $0xd] sm:$0xff] }
 0x51a   :  { %6422 = vmatpush3.msra.mxu0 %v4729_v6  ;;  %v4534_v6 = vld [vmem:[#allocation2 + $0xe] sm:$0xff] }
 0x51b   :  { %v4301_v46 = vsel %vm4298_vm14, %v4294_v10, %v7532_v8  ;;  %v4135_v48 = vpop.permute.xlu1 %4134  ;;  %v4302_v24 = vsel %vm4298_vm14, %v4295_v62, %v7533_v32  ;;  %6423 = vmatprep.subr.mxu0 %v4744_v16 }
 0x51c   :  { %v4111_v21 = vpop.permute.xlu0 %4110  ;;  %v4308_v45 = vsel %vm4305_vm15, %v4301_v46, %v7537_v25  ;;  %v4309_v30 = vsel %vm4305_vm15, %v4302_v24, %v7538_v11  ;;  %6424 = vmatpush3.msra.mxu0 %v4728_v12 }
 0x51d   :  { %v4268_v1 = vsel %vm3982_vm8, %v9866_v35, %v4111_v21  ;;  %4428 = vmatmul.mubr.f32.gmra.mxu1 %v4308_v45  ;;  %6425 = vmatprep.subr.mxu0 %v4743_v60 }
 0x51e   :  { %6125 = vmatprep.mubr.msk.f32.mxu1 %vm3982_vm8, %v9866_v35  ;;  %v4275_v37 = vsel %vm4270_vm10, %v4268_v1, %v4135_v48  ;;  %6426 = vmatpush3.msra.mxu0 %v4727_v7 }
 0x51f   :  { %v4183_v15 = vpop.permute.xlu1 %4182  ;;  %6427 = vmatprep.subr.mxu0 %v4742_v0 }
 0x520   :  { %v4159_v58 = vpop.permute.xlu0 %4158  ;;  %6428 = vmatpush3.msra.mxu0 %v4726_v42 }
 0x521   :  { %v4282_v44 = vsel %vm4277_vm11, %v4275_v37, %v4159_v58  ;;  %4433 = vmatmul.mubr.f32.gmra.mxu1 %v4309_v30  ;;  %6429 = vmatprep.subr.mxu0 %v4741_v39  ;;  %v4738_v37 = vld [vmem:[%s10760_s5 + $0x98] sm:$0xff]  ;;  %v4737_v30 = vld [vmem:[%s10760_s5 + $0x90] sm:$0xff] }
 0x522   :  { %6126 = vmatprep.mubr.msk.f32.mxu1 %vm3982_vm8, %v9868_v52  ;;  %v4289_v20 = vsel %vm4284_vm12, %v4282_v44, %v4183_v15  ;;  %6430 = vmatpush3.msra.mxu0 %v4725_v34  ;;  %v4722_v58 = vld [vmem:[%s10760_s5 + $0x18] sm:$0xff] }
 0x523   :  { %v4231_v55 = vpop.permute.xlu1 %4230  ;;  %6431 = vmatprep.subr.mxu0 %v4740_v51 }
 0x524   :  { %v4207_v61 = vpop.permute.xlu0 %4206  ;;  %6432 = vmatpush3.msra.mxu0 %v4724_v57 }
 0x525   :  { %v4296_v27 = vsel %vm4291_vm13, %v4289_v20, %v4207_v61  ;;  %6433 = vmatprep.subr.mxu0 %v4739_v4  ;;  %v4721_v20 = vld [vmem:[%s10760_s5 + $0x10] sm:$0xff]  ;;  %v4736_v61 = vld [vmem:[%s10760_s5 + $0x88] sm:$0xff] }
 0x526   :  { %v4303_v35 = vsel %vm4298_vm14, %v4296_v27, %v4231_v55  ;;  %6434 = vmatpush3.msra.mxu0 %v4723_v5  ;;  %v4720_v55 = vld [vmem:[%s10760_s5 + $0x8] sm:$0xff]  ;;  %v4735_v27 = vld [vmem:[%s10760_s5 + $0x80] sm:$0xff] }
 0x527   :  { %6435 = vmatprep.subr.mxu0 %v4738_v37 }
 0x528   :  { %v4255_v31 = vpop.permute.xlu0 %4254  ;;  %6436 = vmatpush3.msra.mxu0 %v4722_v58  ;;  %v4532_v58 = vld [vmem:[#allocation2 + $0x25] sm:$0xf] }
 0x529   :  { %v4310_v23 = vsel %vm4305_vm15, %v4303_v35, %v4255_v31  ;;  %6437 = vmatprep.subr.mxu0 %v4737_v30  ;;  %v4719_v35 = vld [vmem:[%s10760_s5] sm:$0xff] }
 0x52a   :  { %4438 = vmatmul.mubr.f32.gmra.mxu1 %v4310_v23  ;;  %6438 = vmatpush3.msra.mxu0 %v4721_v20  ;;  %v4522_v30 = vld [vmem:[#allocation2 + $0x23] sm:$0xf]  ;;  %v4542_v20 = vld [vmem:[#allocation2 + $0x27] sm:$0xf] }
 0x52b   :  { %6127 = vmatprep.mubr.msk.f32.mxu1 %vm3982_vm8, %v9710_v22  ;;  %6439 = vmatprep.subr.mxu0 %v4736_v61  ;;  %v4547_v61 = vld [vmem:[#allocation2 + $0x22] sm:$0xff] }
 0x52c   :  { %6440 = vmatpush3.msra.mxu0 %v4720_v55  ;;  %v4517_v55 = vld [vmem:[#allocation2 + $0x22] sm:$0xf] }
 0x52d   :  { %6441 = vmatprep.subr.mxu0 %v4735_v27  ;;  %v4545_v27 = vld [vmem:[#allocation2 + $0x21] sm:$0xff] }
 0x52e   :  { %6442 = vmatpush3.msra.mxu0 %v4719_v35  ;;  %v10083_v35 = vld [vmem:[#allocation2 + $0x20] sm:$0xf] }
 0x52f   :  { %7358 = vmatprep.subr.mxu0 %v9710_v22 }
 0x5d0   :  { %v4419_v53 = vpop.f32.mrf.mxu1 }
 0x5d1   :  { %v4420_v41 = vadd.f32 %v10011_v26, %v4419_v53 }
 0x5d2   :  { %v4421_v29 = vpop.f32.mrf.mxu1 }
 0x5d3   :  { %v4448_v33 = vmax.f32 %v4420_v41, 0.0 }
 0x5d4   :  { %v4424_v25 = vpop.f32.mrf.mxu1 }
 0x5d5   :  { %4454 = vst.msk [vmem:[#allocation3] sm:$0xff] %vm4270_vm10, %v4448_v33  ;;  %v4425_v32 = vadd.f32 %v10011_v26, %v4424_v25 }
 0x5d6   :  { %v4426_v8 = vpop.f32.mrf.mxu1 }
 0x5d7   :  { %v4449_v59 = vmax.f32 %v4425_v32, 0.0 }
 0x5d9   :  { %4455 = vst.msk [vmem:[#allocation3 + $0x8] sm:$0xff] %vm4270_vm10, %v4449_v59 }
 0x5dd   :  { %v4429_v10 = vpop.f32.mrf.mxu1 }
 0x5de   :  { %v4430_v46 = vadd.f32 %v10011_v26, %v4429_v10 }
 0x5df   :  { %v4431_v11 = vpop.f32.mrf.mxu1 }
 0x5e0   :  { %v4493_v48 = vld [vmem:[#allocation3] ss:$2 sm:$0xff]  ;;  %v4494_v21 = vld [vmem:[#allocation3 + $0x1] ss:$2 sm:$0xff]  ;;  %v4450_v45 = vmax.f32 %v4430_v46, 0.0  ;;  %v4541_v11 = vld [vmem:[#allocation2 + $0x1f] sm:$0xff] }
 0x5e1   :  { %v4495_v62 = vmax.f32 %v4493_v48, %v4494_v21  ;;  %v4434_v1 = vpop.f32.mrf.mxu1 }
 0x5e2   :  { %4456 = vst.msk [vmem:[#allocation3 + $0x10] sm:$0xff] %vm4270_vm10, %v4450_v45  ;;  %v4435_v24 = vadd.f32 %v10011_v26, %v4434_v1 }
 0x5e3   :  { %4496 = vst.msk [vmem:[#allocation2 + $0x5] sm:$0xff] %vm4270_vm10, %v4495_v62  ;;  %v4436_v15 = vpop.f32.mrf.mxu1 }
 0x5e4   :  { %v4451_v44 = vmax.f32 %v4435_v24, 0.0  ;;  %v10075_v15 = vld [vmem:[#allocation2 + $0x90] sm:$0xff] }
 0x5e6   :  { %4457 = vst.msk [vmem:[#allocation3 + $0x18] sm:$0xff] %vm4270_vm10, %v4451_v44  ;;  %v4537_v44 = vld [vmem:[#allocation2 + $0x26] sm:$0xf] }
 0x5ea   :  { %v4439_v31 = vpop.f32.mrf.mxu1  ;;  %v4513_v23 = vld [vmem:[#allocation2 + $0x2] sm:$0xff]  ;;  %v4519_v40 = vld [vmem:[#allocation2 + $0xb] sm:$0xff] }
 0x5eb   :  { %v4533_v56 = vld [vmem:[#allocation2 + $0x6] sm:$0xff]  ;;  %v4440_v38 = vadd.f32 %v10011_v26, %v4439_v31  ;;  %v7554_v34 = vpack.i.bf16 %v4519_v40, %v4539_v9 }
 0x5ec   :  { %v4508_v54 = vld [vmem:[#allocation2 + $0x1] sm:$0xff]  ;;  %v7544_v3 = vpack.i.bf16 %v4513_v23, %v4533_v56  ;;  %v4441_v14 = vpop.f32.mrf.mxu1  ;;  %v4509_v12 = vld [vmem:[#allocation2 + $0x9] sm:$0xff]  ;;  %v7589_v56 = vpack.i.bf16 %v4522_v30, %v4542_v20 }
 0x5ed   :  { %v4528_v19 = vld [vmem:[#allocation2 + $0x5] sm:$0xff]  ;;  %v4452_v16 = vmax.f32 %v4440_v38, 0.0 }
 0x5ee   :  { %v7539_v28 = vpack.i.bf16 %v4508_v54, %v4528_v19  ;;  %v4518_v47 = vld [vmem:[#allocation2 + $0x3] sm:$0xff]  ;;  %7545 = vrot.lane.b32.xlu0 %v7544_v3, %s7699_s19  ;;  %v10057_v39 = vld [vmem:[#allocation2 + $0xc] sm:$0xff] }
 0x5ef   :  { %v4538_v36 = vld [vmem:[#allocation2 + $0x7] sm:$0xff]  ;;  %4458 = vst.msk [vmem:[#allocation3 + $0x20] sm:$0xff] %vm4270_vm10, %v4452_v16 }
 0x5f0   :  { %v10049_v60 = vld [vmem:[#allocation2] sm:$0xff]  ;;  %7540 = vrot.lane.b32.xlu1 %v7539_v28, %s7700_s20  ;;  %v4514_v0 = vld [vmem:[#allocation2 + $0xa] sm:$0xff]  ;;  %v7549_v51 = vpack.i.bf16 %v4518_v47, %v4538_v36 }
 0x5f1   :  { %v10051_v7 = vld [vmem:[#allocation2 + $0x4] sm:$0xff] }
 0x5f2   :  { %v10054_v42 = vld [vmem:[#allocation2 + $0x8] sm:$0xff]  ;;  %4974 = vst [vmem:[#allocation2] sm:$0xff] %v9710_v22  ;;  %7555 = vrot.lane.b32.xlu0 %v7554_v34, %s7701_s23  ;;  %v10085_v31 = vld [vmem:[#allocation2 + $0x24] sm:$0xf] }
 0x5f3   :  { %4975 = vst [vmem:[#allocation2 + $0x8] sm:$0xff] %v9710_v22  ;;  %v4546_v3 = vld [vmem:[#allocation2 + $0x29] sm:$0xf] }
 0x5f4   :  { %7550 = vrot.lane.b32.xlu1 %v7549_v51, %s7701_s23  ;;  %v4548_v19 = vld [vmem:[#allocation2 + $0x2a] sm:$0xf]  ;;  %v4759_v51 = vld [vmem:[%s10760_s5 + $0x140] sm:$0xff] }
 0x5f5   :  { %v10105_v9 = vld [vmem:[#allocation2 + $0x28] sm:$0xf] }
 0x5f6   :  { %v4498_v57 = vld [vmem:[#allocation3 + $0x18] ss:$2 sm:$0xff]  ;;  %v4500_v4 = vld [vmem:[#allocation3 + $0x19] ss:$2 sm:$0xff]  ;;  %4979 = vst [vmem:[#allocation2 + $0x28] sm:$0xff] %v10075_v15 }
 0x5f7   :  { %v4501_v5 = vmax.f32 %v4498_v57, %v4500_v4  ;;  %v4760_v34 = vld [vmem:[%s10760_s5 + $0x148] sm:$0xff]  ;;  %v4758_v4 = vld [vmem:[%s10760_s5 + $0x138] sm:$0xff] }
 0x5f8   :  { %4556 = vrot.lane.b32.xlu1 %v4509_v12, %s7700_s20  ;;  %v4752_v20 = vld [vmem:[%s10760_s5 + $0x108] sm:$0xff] }
 0x5f9   :  { %4502 = vst.msk [vmem:[#allocation2 + $0x17] sm:$0xff] %vm4270_vm10, %v4501_v5 }
 0x5fc   :  { %4576 = vrot.lane.b32.xlu1 %v4514_v0, %s7699_s19  ;;  %v4762_v0 = vld [vmem:[%s10760_s5 + $0x158] sm:$0xff] }
 0x600   :  { %v4510_v53 = vld [vmem:[#allocation2 + $0x11] sm:$0xff]  ;;  %v4511_v8 = vld [vmem:[#allocation2 + $0x19] sm:$0xff] }
 0x601   :  { %v4530_v41 = vld [vmem:[#allocation2 + $0x15] sm:$0xff]  ;;  %4558 = vrot.lane.b32.xlu1 %v4510_v53, %s7700_s20  ;;  %v4531_v46 = vld [vmem:[#allocation2 + $0x1d] sm:$0xff] }
 0x602   :  { %v4520_v29 = vld [vmem:[#allocation2 + $0x13] sm:$0xff]  ;;  %v7559_v22 = vpack.i.bf16 %v4530_v41, %v4529_v50  ;;  %v4536_v48 = vld [vmem:[#allocation2 + $0x1e] sm:$0xff]  ;;  %v7574_v23 = vpack.i.bf16 %v4532_v58, %v4531_v46 }
 0x603   :  { %v4540_v33 = vld [vmem:[#allocation2 + $0x17] sm:$0xff]  ;;  %v7579_v54 = vpack.i.bf16 %v4537_v44, %v4536_v48 }
 0x604   :  { %v4535_v25 = vld [vmem:[#allocation2 + $0x16] sm:$0xff]  ;;  %7560 = vrot.lane.b32.xlu0 %v7559_v22, %s7700_s20  ;;  %v7569_v32 = vpack.i.bf16 %v4520_v29, %v4540_v33  ;;  %v4756_v29 = vld [vmem:[%s10760_s5 + $0x128] sm:$0xff]  ;;  %v4755_v33 = vld [vmem:[%s10760_s5 + $0x120] sm:$0xff] }
 0x605   :  { %v4515_v59 = vld [vmem:[#allocation2 + $0x12] sm:$0xff]  ;;  %v4516_v10 = vld [vmem:[#allocation2 + $0x1a] sm:$0xff]  ;;  %v7564_v62 = vpack.i.bf16 %v4535_v25, %v4534_v6 }
 0x606   :  { %v10068_v21 = vld [vmem:[#allocation2 + $0x10] sm:$0xff]  ;;  %7570 = vrot.lane.b32.xlu1 %v7569_v32, %s7701_s23  ;;  %v4521_v1 = vld [vmem:[#allocation2 + $0x1b] sm:$0xff] }
 0x607   :  { %v10070_v45 = vld [vmem:[#allocation2 + $0x14] sm:$0xff]  ;;  %v10078_v37 = vld [vmem:[#allocation2 + $0x1c] sm:$0xff]  ;;  %v7584_v38 = vpack.i.bf16 %v4521_v1, %v4541_v11 }
 0x608   :  { %v10073_v24 = vld [vmem:[#allocation2 + $0x18] sm:$0xff]  ;;  %4976 = vst [vmem:[#allocation2 + $0x10] sm:$0xff] %v10075_v15  ;;  %7565 = vrot.lane.b32.xlu0 %v7564_v62, %s7699_s19  ;;  %4978 = vst [vmem:[#allocation2 + $0x20] sm:$0xff] %v10075_v15  ;;  %v4757_v53 = vld [vmem:[%s10760_s5 + $0x130] sm:$0xff] }
 0x609   :  { %4977 = vst [vmem:[#allocation2 + $0x18] sm:$0xff] %v10075_v15  ;;  %v4753_v46 = vld [vmem:[%s10760_s5 + $0x110] sm:$0xff] }
 0x60a   :  { %4560 = vrot.lane.b32.xlu1 %v4511_v8, %s7700_s20 }
 0x60c   :  { %4578 = vrot.lane.b32.xlu0 %v4515_v59, %s7699_s19  ;;  %v4754_v59 = vld [vmem:[%s10760_s5 + $0x118] sm:$0xff] }
 0x60e   :  { %4580 = vrot.lane.b32.xlu1 %v4516_v10, %s7699_s19 }
 0x610   :  { %7575 = vrot.lane.b32.xlu0 %v7574_v23, %s7700_s20 }
 0x612   :  { %7590 = vrot.lane.b32.xlu1 %v7589_v56, %s7701_s23 }
 0x614   :  { %7580 = vrot.lane.b32.xlu0 %v7579_v54, %s7699_s19 }
 0x616   :  { %4679 = vrot.lane.b32.xlu1 %v4547_v61, %s7699_s19 }
 0x618   :  { %7585 = vrot.lane.b32.xlu0 %v7584_v38, %s7701_s23 }
 0x61a   :  { %4136 = vrot.lane.b32.xlu1 %v9857_v2, %s7700_s20 }
 0x61c   :  { %4582 = vrot.lane.b32.xlu0 %v4517_v55, %s7699_s19 }
 0x61e   :  { %4184 = vrot.lane.b32.xlu1 %v9841_v13, %s7699_s19  ;;  %v10116_v13 = vpop.permute.xlu1 %4562 }
 0x620   :  { %4671 = vrot.lane.b32.xlu0 %v4545_v27, %s7700_s20 }
 0x622   :  { %4232 = vrot.lane.b32.xlu1 %v9845_v18, %s7701_s23 }
 0x624   :  { %4112 = vrot.lane.b32.xlu0 %v9855_v17, %s7698_s14 }
 0x628   :  { %4160 = vrot.lane.b32.xlu0 %v9859_v43, %s7697_s2 }
 0x62c   :  { %4208 = vrot.lane.b32.xlu0 %v9843_v49, %s7702_s24 }
 0x630   :  { %4256 = vrot.lane.b32.xlu0 %v9847_v63, %s7703_s4  ;;  %s7704_s4 = smov [#allocation7]  }
 0x634   :  { %4673 = vrot.lane.b32.xlu0 %v4546_v3, %s7700_s20 }
 0x638   :  { %4681 = vrot.lane.b32.xlu0 %v4548_v19, %s7699_s19 }
 0x660   :  { %v7546_v18 = vpop.permute.xlu0 %7545 }
 0x661   :  { %v7548_v28 = vunpack.i.h.bf16 %v7546_v18  ;;  %v7547_v40 = vunpack.i.l.bf16 %v7546_v18 }
 0x662   :  { %v7541_v17 = vpop.permute.xlu1 %7540 }
 0x663   :  { %v7543_v2 = vunpack.i.h.bf16 %v7541_v17  ;;  %v7542_v14 = vunpack.i.l.bf16 %v7541_v17 }
 0x664   :  { %v7556_v5 = vpop.permute.xlu0 %7555 }
 0x665   :  { %v4685_v43 = vsel %vm4270_vm10, %v10049_v60, %v7543_v2  ;;  %v4700_v49 = vsel %vm4270_vm10, %v10051_v7, %v7542_v14  ;;  %v4761_v7 = vld [vmem:[%s10760_s5 + $0x150] sm:$0xff]  ;;  %v7557_v1 = vunpack.i.l.bf16 %v7556_v5 }
 0x666   :  { %v7551_v47 = vpop.permute.xlu1 %7550  ;;  %v4690_v50 = vsel %vm4284_vm12, %v4685_v43, %v7548_v28  ;;  %v4705_v6 = vsel %vm4284_vm12, %v4700_v49, %v7547_v40 }
 0x667   :  { %v7553_v63 = vunpack.i.h.bf16 %v7551_v47  ;;  %v7552_v36 = vunpack.i.l.bf16 %v7551_v47 }
 0x669   :  { %v4695_v16 = vsel %vm4298_vm14, %v4690_v50, %v7553_v63  ;;  %v4710_v12 = vsel %vm4298_vm14, %v4705_v6, %v7552_v36 }
 0x66a   :  { %4847 = vmatprep.mubr.f32.mxu0 %v4710_v12  ;;  %v4557_v60 = vpop.permute.xlu1 %4556 }
 0x66b   :  { %4848 = vmatmul.mubr.f32.vlgmr.msra.gmra.mxu0 %v4695_v16  ;;  %v4686_v11 = vsel %vm4270_vm10, %v10054_v42, %v4557_v60  ;;  %v7558_v42 = vunpack.i.h.bf16 %v7556_v5 }
 0x66c   :  { %7359 = vmatpush3.msra.mxu0 %v4762_v0 }
 0x66d   :  { %7360 = vmatprep.subr.mxu0 %v10075_v15 }
 0x66e   :  { %7361 = vmatpush3.msra.mxu0 %v4761_v7  ;;  %v4577_v57 = vpop.permute.xlu1 %4576 }
 0x66f   :  { %7362 = vmatprep.subr.mxu0 %v10075_v15  ;;  %v10167_v58 = vsel %vm4284_vm12, %v4686_v11, %v4577_v57  ;;  %v4689_v57 = vsel %vm4270_vm10, %v10083_v35, %v10116_v13 }
 0x670   :  { %7363 = vmatpush3.msra.mxu0 %v4760_v34  ;;  %v4696_v38 = vsel %vm4298_vm14, %v10167_v58, %v7558_v42 }
 0x671   :  { %7364 = vmatprep.subr.mxu0 %v10075_v15 }
 0x672   :  { %7365 = vmatpush3.msra.mxu0 %v4759_v51 }
 0x673   :  { %7366 = vmatprep.subr.mxu0 %v10075_v15  ;;  %v4559_v41 = vpop.permute.xlu1 %4558 }
 0x674   :  { %7367 = vmatpush3.msra.mxu0 %v4758_v4  ;;  %v4687_v54 = vsel %vm4270_vm10, %v10068_v21, %v4559_v41 }
 0x675   :  { %7368 = vmatprep.subr.mxu0 %v10075_v15 }
 0x676   :  { %7369 = vmatpush3.msra.mxu0 %v4757_v53  ;;  %v7561_v22 = vpop.permute.xlu0 %7560 }
 0x677   :  { %7370 = vmatprep.subr.mxu0 %v10075_v15  ;;  %v7563_v25 = vunpack.i.h.bf16 %v7561_v22  ;;  %v7562_v32 = vunpack.i.l.bf16 %v7561_v22 }
 0x678   :  { %7371 = vmatpush3.msra.mxu0 %v4756_v29  ;;  %v7571_v8 = vpop.permute.xlu1 %7570 }
 0x679   :  { %7372 = vmatprep.subr.mxu0 %v10075_v15  ;;  %v4701_v30 = vsel %vm4270_vm10, %v10057_v39, %v7562_v32  ;;  %v4702_v44 = vsel %vm4270_vm10, %v10070_v45, %v7563_v25  ;;  %v7572_v23 = vunpack.i.l.bf16 %v7571_v8  ;;  %v4751_v45 = vld [vmem:[%s10760_s5 + $0x100] sm:$0xff]  ;;  %v7573_v18 = vunpack.i.h.bf16 %v7571_v8 }
 0x67a   :  { %7373 = vmatpush3.msra.mxu0 %v4755_v33  ;;  %v7566_v10 = vpop.permute.xlu0 %7565 }
 0x67b   :  { %7374 = vmatprep.subr.mxu0 %v10075_v15  ;;  %v7568_v48 = vunpack.i.h.bf16 %v7566_v10  ;;  %v7567_v62 = vunpack.i.l.bf16 %v7566_v10 }
 0x67c   :  { %7375 = vmatpush3.msra.mxu0 %v4754_v59  ;;  %v4561_v61 = vpop.permute.xlu1 %4560 }
 0x67d   :  { %7376 = vmatprep.subr.mxu0 %v10075_v15  ;;  %v4706_v55 = vsel %vm4284_vm12, %v4701_v30, %v7567_v62  ;;  %v4707_v27 = vsel %vm4284_vm12, %v4702_v44, %v7568_v48  ;;  %v4688_v63 = vsel %vm4270_vm10, %v10073_v24, %v4561_v61  ;;  %v5175_v61 = vld [vmem:[%s10761_s6 + $0xf8] sm:$0xff] }
 0x67e   :  { %7377 = vmatpush3.msra.mxu0 %v4753_v46  ;;  %v4579_v56 = vpop.permute.xlu0 %4578  ;;  %v4711_v39 = vsel %vm4298_vm14, %v4706_v55, %v7557_v1  ;;  %v4712_v19 = vsel %vm4298_vm14, %v4707_v27, %v7572_v23  ;;  %v5159_v55 = vld [vmem:[%s10761_s6 + $0x78] sm:$0xff]  ;;  %6475 = vmatprep.subr.mxu1 %v5175_v61  ;;  %v5173_v27 = vld [vmem:[%s10761_s6 + $0xe8] sm:$0xff] }
 0x67f   :  { %7378 = vmatprep.subr.mxu0 %v10075_v15  ;;  %4852 = vmatprep.mubr.f32.mxu0 %v4711_v39  ;;  %v4692_v3 = vsel %vm4284_vm12, %v4687_v54, %v4579_v56  ;;  %v5157_v23 = vld [vmem:[%s10761_s6 + $0x68] sm:$0xff]  ;;  %v5172_v56 = vld [vmem:[%s10761_s6 + $0xe0] sm:$0xff]  ;;  %v5207_v39 = vld [vmem:[%s10761_s6 + $0x1f8] sm:$0xff] }
 0x680   :  { %7379 = vmatpush3.msra.mxu0 %v4752_v20  ;;  %v4581_v2 = vpop.permute.xlu1 %4580  ;;  %v4697_v14 = vsel %vm4298_vm14, %v4692_v3, %v7573_v18  ;;  %6476 = vmatpush3.msra.mxu1 %v5159_v55  ;;  %v5191_v54 = vld [vmem:[%s10761_s6 + $0x178] sm:$0xff] }
 0x681   :  { %4853 = vmatmul.mubr.f32.gmra.mxu0 %v4696_v38  ;;  %7380 = vmatprep.subr.mxu0 %v10075_v15  ;;  %v4693_v60 = vsel %vm4284_vm12, %v4688_v63, %v4581_v2  ;;  %v5171_v38 = vld [vmem:[%s10761_s6 + $0xd8] sm:$0xff]  ;;  %v5170_v2 = vld [vmem:[%s10761_s6 + $0xd0] sm:$0xff] }
 0x682   :  { %4857 = vmatprep.mubr.f32.mxu0 %v4712_v19  ;;  %7381 = vmatpush3.msra.mxu0 %v4751_v45  ;;  %v7576_v17 = vpop.permute.xlu0 %7575  ;;  %v5156_v45 = vld [vmem:[%s10761_s6 + $0x60] sm:$0xff]  ;;  %v5190_v19 = vld [vmem:[%s10761_s6 + $0x170] sm:$0xff]  ;;  %v5155_v18 = vld [vmem:[%s10761_s6 + $0x58] sm:$0xff] }
 0x683   :  { %v7578_v28 = vunpack.i.h.bf16 %v7576_v17  ;;  %v7577_v40 = vunpack.i.l.bf16 %v7576_v17  ;;  %6519 = vmatprep.subr.mxu0 %v5207_v39  ;;  %v5205_v17 = vld [vmem:[%s10761_s6 + $0x1e8] sm:$0xff]  ;;  %v5187_v63 = vld [vmem:[%s10761_s6 + $0x158] sm:$0xff] }
 0x684   :  { %v7591_v47 = vpop.permute.xlu1 %7590 }
 0x685   :  { %4858 = vmatmul.mubr.f32.gmra.mxu0 %v4697_v14  ;;  %v7592_v36 = vunpack.i.l.bf16 %v7591_v47  ;;  %v4703_v12 = vsel %vm4270_vm10, %v10078_v37, %v7577_v40  ;;  %v4704_v0 = vsel %vm4270_vm10, %v10085_v31, %v7578_v28  ;;  %v7593_v4 = vunpack.i.h.bf16 %v7591_v47  ;;  %v5189_v14 = vld [vmem:[%s10761_s6 + $0x168] sm:$0xff]  ;;  %v5154_v28 = vld [vmem:[%s10761_s6 + $0x50] sm:$0xff]  ;;  %v5188_v40 = vld [vmem:[%s10761_s6 + $0x160] sm:$0xff] }
 0x686   :  { %v7581_v21 = vpop.permute.xlu0 %7580  ;;  %v5153_v47 = vld [vmem:[%s10761_s6 + $0x48] sm:$0xff] }
 0x687   :  { %v7583_v43 = vunpack.i.h.bf16 %v7581_v21  ;;  %v7582_v49 = vunpack.i.l.bf16 %v7581_v21  ;;  %v5204_v21 = vld [vmem:[%s10761_s6 + $0x1e0] sm:$0xff] }
 0x688   :  { %v4680_v37 = vpop.permute.xlu1 %4679 }
 0x689   :  { %v4708_v7 = vsel %vm4284_vm12, %v4703_v12, %v7582_v49  ;;  %v4709_v34 = vsel %vm4284_vm12, %v4704_v0, %v7583_v43  ;;  %v5169_v43 = vld [vmem:[%s10761_s6 + $0xc8] sm:$0xff]  ;;  %v5203_v49 = vld [vmem:[%s10761_s6 + $0x1d8] sm:$0xff] }
 0x68a   :  { %v7586_v50 = vpop.permute.xlu0 %7585  ;;  %v4714_v53 = vsel %vm4298_vm14, %v4709_v34, %v7592_v36  ;;  %v5168_v36 = vld [vmem:[%s10761_s6 + $0xc0] sm:$0xff]  ;;  %v5167_v12 = vld [vmem:[%s10761_s6 + $0xb8] sm:$0xff]  ;;  %v5201_v0 = vld [vmem:[%s10761_s6 + $0x1c8] sm:$0xff] }
 0x68b   :  { %v7588_v6 = vunpack.i.h.bf16 %v7586_v50  ;;  %v7587_v16 = vunpack.i.l.bf16 %v7586_v50  ;;  %v5202_v50 = vld [vmem:[%s10761_s6 + $0x1d0] sm:$0xff] }
 0x68c   :  { %v4137_v22 = vpop.permute.xlu1 %4136  ;;  %v5166_v34 = vld [vmem:[%s10761_s6 + $0xb0] sm:$0xff] }
 0x68d   :  { %v4713_v51 = vsel %vm4298_vm14, %v4708_v7, %v7587_v16  ;;  %v4698_v24 = vsel %vm4298_vm14, %v4693_v60, %v7588_v6  ;;  %v5152_v6 = vld [vmem:[%s10761_s6 + $0x40] sm:$0xff]  ;;  %v5186_v16 = vld [vmem:[%s10761_s6 + $0x150] sm:$0xff]  ;;  %v5185_v7 = vld [vmem:[%s10761_s6 + $0x148] sm:$0xff] }
 0x68e   :  { %v4583_v5 = vpop.permute.xlu0 %4582  ;;  %4862 = vmatprep.mubr.f32.mxu0 %v4713_v51  ;;  %v5200_v51 = vld [vmem:[%s10761_s6 + $0x1c0] sm:$0xff] }
 0x68f   :  { %v4694_v31 = vsel %vm4284_vm12, %v4689_v57, %v4583_v5  ;;  %4863 = vmatmul.mubr.f32.gmra.mxu0 %v4698_v24  ;;  %v5150_v24 = vld [vmem:[%s10761_s6 + $0x30] sm:$0xff]  ;;  %v5184_v57 = vld [vmem:[%s10761_s6 + $0x140] sm:$0xff]  ;;  %v5149_v5 = vld [vmem:[%s10761_s6 + $0x28] sm:$0xff] }
 0x690   :  { %4867 = vmatprep.mubr.f32.mxu0 %v4714_v53  ;;  %v4699_v29 = vsel %vm4298_vm14, %v4694_v31, %v7593_v4  ;;  %v4185_v13 = vpop.permute.xlu1 %4184  ;;  %v5165_v4 = vld [vmem:[%s10761_s6 + $0xa8] sm:$0xff]  ;;  %v5148_v31 = vld [vmem:[%s10761_s6 + $0x20] sm:$0xff]  ;;  %v5163_v53 = vld [vmem:[%s10761_s6 + $0x98] sm:$0xff] }
 0x692   :  { %v4672_v41 = vpop.permute.xlu0 %4671 }
 0x693   :  { %4868 = vmatmul.mubr.f32.gmra.mxu0 %v4699_v29  ;;  %v5162_v29 = vld [vmem:[%s10761_s6 + $0x90] sm:$0xff] }
 0x694   :  { %7382 = vmatprep.mubr.msk.f32.mxu0 %vm7696_vm0, %v10075_v15  ;;  %v4233_v11 = vpop.permute.xlu1 %4232 }
 0x696   :  { %v4113_v33 = vpop.permute.xlu0 %4112 }
 0x697   :  { %v4269_v35 = vsel %vm3982_vm8, %v9868_v52, %v4113_v33  ;;  %7383 = vmatmul.mubr.msk.f32.vlgmr.msra.gmra.mxu0 %vm4298_vm14, %v10167_v58  ;;  %v4715_v52 = vsel %vm4270_vm10, %v10075_v15, %v4672_v41  ;;  %v5147_v41 = vld [vmem:[%s10761_s6 + $0x18] sm:$0xff]  ;;  %v5161_v33 = vld [vmem:[%s10761_s6 + $0x88] sm:$0xff] }
 0x698   :  { %7385 = vmatprep.mubr.msk.f32.mxu0 %vm7696_vm0, %v10075_v15  ;;  %v4276_v32 = vsel %vm4270_vm10, %v4269_v35, %v4137_v22  ;;  %v4717_v48 = vsel %vm4284_vm12, %v4715_v52, %v4680_v37  ;;  %6520 = vmatpush3.msra.mxu0 %v5191_v54  ;;  %v5164_v37 = vld [vmem:[%s10761_s6 + $0xa0] sm:$0xff]  ;;  %v5146_v22 = vld [vmem:[%s10761_s6 + $0x10] sm:$0xff] }
 0x69a   :  { %v4161_v25 = vpop.permute.xlu0 %4160 }
 0x69b   :  { %v4283_v8 = vsel %vm4277_vm11, %v4276_v32, %v4161_v25  ;;  %7386 = vmatmul.mubr.msk.f32.gmra.mxu0 %vm4298_vm14, %v4692_v3  ;;  %v5206_v3 = vld [vmem:[%s10761_s6 + $0x1f0] sm:$0xff] }
 0x69c   :  { %7388 = vmatprep.mubr.msk.f32.mxu0 %vm7696_vm0, %v10075_v15  ;;  %v4290_v59 = vsel %vm4284_vm12, %v4283_v8, %v4185_v13  ;;  %6521 = vmatprep.subr.mxu0 %v5206_v3 }
 0x69d   :  { %6522 = vmatpush3.msra.mxu0 %v5190_v19 }
 0x69e   :  { %v4209_v10 = vpop.permute.xlu0 %4208  ;;  %6523 = vmatprep.subr.mxu0 %v5205_v17 }
 0x69f   :  { %v4297_v46 = vsel %vm4291_vm13, %v4290_v59, %v4209_v10  ;;  %7389 = vmatmul.mubr.msk.f32.gmra.mxu0 %vm4298_vm14, %v4693_v60  ;;  %v5151_v60 = vld [vmem:[%s10761_s6 + $0x38] sm:$0xff] }
 0x6a0   :  { %7391 = vmatprep.mubr.msk.f32.mxu0 %vm7696_vm0, %v10075_v15  ;;  %v4304_v62 = vsel %vm4298_vm14, %v4297_v46, %v4233_v11  ;;  %6524 = vmatpush3.msra.mxu0 %v5189_v14 }
 0x6a1   :  { %6525 = vmatprep.subr.mxu0 %v5204_v21 }
 0x6a2   :  { %v4257_v1 = vpop.permute.xlu0 %4256  ;;  %6526 = vmatpush3.msra.mxu0 %v5188_v40 }
 0x6a3   :  { %v4311_v58 = vsel %vm4305_vm15, %v4304_v62, %v4257_v1  ;;  %7392 = vmatmul.mubr.msk.f32.gmra.mxu0 %vm4298_vm14, %v4717_v48  ;;  %6527 = vmatprep.subr.mxu0 %v5203_v49  ;;  %v6128_v48 = vld [vmem:[%s10762_s7 + $0x4] ss:$0 sm:$0xff]  ;;  %v5145_v49 = vld [vmem:[%s10761_s6 + $0x8] sm:$0xff] }
 0x6a4   :  { %4443 = vmatmul.mubr.f32.gmra.mxu1 %v4311_v58  ;;  %7394 = vmatprep.mubr.msk.f32.mxu0 %vm7696_vm0, %v10075_v15  ;;  %v5174_v15 = vld [vmem:[%s10761_s6 + $0xf0] sm:$0xff] }
 0x6a5   :  { %6477 = vmatprep.subr.mxu1 %v5174_v15  ;;  %6528 = vmatpush3.msra.mxu0 %v5187_v63  ;;  %v5160_v63 = vld [vmem:[%s10761_s6 + $0x80] sm:$0xff] }
 0x6a6   :  { %v4674_v30 = vpop.permute.xlu0 %4673  ;;  %6529 = vmatprep.subr.mxu0 %v5202_v50 }
 0x6a7   :  { %v4716_v44 = vsel %vm4270_vm10, %v10105_v9, %v4674_v30  ;;  %v5158_v9 = vld [vmem:[%s10761_s6 + $0x70] sm:$0xff]  ;;  %6530 = vmatpush3.msra.mxu0 %v5186_v16 }
 0x6a8   :  { %6478 = vmatpush3.msra.mxu1 %v5158_v9  ;;  %6531 = vmatprep.subr.mxu0 %v5201_v0  ;;  %v5198_v16 = vld [vmem:[%s10761_s6 + $0x1b0] sm:$0xff] }
 0x6a9   :  { %6479 = vmatprep.subr.mxu1 %v5173_v27  ;;  %6532 = vmatpush3.msra.mxu0 %v5185_v7  ;;  %v5239_v7 = vld [vmem:[%s10761_s6 + $0x2f8] sm:$0xff] }
 0x6aa   :  { %v4682_v20 = vpop.permute.xlu0 %4681  ;;  %6480 = vmatpush3.msra.mxu1 %v5157_v23  ;;  %6533 = vmatprep.subr.mxu0 %v5200_v51  ;;  %v5181_v51 = vld [vmem:[%s10761_s6 + $0x128] sm:$0xff] }
 0x6ab   :  { %v4718_v42 = vsel %vm4284_vm12, %v4716_v44, %v4682_v20  ;;  %6481 = vmatprep.subr.mxu1 %v5172_v56  ;;  %6534 = vmatpush3.msra.mxu0 %v5184_v57  ;;  %v5180_v57 = vld [vmem:[%s10761_s6 + $0x120] sm:$0xff] }
 0x6ac   :  { %7395 = vmatmul.mubr.msk.f32.gmra.mxu0 %vm4298_vm14, %v4718_v42  ;;  %6482 = vmatpush3.msra.mxu1 %v5156_v45 }
 0x6ad   :  { %6483 = vmatprep.subr.mxu1 %v5171_v38 }
 0x6ae   :  { %6484 = vmatpush3.msra.mxu1 %v5155_v18 }
 0x6af   :  { %6485 = vmatprep.subr.mxu1 %v5170_v2 }
 0x6b0   :  { %6486 = vmatpush3.msra.mxu1 %v5154_v28 }
 0x6b1   :  { %6487 = vmatprep.subr.mxu1 %v5169_v43 }
 0x6b2   :  { %6488 = vmatpush3.msra.mxu1 %v5153_v47  ;;  %v5199_v47 = vld [vmem:[%s10761_s6 + $0x1b8] sm:$0xff] }
 0x6b3   :  { %6489 = vmatprep.subr.mxu1 %v5168_v36  ;;  %6535 = vmatprep.subr.mxu0 %v5199_v47 }
 0x6b4   :  { %6490 = vmatpush3.msra.mxu1 %v5152_v6  ;;  %v5144_v6 = vld [vmem:[%s10761_s6] sm:$0xff] }
 0x6b5   :  { %6491 = vmatprep.subr.mxu1 %v5167_v12 }
 0x6b6   :  { %6492 = vmatpush3.msra.mxu1 %v5151_v60  ;;  %v5182_v60 = vld [vmem:[%s10761_s6 + $0x130] sm:$0xff] }
 0x6b7   :  { %6493 = vmatprep.subr.mxu1 %v5166_v34  ;;  %v5197_v34 = vld [vmem:[%s10761_s6 + $0x1a8] sm:$0xff] }
 0x6b8   :  { %6494 = vmatpush3.msra.mxu1 %v5150_v24  ;;  %v5196_v24 = vld [vmem:[%s10761_s6 + $0x1a0] sm:$0xff] }
 0x6b9   :  { %6495 = vmatprep.subr.mxu1 %v5165_v4 }
 0x6ba   :  { %6496 = vmatpush3.msra.mxu1 %v5149_v5  ;;  %v5195_v5 = vld [vmem:[%s10761_s6 + $0x198] sm:$0xff] }
 0x6bb   :  { %6497 = vmatprep.subr.mxu1 %v5164_v37 }
 0x6bc   :  { %6498 = vmatpush3.msra.mxu1 %v5148_v31  ;;  %v5179_v31 = vld [vmem:[%s10761_s6 + $0x118] sm:$0xff] }
 0x6bd   :  { %6499 = vmatprep.subr.mxu1 %v5163_v53 }
 0x6be   :  { %6500 = vmatpush3.msra.mxu1 %v5147_v41 }
 0x6bf   :  { %6501 = vmatprep.subr.mxu1 %v5162_v29 }
 0x6c0   :  { %6502 = vmatpush3.msra.mxu1 %v5146_v22 }
 0x6c1   :  { %6503 = vmatprep.subr.mxu1 %v5161_v33 }
 0x6c2   :  { %6504 = vmatpush3.msra.mxu1 %v5145_v49 }
 0x6c3   :  { %6505 = vmatprep.subr.mxu1 %v5160_v63 }
 0x6c4   :  { %6506 = vmatpush3.msra.mxu1 %v5144_v6  ;;  %v5026_v6 = vld [vmem:[#allocation2 + $0xa] sm:$0xff] }
 0x6c5   :  { %6563 = vmatprep.subr.mxu1 %v5239_v7 }
 0x72b   :  { %v6443_v35 = vpop.f32.mrf.mxu0 }
 0x72d   :  { %v6444_v13 = vpop.f32.mrf.mxu0 }
 0x72e   :  { %v6445_v46 = vadd.f32 %v6444_v13, %v6443_v35  ;;  %v5030_v35 = vld [vmem:[#allocation2 + $0xb] sm:$0xff] }
 0x730   :  { %v4850_v58 = vadd.f32 %v6445_v46, %v6128_v48 }
 0x741   :  { %v6446_v25 = vpop.f32.mrf.mxu0 }
 0x743   :  { %v6447_v32 = vpop.f32.mrf.mxu0 }
 0x744   :  { %v6448_v1 = vadd.f32 %v6447_v32, %v6446_v25 }
 0x745   :  { %v6449_v8 = vpop.f32.mrf.mxu0 }
 0x746   :  { %v4855_v55 = vadd.f32 %v6448_v1, %v6128_v48  ;;  %v5176_v1 = vld [vmem:[%s10761_s6 + $0x100] sm:$0xff] }
 0x747   :  { %v6450_v52 = vpop.f32.mrf.mxu0 }
 0x748   :  { %v6451_v42 = vadd.f32 %v6450_v52, %v6449_v8 }
 0x74a   :  { %v4860_v39 = vadd.f32 %v6451_v42, %v6128_v48 }
 0x74f   :  { %v6452_v59 = vpop.f32.mrf.mxu0 }
 0x751   :  { %v6453_v10 = vpop.f32.mrf.mxu0 }
 0x752   :  { %v6454_v23 = vadd.f32 %v6453_v10, %v6452_v59  ;;  %v5194_v59 = vld [vmem:[%s10761_s6 + $0x190] sm:$0xff] }
 0x753   :  { %v6455_v11 = vpop.f32.mrf.mxu0  ;;  %v5178_v10 = vld [vmem:[%s10761_s6 + $0x110] sm:$0xff] }
 0x754   :  { %v4865_v19 = vadd.f32 %v6454_v23, %v6128_v48 }
 0x755   :  { %v6456_v62 = vpop.f32.mrf.mxu0 }
 0x756   :  { %v6457_v12 = vadd.f32 %v6456_v62, %v6455_v11  ;;  %v5193_v11 = vld [vmem:[%s10761_s6 + $0x188] sm:$0xff]  ;;  %v5192_v62 = vld [vmem:[%s10761_s6 + $0x180] sm:$0xff] }
 0x757   :  { %v4939_v30 = vpop.f32.mrf.mxu0 }
 0x758   :  { %v4940_v44 = vadd.f32 %v4939_v30, %v4850_v58  ;;  %v4870_v4 = vadd.f32 %v6457_v12, %v6128_v48  ;;  %v5177_v48 = vld [vmem:[%s10761_s6 + $0x108] sm:$0xff]  ;;  %v10451_v58 = vld [vmem:[%s10761_s6 + $0x338] sm:$0xff] }
 0x759   :  { %v7384_v20 = vpop.f32.mrf.mxu0 }
 0x75a   :  { %v4963_v61 = vmax.f32 %v4940_v44, 0.0 }
 0x75b   :  { %v4944_v15 = vpop.f32.mrf.mxu0 }
 0x75c   :  { %4968 = vst.msk [vmem:[#allocation3] sm:$0xff] %vm4284_vm12, %v4963_v61  ;;  %v4945_v9 = vadd.f32 %v4944_v15, %v4855_v55  ;;  %v5038_v15 = vld [vmem:[#allocation2 + $0xd] sm:$0xff] }
 0x75d   :  { %v7387_v27 = vpop.f32.mrf.mxu0 }
 0x75e   :  { %v4964_v56 = vmax.f32 %v4945_v9, 0.0  ;;  %v5032_v27 = vld [vmem:[#allocation2 + $0x1b] sm:$0xff] }
 0x75f   :  { %v4949_v45 = vpop.f32.mrf.mxu0 }
 0x760   :  { %4969 = vst.msk [vmem:[#allocation3 + $0x8] sm:$0xff] %vm4284_vm12, %v4964_v56  ;;  %v4950_v54 = vadd.f32 %v4949_v45, %v4860_v39  ;;  %v5040_v56 = vld [vmem:[#allocation2 + $0x1d] sm:$0xff] }
 0x761   :  { %v7390_v38 = vpop.f32.mrf.mxu0  ;;  %v5048_v39 = vld [vmem:[#allocation2 + $0x1f] sm:$0xff] }
 0x762   :  { %v4965_v3 = vmax.f32 %v4950_v54, 0.0 }
 0x763   :  { %v5007_v18 = vld [vmem:[#allocation3] ss:$2 sm:$0xf]  ;;  %v5008_v17 = vld [vmem:[#allocation3 + $0x1] ss:$2 sm:$0xf]  ;;  %v4954_v2 = vpop.f32.mrf.mxu0 }
 0x764   :  { %v5009_v14 = vmax.f32 %v5007_v18, %v5008_v17  ;;  %4970 = vst.msk [vmem:[#allocation3 + $0x10] sm:$0xff] %vm4284_vm12, %v4965_v3  ;;  %v4955_v21 = vadd.f32 %v4954_v2, %v4865_v19  ;;  %v4444_v28 = vpop.f32.mrf.mxu1  ;;  %v7629_v19 = vpack.i.bf16 %v5040_v56, %v5048_v39  ;;  %v5050_v18 = vld [vmem:[#allocation2 + $0x21] sm:$0xff]  ;;  %v10529_v56 = vld [vmem:[#allocation2 + $0xc] sm:$0xff] }
 0x765   :  { %v4445_v40 = vadd.f32 %v10011_v26, %v4444_v28  ;;  %v7393_v43 = vpop.f32.mrf.mxu0  ;;  %v5183_v26 = vld [vmem:[%s10761_s6 + $0x138] sm:$0xff]  ;;  %v5052_v17 = vld [vmem:[#allocation2 + $0x23] sm:$0xff] }
 0x766   :  { %v4966_v36 = vmax.f32 %v4955_v21, 0.0  ;;  %v4446_v50 = vpop.f32.mrf.mxu1  ;;  %5010 = vst.msk [vmem:[#allocation2 + $0x6] sm:$0xf] %vm4972_vm1, %v5009_v14  ;;  %6536 = vmatpush3.msra.mxu0 %v5183_v26  ;;  %v7634_v14 = vpack.i.bf16 %v5050_v18, %v5052_v17  ;;  %v5238_v26 = vld [vmem:[%s10761_s6 + $0x2f0] sm:$0xff]  ;;  %v5215_v17 = vld [vmem:[%s10761_s6 + $0x238] sm:$0xff] }
 0x767   :  { %v4453_v0 = vmax.f32 %v4445_v40, 0.0  ;;  %6537 = vmatprep.subr.mxu0 %v5198_v16 }
 0x768   :  { %4971 = vst.msk [vmem:[#allocation3 + $0x18] sm:$0xff] %vm4284_vm12, %v4966_v36  ;;  %6538 = vmatpush3.msra.mxu0 %v5182_v60  ;;  %v5223_v36 = vld [vmem:[%s10761_s6 + $0x278] sm:$0xff]  ;;  %v5237_v60 = vld [vmem:[%s10761_s6 + $0x2e8] sm:$0xff] }
 0x769   :  { %4459 = vst.msk [vmem:[#allocation3 + $0x28] sm:$0xff] %vm4270_vm10, %v4453_v0  ;;  %6539 = vmatprep.subr.mxu0 %v5197_v34  ;;  %v5222_v0 = vld [vmem:[%s10761_s6 + $0x270] sm:$0xff] }
 0x76a   :  { %6540 = vmatpush3.msra.mxu0 %v5181_v51 }
 0x76b   :  { %6541 = vmatprep.subr.mxu0 %v5196_v24  ;;  %v5221_v24 = vld [vmem:[%s10761_s6 + $0x268] sm:$0xff] }
 0x76c   :  { %v4959_v37 = vpop.f32.mrf.mxu0  ;;  %6542 = vmatpush3.msra.mxu0 %v5180_v57  ;;  %v5236_v57 = vld [vmem:[%s10761_s6 + $0x2e0] sm:$0xff] }
 0x76d   :  { %v4960_v53 = vadd.f32 %v4959_v37, %v4870_v4  ;;  %v5021_v41 = vld [vmem:[#allocation2 + $0x1] sm:$0xff]  ;;  %v5022_v33 = vld [vmem:[#allocation2 + $0x9] sm:$0xff]  ;;  %6543 = vmatprep.subr.mxu0 %v5195_v5  ;;  %v5235_v5 = vld [vmem:[%s10761_s6 + $0x2d8] sm:$0xff] }
 0x76e   :  { %v5029_v29 = vld [vmem:[#allocation2 + $0x3] sm:$0xff]  ;;  %v7396_v13 = vpop.f32.mrf.mxu0  ;;  %6544 = vmatpush3.msra.mxu0 %v5179_v31  ;;  %v7599_v46 = vpack.i.bf16 %v5022_v33, %v5030_v35  ;;  %v5219_v37 = vld [vmem:[%s10761_s6 + $0x258] sm:$0xff] }
 0x76f   :  { %v7594_v22 = vpack.i.bf16 %v5021_v41, %v5029_v29  ;;  %v5012_v25 = vld [vmem:[#allocation3 + $0x12] ss:$2 sm:$0xf]  ;;  %v5014_v32 = vld [vmem:[#allocation3 + $0x13] ss:$2 sm:$0xf]  ;;  %6545 = vmatprep.subr.mxu0 %v5194_v59 }
 0x770   :  { %v5015_v8 = vmax.f32 %v5012_v25, %v5014_v32  ;;  %v4967_v52 = vmax.f32 %v4960_v53, 0.0  ;;  %6546 = vmatpush3.msra.mxu0 %v5178_v10  ;;  %v5037_v30 = vld [vmem:[#allocation2 + $0x5] sm:$0xff]  ;;  %v5234_v41 = vld [vmem:[%s10761_s6 + $0x2d0] sm:$0xff] }
 0x771   :  { %7595 = vrot.lane.b32.xlu1 %v7594_v22, %s7699_s19  ;;  %6547 = vmatprep.subr.mxu0 %v5193_v11  ;;  %v5045_v42 = vld [vmem:[#allocation2 + $0x7] sm:$0xff]  ;;  %v5218_v25 = vld [vmem:[%s10761_s6 + $0x250] sm:$0xff] }
 0x772   :  { %4973 = vst.msk [vmem:[#allocation3 + $0x20] sm:$0xf] %vm4972_vm1, %v4967_v52  ;;  %5016 = vst.msk [vmem:[#allocation2 + $0x16] sm:$0xf] %vm4972_vm1, %v5015_v8  ;;  %6548 = vmatpush3.msra.mxu0 %v5177_v48  ;;  %v5017_v43 = vld [vmem:[#allocation2] sm:$0xff]  ;;  %v5018_v7 = vld [vmem:[#allocation2 + $0x8] sm:$0xff] }
 0x773   :  { %6549 = vmatprep.subr.mxu0 %v5192_v62  ;;  %v5025_v49 = vld [vmem:[#allocation2 + $0x2] sm:$0xff] }
 0x774   :  { %6550 = vmatpush3.msra.mxu0 %v5176_v1  ;;  %v5220_v4 = vld [vmem:[%s10761_s6 + $0x260] sm:$0xff]  ;;  %v5233_v52 = vld [vmem:[%s10761_s6 + $0x2c8] sm:$0xff] }
 0x775   :  { %7600 = vrot.lane.b32.xlu1 %v7599_v46, %s7699_s19  ;;  %7397 = vmatprep.subr.mxu0 %v10451_v58  ;;  %v5033_v33 = vld [vmem:[#allocation2 + $0x4] sm:$0xff] }
 0x776   :  { %v5041_v32 = vld [vmem:[#allocation2 + $0x6] sm:$0xff] }
 0x779   :  { %v5023_v44 = vld [vmem:[#allocation2 + $0x11] sm:$0xff]  ;;  %v5024_v9 = vld [vmem:[#allocation2 + $0x19] sm:$0xff] }
 0x77a   :  { %v5031_v20 = vld [vmem:[#allocation2 + $0x13] sm:$0xff]  ;;  %v7609_v61 = vpack.i.bf16 %v5037_v30, %v5023_v44  ;;  %v7619_v45 = vpack.i.bf16 %v5038_v15, %v5024_v9  ;;  %v5217_v30 = vld [vmem:[%s10761_s6 + $0x248] sm:$0xff]  ;;  %v5232_v9 = vld [vmem:[%s10761_s6 + $0x2c0] sm:$0xff] }
 0x77b   :  { %v7604_v55 = vpack.i.bf16 %v5045_v42, %v5031_v20  ;;  %v5046_v23 = vld [vmem:[#allocation2 + $0xf] sm:$0xff]  ;;  %v5047_v3 = vld [vmem:[#allocation2 + $0x17] sm:$0xff] }
 0x77c   :  { %7610 = vrot.lane.b32.xlu0 %v7609_v61, %s7699_s19  ;;  %v7614_v54 = vpack.i.bf16 %v5046_v23, %v5032_v27  ;;  %v5039_v38 = vld [vmem:[#allocation2 + $0x15] sm:$0xff]  ;;  %v5216_v23 = vld [vmem:[%s10761_s6 + $0x240] sm:$0xff] }
 0x77d   :  { %7605 = vrot.lane.b32.xlu1 %v7604_v55, %s7699_s19  ;;  %v7624_v2 = vpack.i.bf16 %v5039_v38, %v5047_v3  ;;  %v5027_v8 = vld [vmem:[#allocation2 + $0x12] sm:$0xff]  ;;  %v5028_v44 = vld [vmem:[#allocation2 + $0x1a] sm:$0xff] }
 0x77e   :  { %v5019_v59 = vld [vmem:[#allocation2 + $0x10] sm:$0xff]  ;;  %v5020_v38 = vld [vmem:[#allocation2 + $0x18] sm:$0xff] }
 0x77f   :  { %v5042_v20 = vld [vmem:[#allocation2 + $0xe] sm:$0xff] }
 0x780   :  { %7620 = vrot.lane.b32.xlu0 %v7619_v45, %s7699_s19  ;;  %v5246_v27 = vld [vmem:[%s10761_s6 + $0x330] sm:$0xff] }
 0x781   :  { %7615 = vrot.lane.b32.xlu1 %v7614_v54, %s7699_s19  ;;  %v5231_v54 = vld [vmem:[%s10761_s6 + $0x2b8] sm:$0xff] }
 0x784   :  { %7630 = vrot.lane.b32.xlu0 %v7629_v19, %s7699_s19 }
 0x785   :  { %7625 = vrot.lane.b32.xlu1 %v7624_v2, %s7699_s19  ;;  %v5245_v2 = vld [vmem:[%s10761_s6 + $0x328] sm:$0xff] }
 0x789   :  { %7635 = vrot.lane.b32.xlu1 %v7634_v14, %s7699_s19  ;;  %v5230_v14 = vld [vmem:[%s10761_s6 + $0x2b0] sm:$0xff] }
 0x7e3   :  { %v7596_v21 = vpop.permute.xlu1 %7595 }
 0x7e4   :  { %v7598_v28 = vunpack.i.h.bf16 %v7596_v21  ;;  %v7597_v40 = vunpack.i.l.bf16 %v7596_v21 }
 0x7e6   :  { %v5126_v47 = vsel %vm4284_vm12, %v5017_v43, %v7598_v28  ;;  %v5130_v63 = vsel %vm4284_vm12, %v5025_v49, %v7597_v40  ;;  %v5214_v40 = vld [vmem:[%s10761_s6 + $0x230] sm:$0xff]  ;;  %v5244_v43 = vld [vmem:[%s10761_s6 + $0x320] sm:$0xff] }
 0x7e7   :  { %v7601_v50 = vpop.permute.xlu1 %7600  ;;  %5329 = vmatprep.mubr.f32.mxu1 %v5130_v63  ;;  %v5043_v49 = vld [vmem:[#allocation2 + $0x16] sm:$0xff]  ;;  %v5229_v63 = vld [vmem:[%s10761_s6 + $0x2a8] sm:$0xff] }
 0x7e8   :  { %v7603_v16 = vunpack.i.h.bf16 %v7601_v50  ;;  %v7602_v12 = vunpack.i.l.bf16 %v7601_v50  ;;  %5330 = vmatmul.mubr.f32.vlgmr.msra.gmra.mxu1 %v5126_v47  ;;  %v5035_v50 = vld [vmem:[#allocation2 + $0x14] sm:$0xff] }
 0x7e9   :  { %6564 = vmatpush3.msra.mxu1 %v5223_v36 }
 0x7ea   :  { %6565 = vmatprep.subr.mxu1 %v5238_v26  ;;  %v10476_v34 = vsel %vm4284_vm12, %v5026_v6, %v7602_v12  ;;  %v10479_v51 = vsel %vm4284_vm12, %v5018_v7, %v7603_v16  ;;  %v5213_v26 = vld [vmem:[%s10761_s6 + $0x228] sm:$0xff]  ;;  %v5243_v16 = vld [vmem:[%s10761_s6 + $0x318] sm:$0xff]  ;;  %v5212_v7 = vld [vmem:[%s10761_s6 + $0x220] sm:$0xff] }
 0x7eb   :  { %6566 = vmatpush3.msra.mxu1 %v5222_v0  ;;  %5334 = vmatprep.mubr.f32.mxu1 %v10476_v34  ;;  %v5044_v12 = vld [vmem:[#allocation2 + $0x1e] sm:$0xff] }
 0x7ec   :  { %6567 = vmatprep.subr.mxu1 %v5237_v60  ;;  %5335 = vmatmul.mubr.f32.gmra.mxu1 %v10479_v51  ;;  %v5228_v60 = vld [vmem:[%s10761_s6 + $0x2a0] sm:$0xff] }
 0x7ed   :  { %6568 = vmatpush3.msra.mxu1 %v5221_v24  ;;  %v5036_v24 = vld [vmem:[#allocation2 + $0x1c] sm:$0xff] }
 0x7ee   :  { %6569 = vmatprep.subr.mxu1 %v5236_v57  ;;  %v7611_v31 = vpop.permute.xlu0 %7610 }
 0x7ef   :  { %6570 = vmatpush3.msra.mxu1 %v5220_v4  ;;  %v7606_v53 = vpop.permute.xlu1 %7605  ;;  %v7613_v29 = vunpack.i.h.bf16 %v7611_v31  ;;  %v7612_v22 = vunpack.i.l.bf16 %v7611_v31  ;;  %v5227_v4 = vld [vmem:[%s10761_s6 + $0x298] sm:$0xff]  ;;  %v5241_v31 = vld [vmem:[%s10761_s6 + $0x308] sm:$0xff] }
 0x7f0   :  { %v7608_v35 = vunpack.i.h.bf16 %v7606_v53  ;;  %v7607_v13 = vunpack.i.l.bf16 %v7606_v53  ;;  %6571 = vmatprep.subr.mxu1 %v5235_v5  ;;  %v5211_v5 = vld [vmem:[%s10761_s6 + $0x218] sm:$0xff]  ;;  %v5226_v53 = vld [vmem:[%s10761_s6 + $0x290] sm:$0xff] }
 0x7f1   :  { %6572 = vmatpush3.msra.mxu1 %v5219_v37  ;;  %v5134_v10 = vsel %vm4284_vm12, %v5033_v33, %v7613_v29  ;;  %v10513_v48 = vsel %vm4284_vm12, %v5019_v59, %v7612_v22  ;;  %v5240_v29 = vld [vmem:[%s10761_s6 + $0x300] sm:$0xff]  ;;  %v5225_v22 = vld [vmem:[%s10761_s6 + $0x288] sm:$0xff] }
 0x7f2   :  { %6573 = vmatprep.subr.mxu1 %v5234_v41  ;;  %v10509_v46 = vsel %vm4284_vm12, %v5027_v8, %v7607_v13  ;;  %v5138_v11 = vsel %vm4284_vm12, %v5041_v32, %v7608_v35  ;;  %v7621_v62 = vpop.permute.xlu0 %7620  ;;  %v5210_v41 = vld [vmem:[%s10761_s6 + $0x210] sm:$0xff]  ;;  %v5209_v33 = vld [vmem:[%s10761_s6 + $0x208] sm:$0xff]  ;;  %v5224_v35 = vld [vmem:[%s10761_s6 + $0x280] sm:$0xff] }
 0x7f3   :  { %6574 = vmatpush3.msra.mxu1 %v5218_v25  ;;  %v7616_v1 = vpop.permute.xlu1 %7615  ;;  %5339 = vmatprep.mubr.f32.mxu1 %v10509_v46  ;;  %v7623_v42 = vunpack.i.h.bf16 %v7621_v62  ;;  %v7622_v61 = vunpack.i.l.bf16 %v7621_v62  ;;  %v5208_v13 = vld [vmem:[%s10761_s6 + $0x200] sm:$0xff]  ;;  %v10619_v8 = vld [vmem:[#allocation2 + $0x90] sm:$0xff] }
 0x7f4   :  { %v7618_v55 = vunpack.i.h.bf16 %v7616_v1  ;;  %v7617_v15 = vunpack.i.l.bf16 %v7616_v1  ;;  %5414 = vmatprep.mubr.f32.mxu0 %v5138_v11  ;;  %6575 = vmatprep.subr.mxu1 %v5233_v52  ;;  %v5053_v32 = vld [vmem:[#allocation2 + $0x24] sm:$0xff]  ;;  %v5662_v11 = vld [vmem:[%s10763_s8 + $0xf8] sm:$0xff]  ;;  %v5661_v62 = vld [vmem:[%s10763_s8 + $0xf0] sm:$0xff] }
 0x7f5   :  { %5340 = vmatmul.mubr.f32.gmra.mxu1 %v10513_v48  ;;  %5415 = vmatmul.mubr.f32.vlgmr.msra.gmra.mxu0 %v5134_v10  ;;  %v10540_v19 = vsel %vm4284_vm12, %v5020_v38, %v7622_v61  ;;  %v5051_v59 = vld [vmem:[#allocation2 + $0x22] sm:$0xff]  ;;  %v5645_v1 = vld [vmem:[%s10763_s8 + $0x70] sm:$0xff]  ;;  %v5658_v61 = vld [vmem:[%s10763_s8 + $0xd8] sm:$0xff] }
 0x7f6   :  { %6576 = vmatpush3.msra.mxu1 %v5217_v30  ;;  %7398 = vmatpush3.msra.mxu0 %v10451_v58  ;;  %v10533_v39 = vsel %vm4284_vm12, %v5028_v44, %v7617_v15  ;;  %v5139_v45 = vsel %vm4284_vm12, %v5042_v20, %v7618_v55  ;;  %v5135_v58 = vsel %vm4284_vm12, %v10529_v56, %v7623_v42  ;;  %v7631_v28 = vpop.permute.xlu0 %7630  ;;  %v5660_v30 = vld [vmem:[%s10763_s8 + $0xe8] sm:$0xff]  ;;  %v5659_v20 = vld [vmem:[%s10763_s8 + $0xe0] sm:$0xff]  ;;  %v5642_v55 = vld [vmem:[%s10763_s8 + $0x58] sm:$0xff] }
 0x7f7   :  { %6577 = vmatprep.subr.mxu1 %v5232_v9  ;;  %7399 = vmatprep.subr.mxu0 %v5246_v27  ;;  %v7626_v3 = vpop.permute.xlu1 %7625  ;;  %v7632_v36 = vunpack.i.l.bf16 %v7631_v28  ;;  %v7633_v0 = vunpack.i.h.bf16 %v7631_v28  ;;  %v5644_v44 = vld [vmem:[%s10763_s8 + $0x68] sm:$0xff]  ;;  %v5643_v42 = vld [vmem:[%s10763_s8 + $0x60] sm:$0xff]  ;;  %v5657_v15 = vld [vmem:[%s10763_s8 + $0xd0] sm:$0xff] }
 0x7f8   :  { %6578 = vmatpush3.msra.mxu1 %v5216_v23  ;;  %v7627_v18 = vunpack.i.l.bf16 %v7626_v3  ;;  %5344 = vmatprep.mubr.f32.mxu1 %v10533_v39  ;;  %v7628_v21 = vunpack.i.h.bf16 %v7626_v3  ;;  %v5641_v9 = vld [vmem:[%s10763_s8 + $0x50] sm:$0xff]  ;;  %v5640_v23 = vld [vmem:[%s10763_s8 + $0x48] sm:$0xff] }
 0x7f9   :  { %5419 = vmatprep.mubr.f32.mxu0 %v5139_v45  ;;  %6579 = vmatprep.subr.mxu1 %v5231_v54  ;;  %v5141_v57 = vsel %vm4284_vm12, %v5044_v12, %v7632_v36  ;;  %v5137_v37 = vsel %vm4284_vm12, %v5036_v24, %v7633_v0  ;;  %v5654_v45 = vld [vmem:[%s10763_s8 + $0xb8] sm:$0xff]  ;;  %v5653_v38 = vld [vmem:[%s10763_s8 + $0xb0] sm:$0xff]  ;;  %v5755_v36 = vld [vmem:[#allocation4 + $0x70] sm:$0xff] }
 0x7fa   :  { %7400 = vmatpush3.msra.mxu0 %v5246_v27  ;;  %5345 = vmatmul.mubr.f32.gmra.mxu1 %v10540_v19  ;;  %v5140_v47 = vsel %vm4284_vm12, %v5043_v49, %v7627_v18  ;;  %v5136_v6 = vsel %vm4284_vm12, %v5035_v50, %v7628_v21  ;;  %v5656_v27 = vld [vmem:[%s10763_s8 + $0xc8] sm:$0xff]  ;;  %v5638_v54 = vld [vmem:[%s10763_s8 + $0x38] sm:$0xff]  ;;  %v5637_v3 = vld [vmem:[%s10763_s8 + $0x30] sm:$0xff] }
 0x7fb   :  { %5420 = vmatmul.mubr.f32.gmra.mxu0 %v5135_v58  ;;  %6580 = vmatpush3.msra.mxu1 %v5215_v17  ;;  %v7636_v25 = vpop.permute.xlu1 %7635  ;;  %v5636_v18 = vld [vmem:[%s10763_s8 + $0x28] sm:$0xff]  ;;  %v5651_v58 = vld [vmem:[%s10763_s8 + $0xa0] sm:$0xff]  ;;  %v5649_v21 = vld [vmem:[%s10763_s8 + $0x90] sm:$0xff] }
 0x7fc   :  { %7401 = vmatprep.subr.mxu0 %v5245_v2  ;;  %6581 = vmatprep.subr.mxu1 %v5230_v14  ;;  %v7637_v52 = vunpack.i.l.bf16 %v7636_v25  ;;  %v7638_v10 = vunpack.i.h.bf16 %v7636_v25  ;;  %v5635_v17 = vld [vmem:[%s10763_s8 + $0x20] sm:$0xff]  ;;  %v5634_v14 = vld [vmem:[%s10763_s8 + $0x18] sm:$0xff]  ;;  %v5633_v28 = vld [vmem:[%s10763_s8 + $0x10] sm:$0xff] }
 0x7fd   :  { %5499 = vmatprep.mubr.f32.mxu1 %v10476_v34  ;;  %7402 = vmatpush3.msra.mxu0 %v5245_v2  ;;  %v5242_v34 = vld [vmem:[%s10761_s6 + $0x310] sm:$0xff]  ;;  %v5650_v2 = vld [vmem:[%s10763_s8 + $0x98] sm:$0xff]  ;;  %v5647_v49 = vld [vmem:[%s10763_s8 + $0x80] sm:$0xff] }
 0x7fe   :  { %6582 = vmatpush3.msra.mxu1 %v5214_v40  ;;  %7403 = vmatprep.subr.mxu0 %v5244_v43  ;;  %v5648_v40 = vld [vmem:[%s10763_s8 + $0x88] sm:$0xff]  ;;  %v5750_v12 = vld [vmem:[#allocation4 + $0x48] sm:$0xff]  ;;  %v5749_v0 = vld [vmem:[#allocation4 + $0x40] sm:$0xff] }
 0x7ff   :  { %5424 = vmatprep.mubr.f32.mxu0 %v5140_v47  ;;  %6583 = vmatprep.subr.mxu1 %v5229_v63  ;;  %v5631_v47 = vld [vmem:[%s10763_s8] sm:$0xff]  ;;  %v5756_v63 = vld [vmem:[#allocation4 + $0x78] sm:$0xff] }
 0x800   :  { %7404 = vmatpush3.msra.mxu0 %v5244_v43  ;;  %6584 = vmatpush3.msra.mxu1 %v5213_v26  ;;  %v5632_v43 = vld [vmem:[%s10763_s8 + $0x8] sm:$0xff]  ;;  %v5753_v26 = vld [vmem:[#allocation4 + $0x60] sm:$0xff] }
 0x801   :  { %5425 = vmatmul.mubr.f32.gmra.mxu0 %v5136_v6  ;;  %7405 = vmatprep.subr.mxu0 %v5243_v16  ;;  %v5752_v6 = vld [vmem:[#allocation4 + $0x58] sm:$0xff] }
 0x802   :  { %6585 = vmatprep.subr.mxu1 %v5228_v60  ;;  %7406 = vmatpush3.msra.mxu0 %v5243_v16  ;;  %v5751_v16 = vld [vmem:[#allocation4 + $0x50] sm:$0xff]  ;;  %v5748_v60 = vld [vmem:[#allocation4 + $0x38] sm:$0xff] }
 0x803   :  { %6586 = vmatpush3.msra.mxu1 %v5212_v7  ;;  %7407 = vmatprep.subr.mxu0 %v5242_v34  ;;  %v5747_v7 = vld [vmem:[#allocation4 + $0x30] sm:$0xff] }
 0x804   :  { %5429 = vmatprep.mubr.f32.mxu0 %v5141_v57  ;;  %6587 = vmatprep.subr.mxu1 %v5227_v4 }
 0x805   :  { %7408 = vmatpush3.msra.mxu0 %v5242_v34  ;;  %6588 = vmatpush3.msra.mxu1 %v5211_v5  ;;  %v5746_v34 = vld [vmem:[#allocation4 + $0x28] sm:$0xff] }
 0x806   :  { %5430 = vmatmul.mubr.f32.gmra.mxu0 %v5137_v37  ;;  %7409 = vmatprep.subr.mxu0 %v5241_v31 }
 0x807   :  { %6589 = vmatprep.subr.mxu1 %v5226_v53  ;;  %7410 = vmatpush3.msra.mxu0 %v5241_v31 }
 0x808   :  { %6590 = vmatpush3.msra.mxu1 %v5210_v41  ;;  %7411 = vmatprep.subr.mxu0 %v5240_v29 }
 0x809   :  { %6591 = vmatprep.subr.mxu1 %v5225_v22  ;;  %7412 = vmatpush3.msra.mxu0 %v5240_v29 }
 0x80a   :  { %7413 = vmatprep.mubr.msk.f32.mxu0 %vm4284_vm12, %v10529_v56  ;;  %6592 = vmatpush3.msra.mxu1 %v5209_v33  ;;  %v5655_v56 = vld [vmem:[%s10763_s8 + $0xc0] sm:$0xff] }
 0x80b   :  { %7414 = vmatmul.mubr.msk.f32.vlgmr.msra.gmra.mxu0 %vm4284_vm12, %v5035_v50  ;;  %6593 = vmatprep.subr.mxu1 %v5224_v35  ;;  %v5754_v50 = vld [vmem:[#allocation4 + $0x68] sm:$0xff] }
 0x80c   :  { %6594 = vmatpush3.msra.mxu1 %v5208_v13  ;;  %7416 = vmatprep.mubr.msk.f32.mxu0 %vm4284_vm12, %v5036_v24 }
 0x80d   :  { %5500 = vmatmul.mubr.f32.vlgmr.msra.gmra.mxu1 %v10479_v51  ;;  %7419 = vmatprep.subr.mxu0 %v10619_v8  ;;  %v5143_v51 = vsel %vm4284_vm12, %v5051_v59, %v7637_v52  ;;  %v6134_v52 = vld [vmem:[%s10762_s7 + $0x5] ss:$0 sm:$0xff] }
 0x80e   :  { %5504 = vmatprep.mubr.f32.mxu1 %v10509_v46  ;;  %v5142_v46 = vsel %vm4284_vm12, %v10619_v8, %v7638_v10  ;;  %6619 = vmatprep.subr.mxu1 %v5662_v11 }
 0x80f   :  { %7417 = vmatmul.mubr.msk.f32.gmra.mxu0 %vm4284_vm12, %v5053_v32 }
 0x810   :  { %7451 = vmatprep.mubr.msk.f32.mxu0 %vm7696_vm0, %v10619_v8  ;;  %7420 = vmatpush3.msra.mxu0 %v5756_v63  ;;  %vm5628_vm0 = vcmask 1040384  }
 0x811   :  { %5505 = vmatmul.mubr.f32.gmra.mxu1 %v10513_v48  ;;  %v5646_v48 = vld [vmem:[%s10763_s8 + $0x78] sm:$0xff]  ;;  %7421 = vmatprep.subr.mxu0 %v10619_v8 }
 0x812   :  { %5509 = vmatprep.mubr.f32.mxu1 %v10533_v39  ;;  %6620 = vmatpush3.msra.mxu1 %v5646_v48  ;;  %v5639_v39 = vld [vmem:[%s10763_s8 + $0x40] sm:$0xff] }
 0x813   :  { %6621 = vmatprep.subr.mxu1 %v5661_v62  ;;  %7422 = vmatpush3.msra.mxu0 %v5755_v36 }
 0x814   :  { %6622 = vmatpush3.msra.mxu1 %v5645_v1  ;;  %7423 = vmatprep.subr.mxu0 %v10619_v8 }
 0x815   :  { %5510 = vmatmul.mubr.f32.gmra.mxu1 %v10540_v19  ;;  %6623 = vmatprep.subr.mxu1 %v5660_v30  ;;  %v5652_v19 = vld [vmem:[%s10763_s8 + $0xa8] sm:$0xff] }
 0x816   :  { %5514 = vmatprep.mubr.f32.mxu1 %v5143_v51  ;;  %6624 = vmatpush3.msra.mxu1 %v5644_v44 }
 0x817   :  { %6625 = vmatprep.subr.mxu1 %v5659_v20  ;;  %7424 = vmatpush3.msra.mxu0 %v5754_v50 }
 0x818   :  { %6626 = vmatpush3.msra.mxu1 %v5643_v42  ;;  %7425 = vmatprep.subr.mxu0 %v10619_v8 }
 0x819   :  { %5515 = vmatmul.mubr.f32.gmra.mxu1 %v5142_v46  ;;  %6627 = vmatprep.subr.mxu1 %v5658_v61 }
 0x81a   :  { %6628 = vmatpush3.msra.mxu1 %v5642_v55  ;;  %7426 = vmatpush3.msra.mxu0 %v5753_v26 }
 0x81b   :  { %6629 = vmatprep.subr.mxu1 %v5657_v15  ;;  %7427 = vmatprep.subr.mxu0 %v10619_v8 }
 0x81c   :  { %6630 = vmatpush3.msra.mxu1 %v5641_v9  ;;  %7428 = vmatpush3.msra.mxu0 %v5752_v6 }
 0x81d   :  { %6631 = vmatprep.subr.mxu1 %v5656_v27  ;;  %7429 = vmatprep.subr.mxu0 %v10619_v8 }
 0x81e   :  { %6632 = vmatpush3.msra.mxu1 %v5640_v23  ;;  %7430 = vmatpush3.msra.mxu0 %v5751_v16 }
 0x81f   :  { %6633 = vmatprep.subr.mxu1 %v5655_v56  ;;  %7431 = vmatprep.subr.mxu0 %v10619_v8 }
 0x820   :  { %6634 = vmatpush3.msra.mxu1 %v5639_v39  ;;  %7432 = vmatpush3.msra.mxu0 %v5750_v12 }
 0x821   :  { %6635 = vmatprep.subr.mxu1 %v5654_v45  ;;  %7433 = vmatprep.subr.mxu0 %v10619_v8 }
 0x822   :  { %6636 = vmatpush3.msra.mxu1 %v5638_v54  ;;  %7434 = vmatpush3.msra.mxu0 %v5749_v0 }
 0x823   :  { %6637 = vmatprep.subr.mxu1 %v5653_v38  ;;  %7435 = vmatprep.subr.mxu0 %v10619_v8 }
 0x824   :  { %6638 = vmatpush3.msra.mxu1 %v5637_v3  ;;  %7436 = vmatpush3.msra.mxu0 %v5748_v60 }
 0x825   :  { %6639 = vmatprep.subr.mxu1 %v5652_v19  ;;  %7437 = vmatprep.subr.mxu0 %v10619_v8 }
 0x826   :  { %6640 = vmatpush3.msra.mxu1 %v5636_v18  ;;  %7438 = vmatpush3.msra.mxu0 %v5747_v7 }
 0x827   :  { %6641 = vmatprep.subr.mxu1 %v5651_v58  ;;  %7439 = vmatprep.subr.mxu0 %v10619_v8 }
 0x828   :  { %6642 = vmatpush3.msra.mxu1 %v5635_v17  ;;  %7440 = vmatpush3.msra.mxu0 %v5746_v34 }
 0x829   :  { %6643 = vmatprep.subr.mxu1 %v5650_v2  ;;  %7441 = vmatprep.subr.mxu0 %v10619_v8 }
 0x82a   :  { %6644 = vmatpush3.msra.mxu1 %v5634_v14 }
 0x82b   :  { %6645 = vmatprep.subr.mxu1 %v5649_v21 }
 0x82c   :  { %6646 = vmatpush3.msra.mxu1 %v5633_v28 }
 0x82d   :  { %6647 = vmatprep.subr.mxu1 %v5648_v40 }
 0x82e   :  { %6648 = vmatpush3.msra.mxu1 %v5632_v43 }
 0x82f   :  { %6649 = vmatprep.subr.mxu1 %v5647_v49 }
 0x830   :  { %6650 = vmatpush3.msra.mxu1 %v5631_v47 }
 0x8a8   :  { %v6507_v24 = vpop.f32.mrf.mxu1 }
 0x8aa   :  { %v6508_v57 = vpop.f32.mrf.mxu1 }
 0x8ab   :  { %v6509_v32 = vadd.f32 %v6508_v57, %v6507_v24 }
 0x8ac   :  { %v6510_v37 = vpop.f32.mrf.mxu1 }
 0x8ad   :  { %v5332_v11 = vadd.f32 %v6509_v32, %v6134_v52  ;;  %v6140_v32 = vld [vmem:[%s10764_s9] ss:$0 sm:$0xff]  ;;  %s5847_s9 = sshll.u32 %s7704_s4, 4  ;;  %s5848_s9 = int_to_ptr.vmem [resolvable:$true] %s5847_s9 }
 0x8ae   :  { %v6511_v53 = vpop.f32.mrf.mxu1  ;;  %s7668_s0 = scalar_lea.vmem %s5848_s9, 32  ;;  %p7673_p6 = scmp.lt.s32.totalorder %s5848_s9, %s5848_s9 }
 0x8af   :  { %v6512_v48 = vadd.f32 %v6511_v53, %v6510_v37  ;;  %p7669_p5 = scmp.ne.s32.totalorder %s5848_s9, %s7668_s0  ;;  %p7674_p7 = scmp.lt.s32.totalorder %s7668_s0, %s7668_s0 }
 0x8b1   :  { %v5337_v61 = vadd.f32 %v6512_v48, %v6134_v52  ;;  %p7675_p8 = por %p7674_p7, %p7673_p6 }
 0x8b3   :  { %p7676_p9 = pnand %p7675_p8, %p7669_p5 }
 0x8b5   :  { %v6551_v4 = vpop.f32.mrf.mxu0  ;;  %v6513_v29 = vpop.f32.mrf.mxu1 }
 0x8b7   :  { %v6552_v5 = vpop.f32.mrf.mxu0  ;;  %v6514_v33 = vpop.f32.mrf.mxu1 }
 0x8b8   :  { %v6553_v51 = vadd.f32 %v6552_v5, %v6551_v4  ;;  %v6515_v55 = vadd.f32 %v6514_v33, %v6513_v29  ;;  %v5745_v29 = vld [vmem:[#allocation4 + $0x20] sm:$0xff]  ;;  %v5743_v33 = vld [vmem:[#allocation4 + $0x10] sm:$0xff] }
 0x8b9   :  { %7442 = vmatpush3.msra.mxu0 %v5745_v29 }
 0x8ba   :  { %v6516_v13 = vpop.f32.mrf.mxu1  ;;  %v5417_v30 = vadd.f32 %v6553_v51, %v5332_v11  ;;  %v5342_v38 = vadd.f32 %v6515_v55, %v6134_v52  ;;  %7443 = vmatprep.subr.mxu0 %v10619_v8 }
 0x8bb   :  { %v6554_v31 = vpop.f32.mrf.mxu0 }
 0x8bc   :  { %v6517_v59 = vpop.f32.mrf.mxu1 }
 0x8bd   :  { %v6555_v41 = vpop.f32.mrf.mxu0  ;;  %v6518_v3 = vadd.f32 %v6517_v59, %v6516_v13  ;;  %v5741_v13 = vld [vmem:[#allocation4] sm:$0xff] }
 0x8be   :  { %v6556_v44 = vadd.f32 %v6555_v41, %v6554_v31 }
 0x8bf   :  { %v5347_v43 = vadd.f32 %v6518_v3, %v6134_v52 }
 0x8c0   :  { %v5422_v23 = vadd.f32 %v6556_v44, %v5337_v61 }
 0x8c1   :  { %v6557_v22 = vpop.f32.mrf.mxu0 }
 0x8c3   :  { %v6558_v35 = vpop.f32.mrf.mxu0 }
 0x8c4   :  { %v6559_v56 = vadd.f32 %v6558_v35, %v6557_v22  ;;  %v5744_v22 = vld [vmem:[#allocation4 + $0x18] sm:$0xff]  ;;  %v5742_v35 = vld [vmem:[#allocation4 + $0x8] sm:$0xff] }
 0x8c5   :  { %7444 = vmatpush3.msra.mxu0 %v5744_v22 }
 0x8c6   :  { %v6560_v25 = vpop.f32.mrf.mxu0  ;;  %v5427_v2 = vadd.f32 %v6559_v56, %v5342_v38  ;;  %7445 = vmatprep.subr.mxu0 %v10619_v8 }
 0x8c7   :  { %7446 = vmatpush3.msra.mxu0 %v5743_v33 }
 0x8c8   :  { %v6561_v10 = vpop.f32.mrf.mxu0  ;;  %7447 = vmatprep.subr.mxu0 %v10619_v8 }
 0x8c9   :  { %v6562_v14 = vadd.f32 %v6561_v10, %v6560_v25  ;;  %7448 = vmatpush3.msra.mxu0 %v5742_v35 }
 0x8ca   :  { %7449 = vmatprep.subr.mxu0 %v10619_v8 }
 0x8cb   :  { %v7415_v62 = vpop.f32.mrf.mxu0  ;;  %v5432_v50 = vadd.f32 %v6562_v14, %v5347_v43  ;;  %7450 = vmatpush3.msra.mxu0 %v5741_v13 }
 0x8cd   :  { %v6595_v46 = vpop.f32.mrf.mxu1  ;;  %v5586_v9 = vpop.f32.mrf.mxu0 }
 0x8cf   :  { %v6596_v1 = vpop.f32.mrf.mxu1  ;;  %v7418_v17 = vpop.f32.mrf.mxu0 }
 0x8d0   :  { %v6597_v20 = vadd.f32 %v6596_v1, %v6595_v46  ;;  %v6141_v46 = vld [vmem:[%s10766_s11] ss:$0 sm:$0xff] }
 0x8d1   :  { %v6598_v42 = vpop.f32.mrf.mxu1  ;;  %v5596_v63 = vpop.f32.mrf.mxu0 }
 0x8d2   :  { %v5502_v15 = vadd.f32 %v6597_v20, %v5417_v30 }
 0x8d3   :  { %v6599_v27 = vpop.f32.mrf.mxu1 }
 0x8d4   :  { %v5587_v39 = vadd.f32 %v5586_v9, %v5502_v15  ;;  %v6600_v45 = vadd.f32 %v6599_v27, %v6598_v42 }
 0x8d5   :  { %v6601_v54 = vpop.f32.mrf.mxu1 }
 0x8d6   :  { %v5605_v19 = vmax.f32 %v5587_v39, 0.0  ;;  %v5507_v18 = vadd.f32 %v6600_v45, %v5422_v23 }
 0x8d7   :  { %v6602_v58 = vpop.f32.mrf.mxu1 }
 0x8d8   :  { %5609 = vst [vmem:[#allocation3] sm:$0xff] %v5605_v19  ;;  %v5592_v21 = vadd.f32 %v7415_v62, %v5507_v18  ;;  %v6603_v28 = vadd.f32 %v6602_v58, %v6601_v54 }
 0x8d9   :  { %v6604_v40 = vpop.f32.mrf.mxu1 }
 0x8da   :  { %v5606_v49 = vmax.f32 %v5592_v21, 0.0  ;;  %v5512_v47 = vadd.f32 %v6603_v28, %v5427_v2 }
 0x8db   :  { %v6605_v36 = vpop.f32.mrf.mxu1 }
 0x8dc   :  { %5610 = vst [vmem:[#allocation3 + $0x8] sm:$0xff] %v5606_v49  ;;  %v5597_v26 = vadd.f32 %v5596_v63, %v5512_v47  ;;  %v6606_v6 = vadd.f32 %v6605_v36, %v6604_v40 }
 0x8de   :  { %v5607_v16 = vmax.f32 %v5597_v26, 0.0  ;;  %v5517_v12 = vadd.f32 %v6606_v6, %v5432_v50 }
 0x8df   :  { %v5613_v60 = vld [vmem:[#allocation3] ss:$2 sm:$0x3]  ;;  %v5614_v7 = vld [vmem:[#allocation3 + $0x1] ss:$2 sm:$0x3] }
 0x8e0   :  { %5611 = vst [vmem:[#allocation3 + $0x10] sm:$0xff] %v5607_v16  ;;  %v5602_v0 = vadd.f32 %v7418_v17, %v5517_v12  ;;  %v5615_v24 = vmax.f32 %v5613_v60, %v5614_v7 }
 0x8e2   :  { %v5608_v34 = vmax.f32 %v5602_v0, 0.0  ;;  %v5617_v5 = vrot.slane %v5615_v24, 1 }
 0x8e4   :  { %5612 = vst [vmem:[#allocation3 + $0x18] sm:$0xff] %v5608_v34 }
 0x8e7   :  { %v5619_v57 = vld [vmem:[#allocation3 + $0x10] ss:$2 sm:$0x3]  ;;  %v5620_v4 = vld [vmem:[#allocation3 + $0x11] ss:$2 sm:$0x3] }
 0x8e8   :  { %v5621_v37 = vmax.f32 %v5619_v57, %v5620_v4 }
 0x8ea   :  { %v5624_v31 = vrot.slane %v5621_v37, 7  ;;  %v5630_v53 = vsel %vm5628_vm0, %v5617_v5, %v5621_v37 }
 0x8eb   :  { %5734 = vmatprep.mubr.f32.mxu1 %v5630_v53 }
 0x8ec   :  { %v5629_v41 = vsel %vm5628_vm0, %v5615_v24, %v5624_v31 }
 0x8ed   :  { %5735 = vmatmul.mubr.f32.vlgmr.msra.gmra.mxu1 %v5629_v41 }
 0x9ad   :  { %v6651_v25 = vpop.f32.mrf.mxu1 }
 0x9af   :  { %v6652_v52 = vpop.f32.mrf.mxu1 }
 0x9b0   :  { %v6653_v59 = vadd.f32 %v6652_v52, %v6651_v25 }
 0x9b2   :  { %v5737_v10 = vadd.f32 %v6653_v59, %v6140_v32 }
 0x9b4   :  { %v5740_v51 = vmax.f32 %v5737_v10, 0.0 }
 0x9b6   :  { %7452 = vmatmul.mubr.f32.vlgmr.msra.gmra.mxu0 %v5740_v51 }
 0xa76   :  { %v5830_v11 = vpop.f32.mrf.mxu0 }
 0xa77   :  { %v5831_v48 = vadd.f32 %v6141_v46, %v5830_v11 }
 0xa78   :  { %v7453_v62 = vpop.f32.mrf.mxu0 }
 0xa79   :  { %v5834_v1 = vsub.f32 0.0, %v5831_v48 }
 0xa7b   :  { %v5835_v8 = vmul.f32 1.442695, %v5834_v1 }
 0xa7d   :  { %7639 = vpow2.f32 %v5835_v8 }
 0xa8a   :  { %v7640_v30 = vpop.eup %7639 }
 0xa8b   :  { %v5837_v44 = vadd.f32 1.0, %v7640_v30 }
 0xa8d   :  { %7641 = vrcp.f32 %v5837_v44 }
 0xa9a   :  { %v7642_v20 = vpop.eup %7641 }
 0xa9b   :  { %5840 = vst [vmem:[#allocation7] sm:$0x3] %v7642_v20 }
 0xa9c   :  { %7679 = shalt.err (!%p7676_p9)
}
 0xa9d   :  { %5850 = dma.vmem_to_hbm [thread:$0]  %s5848_s9, 32, %s10767_s12, [#allocation6]  }
 0xa9e   :  { %7690 = dma.done.wait [#allocation6], 32  }
 0xa9f   :  { %7691 = vsyncadd [#allocation6], 4294967264 }
 0xaa0   :  { %5854 = vsyncpa [#allocation5], 1 }
 0xaa1   :  { %5855 = vsyncpa [#allocation6], 1 }

</bundles_post_ra>
